<compile_context>
chip_gen: v5e
topology: v5e:2x2
jax: 0.10.0
libtpu: 0.0.40
codegen_flags: <defaults>
</compile_context>

<pallas_src>
import numpy as np
import jax
import jax.numpy as jnp
from jax.experimental import pallas as pl
from jax.experimental.pallas import tpu as pltpu


# dtype fed to the MXU; accumulation is always f32.
_MXU_DTYPE = jnp.bfloat16

# (name, kernel_size, pad, stride) — Dropout2d layers are inference identity.
_NET1_LAYERS = (
    ("conv1",  3, 1, 2),
    ("convsp", 1, 1, 1),
    ("conv2",  3, 1, 2),
    ("conv3",  3, 0, 2),
    # do1: Dropout2d -> identity at inference
    ("conv4",  3, 0, 1),
    # do2: Dropout2d -> identity at inference
    ("conv5",  1, 0, 1),
)


def _round_up(x, m):
    return (x + m - 1) // m * m


def _out_hw(h, w, k, pad, stride):
    return (h + 2 * pad - k) // stride + 1, (w + 2 * pad - k) // stride + 1


def _tap_selection(hi, wi, ho, wo, k, pad, stride):
    """0/1 matrices that implement im2col as matmuls (built at trace time).

    s[t, oh*wo+ow, ih*wi+iw] = 1 where tap t=(kh,kw) of output (oh,ow) reads
    input (ih,iw); rows whose tap lands in the zero-padding are all-zero, so
    they contribute 0 before the bias (matching Conv2d zero padding; for the
    1x1 pad=1 convsp this yields relu(bias) borders exactly like PyTorch).
    """
    s = np.zeros((k * k, ho * wo, hi * wi), dtype=np.float32)
    for kh in range(k):
        for kw in range(k):
            t = kh * k + kw
            for oh in range(ho):
                ih = oh * stride + kh - pad
                if ih < 0 or ih >= hi:
                    continue
                for ow in range(wo):
                    iw = ow * stride + kw - pad
                    if 0 <= iw < wi:
                        s[t, oh * wo + ow, ih * wi + iw] = 1.0
    return s


# --------------------------- kernel ------------------------------------------
def _dense(w_ref, b_ref, act):
    """relu(act @ W + b); f32 accumulation, f32 epilogue."""
    y = jnp.dot(act, w_ref[...], preferred_element_type=jnp.float32)
    return jnp.maximum(y + b_ref[...], 0.0)


def _tap_conv(s_ref, w_ref, b_ref, act):
    """One ConvBlk: relu(sum_t (S_t @ act) @ W_t + b).

    s_ref: (k*k, M_out, M_in) 0/1 selection (in-VMEM im2col)
    w_ref: (k*k, C_in, C_out) per-tap weights
    b_ref: (1, C_out)         bias (f32)
    act  : (M_in, C_in)       previous activation (bf16 value)
    """
    k2, m_out, _ = s_ref.shape
    c_out = w_ref.shape[-1]
    acc = jnp.zeros((m_out, c_out), jnp.float32)
    for t in range(k2):                      # static unroll, k*k <= 9
        tap = jnp.dot(s_ref[t], act, preferred_element_type=jnp.float32)
        acc = acc + jnp.dot(tap.astype(act.dtype), w_ref[t],
                            preferred_element_type=jnp.float32)
    return jnp.maximum(acc + b_ref[...], 0.0)


def _net1_kernel(p1_ref, w1_ref, b1_ref,
                 ssp_ref, wsp_ref, bsp_ref,
                 s2_ref, w2_ref, b2_ref,
                 s3_ref, w3_ref, b3_ref,
                 s4_ref, w4_ref, b4_ref,
                 w5_ref, b5_ref,
                 out_ref):
    cdt = _MXU_DTYPE
    # conv1: im2col of the network input was done once on the wrapper side.
    a1 = _dense(w1_ref, b1_ref, p1_ref[0]).astype(cdt)           # (M1, 16)
    asp = _tap_conv(ssp_ref, wsp_ref, bsp_ref, a1).astype(cdt)   # (Msp, 16)
    a2 = _tap_conv(s2_ref, w2_ref, b2_ref, asp).astype(cdt)      # (M2, 32)
    a3 = _tap_conv(s3_ref, w3_ref, b3_ref, a2).astype(cdt)       # (M3, 64)
    # do1 (Dropout2d): identity at inference.
    a4 = _tap_conv(s4_ref, w4_ref, b4_ref, a3).astype(cdt)       # (M4, 128)
    # do2 (Dropout2d): identity at inference.
    a5 = _dense(w5_ref, b5_ref, a4)                              # (M5, 10) f32
    out_ref[0] = a5


# --------------------------- wrapper ------------------------------------------
def _im2col(x_nhwc, k, pad, stride):
    """(N, H, W, C) -> (N, Ho*Wo, k*k*C); layer-1 only (input comes from HBM)."""
    n, h, w, c = x_nhwc.shape
    ho, wo = _out_hw(h, w, k, pad, stride)
    xp = jnp.pad(x_nhwc, ((0, 0), (pad, pad), (pad, pad), (0, 0)))
    cols = []
    for kh in range(k):
        for kw in range(k):
            tap = xp[:, kh:kh + (ho - 1) * stride + 1:stride,
                        kw:kw + (wo - 1) * stride + 1:stride, :]
            cols.append(tap.reshape(n, ho * wo, c))
    return jnp.concatenate(cols, axis=-1)


def _weight_taps(w_oihw):
    """(Cout, Cin, k, k) -> (k*k, Cin, Cout); tap order matches _tap_selection."""
    co, ci, kh, kw = w_oihw.shape
    return jnp.transpose(w_oihw, (2, 3, 1, 0)).reshape(kh * kw, ci, co)


def _vmem_limit_bytes(block_shapes_dtypes):
    """Derived scoped-VMEM limit: tile-padded block bytes, double-buffered."""
    total = 0
    for shape, dtype in block_shapes_dtypes:
        it = jnp.dtype(dtype).itemsize
        sub_tile = 8 * max(1, 4 // it)                   # 8 for f32, 16 for bf16
        lane = _round_up(shape[-1], 128)
        sub = _round_up(shape[-2], sub_tile)
        lead = int(np.prod(shape[:-2])) if len(shape) > 2 else 1
        total += lead * sub * lane * it
    return int(min(2 * total + (8 << 20), 32 << 20))


def net1_forward(x_nchw, params):
    """Net_1 forward: (N, 1, H, W) -> (N, 10*Hf*Wf), one fused Pallas kernel."""
    n, _, h, w = x_nchw.shape
    cdt = _MXU_DTYPE
    layer_cfg = {name: (k, pad, st) for name, k, pad, st in _NET1_LAYERS}

    # Per-layer spatial grids.
    hw = [(h, w)]
    for _, k, pad, st in _NET1_LAYERS:
        hw.append(_out_hw(hw[-1][0], hw[-1][1], k, pad, st))
    (h1, w1), (hs, ws), (h2, w2), (h3, w3), (h4, w4), (h5, w5) = hw[1:]
    m5 = h5 * w5
    c5 = params["conv5_w"].shape[0]

    # conv1 im2col on the HBM input (wrapper side, once per forward).
    x_nhwc = jnp.transpose(x_nchw, (0, 2, 3, 1))
    p1 = _im2col(x_nhwc, *layer_cfg["conv1"]).astype(cdt)         # (N, M1, 9*Cin)

    # In-VMEM im2col operators for every later layer (compile-time constants).
    ssp = jnp.asarray(_tap_selection(h1, w1, hs, ws, *layer_cfg["convsp"]), cdt)
    s2 = jnp.asarray(_tap_selection(hs, ws, h2, w2, *layer_cfg["conv2"]), cdt)
    s3 = jnp.asarray(_tap_selection(h2, w2, h3, w3, *layer_cfg["conv3"]), cdt)
    s4 = jnp.asarray(_tap_selection(h3, w3, h4, w4, *layer_cfg["conv4"]), cdt)

    def wt(name):
        return _weight_taps(params[name + "_w"]).astype(cdt)

    def bt(name):
        return params[name + "_b"].astype(jnp.float32).reshape(1, -1)

    c1 = params["conv1_w"].shape[0]
    w1m = wt("conv1").reshape(-1, c1)                             # (k*k*Cin, 16)
    w5m = wt("conv5").reshape(-1, c5)                             # (128, 10)

    operands = (p1, w1m, bt("conv1"),
                ssp, wt("convsp"), bt("convsp"),
                s2, wt("conv2"), bt("conv2"),
                s3, wt("conv3"), bt("conv3"),
                s4, wt("conv4"), bt("conv4"),
                w5m, bt("conv5"))

    # Per-sample block for patches/output; everything else has a constant
    # index_map so it is DMA'd once and stays VMEM-resident across the grid.
    def const_spec(a):
        nd = a.ndim
        return pl.BlockSpec(a.shape, lambda b, _nd=nd: (0,) * _nd)

    in_specs = [pl.BlockSpec((1,) + p1.shape[1:], lambda b: (b, 0, 0))]
    in_specs += [const_spec(a) for a in operands[1:]]
    out_spec = pl.BlockSpec((1, m5, c5), lambda b: (b, 0, 0))

    blocks = [((1,) + p1.shape[1:], p1.dtype)]
    blocks += [(a.shape, a.dtype) for a in operands[1:]]
    blocks += [((1, m5, c5), jnp.float32)]

    out = pl.pallas_call(
        _net1_kernel,
        out_shape=jax.ShapeDtypeStruct((n, m5, c5), jnp.float32),
        grid_spec=pltpu.PrefetchScalarGridSpec(
            num_scalar_prefetch=0,
            grid=(n,),
            in_specs=in_specs,
            out_specs=out_spec,
        ),
        compiler_params=pltpu.CompilerParams(
            dimension_semantics=("parallel",),
            vmem_limit_bytes=_vmem_limit_bytes(blocks),
        ),
    )(*operands)

    # torch.flatten(x, 1) of NCHW -> channel-major flatten.
    return jnp.transpose(out, (0, 2, 1)).reshape(n, -1)


# --------------------------- params & reference -------------------------------
def init_net1_params(key):
    in_f = 16
    cfg = [  # (name, cin, cout, k)
        ("conv1",  1,        in_f,     3),
        ("convsp", in_f,     in_f,     1),
        ("conv2",  in_f,     2 * in_f, 3),
        ("conv3",  2 * in_f, 4 * in_f, 3),
        ("conv4",  4 * in_f, 8 * in_f, 3),
        ("conv5",  8 * in_f, 10,       1),
    ]
    params = {}
    for name, cin, cout, k in cfg:
        key, kw_, kb_ = jax.random.split(key, 3)
        fan_in = cin * k * k
        params[name + "_w"] = jax.random.normal(
            kw_, (cout, cin, k, k), dtype=jnp.float32) * (2.0 / fan_in) ** 0.5
        params[name + "_b"] = jax.random.normal(
            kb_, (cout,), dtype=jnp.float32) * 0.1
    return params


def _reference_net1(x_nchw, params):
    x = x_nchw
    for name, k, pad, stride in _NET1_LAYERS:
        w = params[name + "_w"]
        b = params[name + "_b"]
        x = jax.lax.conv_general_dilated(
            x, w, window_strides=(stride, stride),
            padding=((pad, pad), (pad, pad)),
            dimension_numbers=("NCHW", "OIHW", "NCHW"),
            precision=jax.lax.Precision.HIGHEST)
        x = jnp.maximum(x + b.reshape(1, -1, 1, 1), 0.0)
    return x.reshape(x.shape[0], -1)


if __name__ == "__main__":
    key = jax.random.PRNGKey(0)
    kx, kp = jax.random.split(key)

    # conv1 has a single input channel -> MNIST-like 28x28 grayscale input.
    x = jax.random.normal(kx, (2, 1, 28, 28), dtype=jnp.float32)
    params = init_net1_params(kp)

    out = jax.jit(net1_forward)(x, params)
    out = jax.block_until_ready(out)

    ref = _reference_net1(x, params)
    assert out.shape == (2, 10), f"unexpected output shape {out.shape}"
    # Tolerance reflects bf16 MXU inputs (per perf review) vs the f32
    # Precision.HIGHEST XLA reference; observed error is ~1e-2 on O(1) logits.
    assert jnp.allclose(out, ref, atol=5e-2, rtol=5e-2), "mismatch vs reference network"

    print("KERNEL_OK")
</pallas_src>

<mosaic_0001>
module attributes {stable_mosaic.version = 11 : i64} {
  func.func @_net1_kernel(%arg0: i32, %arg1: memref<1x196x9xbf16, #tpu.memory_space<vmem>>, %arg2: memref<9x16xbf16, #tpu.memory_space<vmem>>, %arg3: memref<1x16xf32, #tpu.memory_space<vmem>>, %arg4: memref<1x256x196xbf16, #tpu.memory_space<vmem>>, %arg5: memref<1x16x16xbf16, #tpu.memory_space<vmem>>, %arg6: memref<1x16xf32, #tpu.memory_space<vmem>>, %arg7: memref<9x64x256xbf16, #tpu.memory_space<vmem>>, %arg8: memref<9x16x32xbf16, #tpu.memory_space<vmem>>, %arg9: memref<1x32xf32, #tpu.memory_space<vmem>>, %arg10: memref<9x9x64xbf16, #tpu.memory_space<vmem>>, %arg11: memref<9x32x64xbf16, #tpu.memory_space<vmem>>, %arg12: memref<1x64xf32, #tpu.memory_space<vmem>>, %arg13: memref<9x1x9xbf16, #tpu.memory_space<vmem>>, %arg14: memref<9x64x128xbf16, #tpu.memory_space<vmem>>, %arg15: memref<1x128xf32, #tpu.memory_space<vmem>>, %arg16: memref<128x10xbf16, #tpu.memory_space<vmem>>, %arg17: memref<1x10xf32, #tpu.memory_space<vmem>>, %arg18: memref<1x1x10xf32, #tpu.memory_space<vmem>>) attributes {dimension_semantics = [#tpu.dimension_semantics<parallel>], iteration_bounds = array<i64: 2>, scalar_prefetch = 0 : i64, scratch_operands = 0 : i64, tpu.core_type = #tpu.core_type<tc>, window_params = [{transform_indices = @transform_0, window_bounds = array<i64: 1, 196, 9>}, {pipeline_mode = #tpu.pipeline_mode<synchronous>, transform_indices = @transform_1, window_bounds = array<i64: 9, 16>}, {pipeline_mode = #tpu.pipeline_mode<synchronous>, transform_indices = @transform_2, window_bounds = array<i64: 1, 16>}, {pipeline_mode = #tpu.pipeline_mode<synchronous>, transform_indices = @transform_3, window_bounds = array<i64: 1, 256, 196>}, {pipeline_mode = #tpu.pipeline_mode<synchronous>, transform_indices = @transform_4, window_bounds = array<i64: 1, 16, 16>}, {pipeline_mode = #tpu.pipeline_mode<synchronous>, transform_indices = @transform_5, window_bounds = array<i64: 1, 16>}, {pipeline_mode = #tpu.pipeline_mode<synchronous>, transform_indices = @transform_6, window_bounds = array<i64: 9, 64, 256>}, {pipeline_mode = #tpu.pipeline_mode<synchronous>, transform_indices = @transform_7, window_bounds = array<i64: 9, 16, 32>}, {pipeline_mode = #tpu.pipeline_mode<synchronous>, transform_indices = @transform_8, window_bounds = array<i64: 1, 32>}, {pipeline_mode = #tpu.pipeline_mode<synchronous>, transform_indices = @transform_9, window_bounds = array<i64: 9, 9, 64>}, {pipeline_mode = #tpu.pipeline_mode<synchronous>, transform_indices = @transform_10, window_bounds = array<i64: 9, 32, 64>}, {pipeline_mode = #tpu.pipeline_mode<synchronous>, transform_indices = @transform_11, window_bounds = array<i64: 1, 64>}, {pipeline_mode = #tpu.pipeline_mode<synchronous>, transform_indices = @transform_12, window_bounds = array<i64: 9, 1, 9>}, {pipeline_mode = #tpu.pipeline_mode<synchronous>, transform_indices = @transform_13, window_bounds = array<i64: 9, 64, 128>}, {pipeline_mode = #tpu.pipeline_mode<synchronous>, transform_indices = @transform_14, window_bounds = array<i64: 1, 128>}, {pipeline_mode = #tpu.pipeline_mode<synchronous>, transform_indices = @transform_15, window_bounds = array<i64: 128, 10>}, {pipeline_mode = #tpu.pipeline_mode<synchronous>, transform_indices = @transform_16, window_bounds = array<i64: 1, 10>}, {transform_indices = @transform_17, window_bounds = array<i64: 1, 1, 10>}]} {
    %c0 = arith.constant 0 : index
    %c0_0 = arith.constant 0 : index
    %c0_1 = arith.constant 0 : index
    %0 = vector.load %arg1[%c0, %c0_0, %c0_1] : memref<1x196x9xbf16, #tpu.memory_space<vmem>>, vector<1x196x9xbf16>
    %1 = vector.shape_cast %0 : vector<1x196x9xbf16> to vector<196x9xbf16>
    %c0_2 = arith.constant 0 : index
    %c0_3 = arith.constant 0 : index
    %2 = vector.load %arg2[%c0_2, %c0_3] : memref<9x16xbf16, #tpu.memory_space<vmem>>, vector<9x16xbf16>
    %cst = arith.constant dense<0.000000e+00> : vector<196x16xf32>
    %3 = tpu.matmul %1, %2, %cst {dimension_numbers = #tpu.dot_dimension_numbers<[1], [0], [0], [1], [0, 0, 1, 1], [], []>} : vector<196x9xbf16>, vector<9x16xbf16>, vector<196x16xf32> -> vector<196x16xf32>
    %c0_4 = arith.constant 0 : index
    %c0_5 = arith.constant 0 : index
    %4 = vector.load %arg3[%c0_4, %c0_5] : memref<1x16xf32, #tpu.memory_space<vmem>>, vector<1x16xf32>
    %5 = vector.broadcast %4 : vector<1x16xf32> to vector<196x16xf32>
    %6 = arith.addf %3, %5 : vector<196x16xf32>
    %cst_6 = arith.constant 0.000000e+00 : f32
    %7 = vector.broadcast %cst_6 : f32 to vector<196x16xf32>
    %8 = arith.maximumf %6, %7 : vector<196x16xf32>
    %9 = arith.truncf %8 : vector<196x16xf32> to vector<196x16xbf16>
    %cst_7 = arith.constant 0.000000e+00 : f32
    %10 = vector.broadcast %cst_7 : f32 to vector<256x16xf32>
    %c0_8 = arith.constant 0 : index
    %c0_9 = arith.constant 0 : index
    %c0_10 = arith.constant 0 : index
    %11 = vector.load %arg4[%c0_8, %c0_9, %c0_10] : memref<1x256x196xbf16, #tpu.memory_space<vmem>>, vector<1x256x196xbf16>
    %12 = vector.shape_cast %11 : vector<1x256x196xbf16> to vector<256x196xbf16>
    %cst_11 = arith.constant dense<0.000000e+00> : vector<256x16xf32>
    %13 = tpu.matmul %12, %9, %cst_11 {dimension_numbers = #tpu.dot_dimension_numbers<[1], [0], [0], [1], [0, 0, 1, 1], [], []>} : vector<256x196xbf16>, vector<196x16xbf16>, vector<256x16xf32> -> vector<256x16xf32>
    %14 = arith.truncf %13 : vector<256x16xf32> to vector<256x16xbf16>
    %c0_12 = arith.constant 0 : index
    %c0_13 = arith.constant 0 : index
    %c0_14 = arith.constant 0 : index
    %15 = vector.load %arg5[%c0_12, %c0_13, %c0_14] : memref<1x16x16xbf16, #tpu.memory_space<vmem>>, vector<1x16x16xbf16>
    %16 = vector.shape_cast %15 : vector<1x16x16xbf16> to vector<16x16xbf16>
    %cst_15 = arith.constant dense<0.000000e+00> : vector<256x16xf32>
    %17 = tpu.matmul %14, %16, %cst_15 {dimension_numbers = #tpu.dot_dimension_numbers<[1], [0], [0], [1], [0, 0, 1, 1], [], []>} : vector<256x16xbf16>, vector<16x16xbf16>, vector<256x16xf32> -> vector<256x16xf32>
    %18 = arith.addf %10, %17 : vector<256x16xf32>
    %c0_16 = arith.constant 0 : index
    %c0_17 = arith.constant 0 : index
    %19 = vector.load %arg6[%c0_16, %c0_17] : memref<1x16xf32, #tpu.memory_space<vmem>>, vector<1x16xf32>
    %20 = vector.broadcast %19 : vector<1x16xf32> to vector<256x16xf32>
    %21 = arith.addf %18, %20 : vector<256x16xf32>
    %cst_18 = arith.constant 0.000000e+00 : f32
    %22 = vector.broadcast %cst_18 : f32 to vector<256x16xf32>
    %23 = arith.maximumf %21, %22 : vector<256x16xf32>
    %24 = arith.truncf %23 : vector<256x16xf32> to vector<256x16xbf16>
    %cst_19 = arith.constant 0.000000e+00 : f32
    %25 = vector.broadcast %cst_19 : f32 to vector<64x32xf32>
    %c0_20 = arith.constant 0 : index
    %c0_21 = arith.constant 0 : index
    %c0_22 = arith.constant 0 : index
    %26 = vector.load %arg7[%c0_20, %c0_21, %c0_22] : memref<9x64x256xbf16, #tpu.memory_space<vmem>>, vector<1x64x256xbf16>
    %27 = vector.shape_cast %26 : vector<1x64x256xbf16> to vector<64x256xbf16>
    %cst_23 = arith.constant dense<0.000000e+00> : vector<64x16xf32>
    %28 = tpu.matmul %27, %24, %cst_23 {dimension_numbers = #tpu.dot_dimension_numbers<[1], [0], [0], [1], [0, 0, 1, 1], [], []>} : vector<64x256xbf16>, vector<256x16xbf16>, vector<64x16xf32> -> vector<64x16xf32>
    %29 = arith.truncf %28 : vector<64x16xf32> to vector<64x16xbf16>
    %c0_24 = arith.constant 0 : index
    %c0_25 = arith.constant 0 : index
    %c0_26 = arith.constant 0 : index
    %30 = vector.load %arg8[%c0_24, %c0_25, %c0_26] : memref<9x16x32xbf16, #tpu.memory_space<vmem>>, vector<1x16x32xbf16>
    %31 = vector.shape_cast %30 : vector<1x16x32xbf16> to vector<16x32xbf16>
    %cst_27 = arith.constant dense<0.000000e+00> : vector<64x32xf32>
    %32 = tpu.matmul %29, %31, %cst_27 {dimension_numbers = #tpu.dot_dimension_numbers<[1], [0], [0], [1], [0, 0, 1, 1], [], []>} : vector<64x16xbf16>, vector<16x32xbf16>, vector<64x32xf32> -> vector<64x32xf32>
    %33 = arith.addf %25, %32 : vector<64x32xf32>
    %c1 = arith.constant 1 : index
    %c0_28 = arith.constant 0 : index
    %c0_29 = arith.constant 0 : index
    %34 = vector.load %arg7[%c1, %c0_28, %c0_29] : memref<9x64x256xbf16, #tpu.memory_space<vmem>>, vector<1x64x256xbf16>
    %35 = vector.shape_cast %34 : vector<1x64x256xbf16> to vector<64x256xbf16>
    %cst_30 = arith.constant dense<0.000000e+00> : vector<64x16xf32>
    %36 = tpu.matmul %35, %24, %cst_30 {dimension_numbers = #tpu.dot_dimension_numbers<[1], [0], [0], [1], [0, 0, 1, 1], [], []>} : vector<64x256xbf16>, vector<256x16xbf16>, vector<64x16xf32> -> vector<64x16xf32>
    %37 = arith.truncf %36 : vector<64x16xf32> to vector<64x16xbf16>
    %c1_31 = arith.constant 1 : index
    %c0_32 = arith.constant 0 : index
    %c0_33 = arith.constant 0 : index
    %38 = vector.load %arg8[%c1_31, %c0_32, %c0_33] : memref<9x16x32xbf16, #tpu.memory_space<vmem>>, vector<1x16x32xbf16>
    %39 = vector.shape_cast %38 : vector<1x16x32xbf16> to vector<16x32xbf16>
    %cst_34 = arith.constant dense<0.000000e+00> : vector<64x32xf32>
    %40 = tpu.matmul %37, %39, %cst_34 {dimension_numbers = #tpu.dot_dimension_numbers<[1], [0], [0], [1], [0, 0, 1, 1], [], []>} : vector<64x16xbf16>, vector<16x32xbf16>, vector<64x32xf32> -> vector<64x32xf32>
    %41 = arith.addf %33, %40 : vector<64x32xf32>
    %c2 = arith.constant 2 : index
    %c0_35 = arith.constant 0 : index
    %c0_36 = arith.constant 0 : index
    %42 = vector.load %arg7[%c2, %c0_35, %c0_36] : memref<9x64x256xbf16, #tpu.memory_space<vmem>>, vector<1x64x256xbf16>
    %43 = vector.shape_cast %42 : vector<1x64x256xbf16> to vector<64x256xbf16>
    %cst_37 = arith.constant dense<0.000000e+00> : vector<64x16xf32>
    %44 = tpu.matmul %43, %24, %cst_37 {dimension_numbers = #tpu.dot_dimension_numbers<[1], [0], [0], [1], [0, 0, 1, 1], [], []>} : vector<64x256xbf16>, vector<256x16xbf16>, vector<64x16xf32> -> vector<64x16xf32>
    %45 = arith.truncf %44 : vector<64x16xf32> to vector<64x16xbf16>
    %c2_38 = arith.constant 2 : index
    %c0_39 = arith.constant 0 : index
    %c0_40 = arith.constant 0 : index
    %46 = vector.load %arg8[%c2_38, %c0_39, %c0_40] : memref<9x16x32xbf16, #tpu.memory_space<vmem>>, vector<1x16x32xbf16>
    %47 = vector.shape_cast %46 : vector<1x16x32xbf16> to vector<16x32xbf16>
    %cst_41 = arith.constant dense<0.000000e+00> : vector<64x32xf32>
    %48 = tpu.matmul %45, %47, %cst_41 {dimension_numbers = #tpu.dot_dimension_numbers<[1], [0], [0], [1], [0, 0, 1, 1], [], []>} : vector<64x16xbf16>, vector<16x32xbf16>, vector<64x32xf32> -> vector<64x32xf32>
    %49 = arith.addf %41, %48 : vector<64x32xf32>
    %c3 = arith.constant 3 : index
    %c0_42 = arith.constant 0 : index
    %c0_43 = arith.constant 0 : index
    %50 = vector.load %arg7[%c3, %c0_42, %c0_43] : memref<9x64x256xbf16, #tpu.memory_space<vmem>>, vector<1x64x256xbf16>
    %51 = vector.shape_cast %50 : vector<1x64x256xbf16> to vector<64x256xbf16>
    %cst_44 = arith.constant dense<0.000000e+00> : vector<64x16xf32>
    %52 = tpu.matmul %51, %24, %cst_44 {dimension_numbers = #tpu.dot_dimension_numbers<[1], [0], [0], [1], [0, 0, 1, 1], [], []>} : vector<64x256xbf16>, vector<256x16xbf16>, vector<64x16xf32> -> vector<64x16xf32>
    %53 = arith.truncf %52 : vector<64x16xf32> to vector<64x16xbf16>
    %c3_45 = arith.constant 3 : index
    %c0_46 = arith.constant 0 : index
    %c0_47 = arith.constant 0 : index
    %54 = vector.load %arg8[%c3_45, %c0_46, %c0_47] : memref<9x16x32xbf16, #tpu.memory_space<vmem>>, vector<1x16x32xbf16>
    %55 = vector.shape_cast %54 : vector<1x16x32xbf16> to vector<16x32xbf16>
    %cst_48 = arith.constant dense<0.000000e+00> : vector<64x32xf32>
    %56 = tpu.matmul %53, %55, %cst_48 {dimension_numbers = #tpu.dot_dimension_numbers<[1], [0], [0], [1], [0, 0, 1, 1], [], []>} : vector<64x16xbf16>, vector<16x32xbf16>, vector<64x32xf32> -> vector<64x32xf32>
    %57 = arith.addf %49, %56 : vector<64x32xf32>
    %c4 = arith.constant 4 : index
    %c0_49 = arith.constant 0 : index
    %c0_50 = arith.constant 0 : index
    %58 = vector.load %arg7[%c4, %c0_49, %c0_50] : memref<9x64x256xbf16, #tpu.memory_space<vmem>>, vector<1x64x256xbf16>
    %59 = vector.shape_cast %58 : vector<1x64x256xbf16> to vector<64x256xbf16>
    %cst_51 = arith.constant dense<0.000000e+00> : vector<64x16xf32>
    %60 = tpu.matmul %59, %24, %cst_51 {dimension_numbers = #tpu.dot_dimension_numbers<[1], [0], [0], [1], [0, 0, 1, 1], [], []>} : vector<64x256xbf16>, vector<256x16xbf16>, vector<64x16xf32> -> vector<64x16xf32>
    %61 = arith.truncf %60 : vector<64x16xf32> to vector<64x16xbf16>
    %c4_52 = arith.constant 4 : index
    %c0_53 = arith.constant 0 : index
    %c0_54 = arith.constant 0 : index
    %62 = vector.load %arg8[%c4_52, %c0_53, %c0_54] : memref<9x16x32xbf16, #tpu.memory_space<vmem>>, vector<1x16x32xbf16>
    %63 = vector.shape_cast %62 : vector<1x16x32xbf16> to vector<16x32xbf16>
    %cst_55 = arith.constant dense<0.000000e+00> : vector<64x32xf32>
    %64 = tpu.matmul %61, %63, %cst_55 {dimension_numbers = #tpu.dot_dimension_numbers<[1], [0], [0], [1], [0, 0, 1, 1], [], []>} : vector<64x16xbf16>, vector<16x32xbf16>, vector<64x32xf32> -> vector<64x32xf32>
    %65 = arith.addf %57, %64 : vector<64x32xf32>
    %c5 = arith.constant 5 : index
    %c0_56 = arith.constant 0 : index
    %c0_57 = arith.constant 0 : index
    %66 = vector.load %arg7[%c5, %c0_56, %c0_57] : memref<9x64x256xbf16, #tpu.memory_space<vmem>>, vector<1x64x256xbf16>
    %67 = vector.shape_cast %66 : vector<1x64x256xbf16> to vector<64x256xbf16>
    %cst_58 = arith.constant dense<0.000000e+00> : vector<64x16xf32>
    %68 = tpu.matmul %67, %24, %cst_58 {dimension_numbers = #tpu.dot_dimension_numbers<[1], [0], [0], [1], [0, 0, 1, 1], [], []>} : vector<64x256xbf16>, vector<256x16xbf16>, vector<64x16xf32> -> vector<64x16xf32>
    %69 = arith.truncf %68 : vector<64x16xf32> to vector<64x16xbf16>
    %c5_59 = arith.constant 5 : index
    %c0_60 = arith.constant 0 : index
    %c0_61 = arith.constant 0 : index
    %70 = vector.load %arg8[%c5_59, %c0_60, %c0_61] : memref<9x16x32xbf16, #tpu.memory_space<vmem>>, vector<1x16x32xbf16>
    %71 = vector.shape_cast %70 : vector<1x16x32xbf16> to vector<16x32xbf16>
    %cst_62 = arith.constant dense<0.000000e+00> : vector<64x32xf32>
    %72 = tpu.matmul %69, %71, %cst_62 {dimension_numbers = #tpu.dot_dimension_numbers<[1], [0], [0], [1], [0, 0, 1, 1], [], []>} : vector<64x16xbf16>, vector<16x32xbf16>, vector<64x32xf32> -> vector<64x32xf32>
    %73 = arith.addf %65, %72 : vector<64x32xf32>
    %c6 = arith.constant 6 : index
    %c0_63 = arith.constant 0 : index
    %c0_64 = arith.constant 0 : index
    %74 = vector.load %arg7[%c6, %c0_63, %c0_64] : memref<9x64x256xbf16, #tpu.memory_space<vmem>>, vector<1x64x256xbf16>
    %75 = vector.shape_cast %74 : vector<1x64x256xbf16> to vector<64x256xbf16>
    %cst_65 = arith.constant dense<0.000000e+00> : vector<64x16xf32>
    %76 = tpu.matmul %75, %24, %cst_65 {dimension_numbers = #tpu.dot_dimension_numbers<[1], [0], [0], [1], [0, 0, 1, 1], [], []>} : vector<64x256xbf16>, vector<256x16xbf16>, vector<64x16xf32> -> vector<64x16xf32>
    %77 = arith.truncf %76 : vector<64x16xf32> to vector<64x16xbf16>
    %c6_66 = arith.constant 6 : index
    %c0_67 = arith.constant 0 : index
    %c0_68 = arith.constant 0 : index
    %78 = vector.load %arg8[%c6_66, %c0_67, %c0_68] : memref<9x16x32xbf16, #tpu.memory_space<vmem>>, vector<1x16x32xbf16>
    %79 = vector.shape_cast %78 : vector<1x16x32xbf16> to vector<16x32xbf16>
    %cst_69 = arith.constant dense<0.000000e+00> : vector<64x32xf32>
    %80 = tpu.matmul %77, %79, %cst_69 {dimension_numbers = #tpu.dot_dimension_numbers<[1], [0], [0], [1], [0, 0, 1, 1], [], []>} : vector<64x16xbf16>, vector<16x32xbf16>, vector<64x32xf32> -> vector<64x32xf32>
    %81 = arith.addf %73, %80 : vector<64x32xf32>
    %c7 = arith.constant 7 : index
    %c0_70 = arith.constant 0 : index
    %c0_71 = arith.constant 0 : index
    %82 = vector.load %arg7[%c7, %c0_70, %c0_71] : memref<9x64x256xbf16, #tpu.memory_space<vmem>>, vector<1x64x256xbf16>
    %83 = vector.shape_cast %82 : vector<1x64x256xbf16> to vector<64x256xbf16>
    %cst_72 = arith.constant dense<0.000000e+00> : vector<64x16xf32>
    %84 = tpu.matmul %83, %24, %cst_72 {dimension_numbers = #tpu.dot_dimension_numbers<[1], [0], [0], [1], [0, 0, 1, 1], [], []>} : vector<64x256xbf16>, vector<256x16xbf16>, vector<64x16xf32> -> vector<64x16xf32>
    %85 = arith.truncf %84 : vector<64x16xf32> to vector<64x16xbf16>
    %c7_73 = arith.constant 7 : index
    %c0_74 = arith.constant 0 : index
    %c0_75 = arith.constant 0 : index
    %86 = vector.load %arg8[%c7_73, %c0_74, %c0_75] : memref<9x16x32xbf16, #tpu.memory_space<vmem>>, vector<1x16x32xbf16>
    %87 = vector.shape_cast %86 : vector<1x16x32xbf16> to vector<16x32xbf16>
    %cst_76 = arith.constant dense<0.000000e+00> : vector<64x32xf32>
    %88 = tpu.matmul %85, %87, %cst_76 {dimension_numbers = #tpu.dot_dimension_numbers<[1], [0], [0], [1], [0, 0, 1, 1], [], []>} : vector<64x16xbf16>, vector<16x32xbf16>, vector<64x32xf32> -> vector<64x32xf32>
    %89 = arith.addf %81, %88 : vector<64x32xf32>
    %c8 = arith.constant 8 : index
    %c0_77 = arith.constant 0 : index
    %c0_78 = arith.constant 0 : index
    %90 = vector.load %arg7[%c8, %c0_77, %c0_78] : memref<9x64x256xbf16, #tpu.memory_space<vmem>>, vector<1x64x256xbf16>
    %91 = vector.shape_cast %90 : vector<1x64x256xbf16> to vector<64x256xbf16>
    %cst_79 = arith.constant dense<0.000000e+00> : vector<64x16xf32>
    %92 = tpu.matmul %91, %24, %cst_79 {dimension_numbers = #tpu.dot_dimension_numbers<[1], [0], [0], [1], [0, 0, 1, 1], [], []>} : vector<64x256xbf16>, vector<256x16xbf16>, vector<64x16xf32> -> vector<64x16xf32>
    %93 = arith.truncf %92 : vector<64x16xf32> to vector<64x16xbf16>
    %c8_80 = arith.constant 8 : index
    %c0_81 = arith.constant 0 : index
    %c0_82 = arith.constant 0 : index
    %94 = vector.load %arg8[%c8_80, %c0_81, %c0_82] : memref<9x16x32xbf16, #tpu.memory_space<vmem>>, vector<1x16x32xbf16>
    %95 = vector.shape_cast %94 : vector<1x16x32xbf16> to vector<16x32xbf16>
    %cst_83 = arith.constant dense<0.000000e+00> : vector<64x32xf32>
    %96 = tpu.matmul %93, %95, %cst_83 {dimension_numbers = #tpu.dot_dimension_numbers<[1], [0], [0], [1], [0, 0, 1, 1], [], []>} : vector<64x16xbf16>, vector<16x32xbf16>, vector<64x32xf32> -> vector<64x32xf32>
    %97 = arith.addf %89, %96 : vector<64x32xf32>
    %c0_84 = arith.constant 0 : index
    %c0_85 = arith.constant 0 : index
    %98 = vector.load %arg9[%c0_84, %c0_85] : memref<1x32xf32, #tpu.memory_space<vmem>>, vector<1x32xf32>
    %99 = vector.broadcast %98 : vector<1x32xf32> to vector<64x32xf32>
    %100 = arith.addf %97, %99 : vector<64x32xf32>
    %cst_86 = arith.constant 0.000000e+00 : f32
    %101 = vector.broadcast %cst_86 : f32 to vector<64x32xf32>
    %102 = arith.maximumf %100, %101 : vector<64x32xf32>
    %103 = arith.truncf %102 : vector<64x32xf32> to vector<64x32xbf16>
    %cst_87 = arith.constant 0.000000e+00 : f32
    %104 = vector.broadcast %cst_87 : f32 to vector<9x64xf32>
    %c0_88 = arith.constant 0 : index
    %c0_89 = arith.constant 0 : index
    %c0_90 = arith.constant 0 : index
    %105 = vector.load %arg10[%c0_88, %c0_89, %c0_90] : memref<9x9x64xbf16, #tpu.memory_space<vmem>>, vector<1x9x64xbf16>
    %106 = vector.shape_cast %105 : vector<1x9x64xbf16> to vector<9x64xbf16>
    %cst_91 = arith.constant dense<0.000000e+00> : vector<9x32xf32>
    %107 = tpu.matmul %106, %103, %cst_91 {dimension_numbers = #tpu.dot_dimension_numbers<[1], [0], [0], [1], [0, 0, 1, 1], [], []>} : vector<9x64xbf16>, vector<64x32xbf16>, vector<9x32xf32> -> vector<9x32xf32>
    %108 = arith.truncf %107 : vector<9x32xf32> to vector<9x32xbf16>
    %c0_92 = arith.constant 0 : index
    %c0_93 = arith.constant 0 : index
    %c0_94 = arith.constant 0 : index
    %109 = vector.load %arg11[%c0_92, %c0_93, %c0_94] : memref<9x32x64xbf16, #tpu.memory_space<vmem>>, vector<1x32x64xbf16>
    %110 = vector.shape_cast %109 : vector<1x32x64xbf16> to vector<32x64xbf16>
    %cst_95 = arith.constant dense<0.000000e+00> : vector<9x64xf32>
    %111 = tpu.matmul %108, %110, %cst_95 {dimension_numbers = #tpu.dot_dimension_numbers<[1], [0], [0], [1], [0, 0, 1, 1], [], []>} : vector<9x32xbf16>, vector<32x64xbf16>, vector<9x64xf32> -> vector<9x64xf32>
    %112 = arith.addf %104, %111 : vector<9x64xf32>
    %c1_96 = arith.constant 1 : index
    %c0_97 = arith.constant 0 : index
    %c0_98 = arith.constant 0 : index
    %113 = vector.load %arg10[%c1_96, %c0_97, %c0_98] : memref<9x9x64xbf16, #tpu.memory_space<vmem>>, vector<1x9x64xbf16>
    %114 = vector.shape_cast %113 : vector<1x9x64xbf16> to vector<9x64xbf16>
    %cst_99 = arith.constant dense<0.000000e+00> : vector<9x32xf32>
    %115 = tpu.matmul %114, %103, %cst_99 {dimension_numbers = #tpu.dot_dimension_numbers<[1], [0], [0], [1], [0, 0, 1, 1], [], []>} : vector<9x64xbf16>, vector<64x32xbf16>, vector<9x32xf32> -> vector<9x32xf32>
    %116 = arith.truncf %115 : vector<9x32xf32> to vector<9x32xbf16>
    %c1_100 = arith.constant 1 : index
    %c0_101 = arith.constant 0 : index
    %c0_102 = arith.constant 0 : index
    %117 = vector.load %arg11[%c1_100, %c0_101, %c0_102] : memref<9x32x64xbf16, #tpu.memory_space<vmem>>, vector<1x32x64xbf16>
    %118 = vector.shape_cast %117 : vector<1x32x64xbf16> to vector<32x64xbf16>
    %cst_103 = arith.constant dense<0.000000e+00> : vector<9x64xf32>
    %119 = tpu.matmul %116, %118, %cst_103 {dimension_numbers = #tpu.dot_dimension_numbers<[1], [0], [0], [1], [0, 0, 1, 1], [], []>} : vector<9x32xbf16>, vector<32x64xbf16>, vector<9x64xf32> -> vector<9x64xf32>
    %120 = arith.addf %112, %119 : vector<9x64xf32>
    %c2_104 = arith.constant 2 : index
    %c0_105 = arith.constant 0 : index
    %c0_106 = arith.constant 0 : index
    %121 = vector.load %arg10[%c2_104, %c0_105, %c0_106] : memref<9x9x64xbf16, #tpu.memory_space<vmem>>, vector<1x9x64xbf16>
    %122 = vector.shape_cast %121 : vector<1x9x64xbf16> to vector<9x64xbf16>
    %cst_107 = arith.constant dense<0.000000e+00> : vector<9x32xf32>
    %123 = tpu.matmul %122, %103, %cst_107 {dimension_numbers = #tpu.dot_dimension_numbers<[1], [0], [0], [1], [0, 0, 1, 1], [], []>} : vector<9x64xbf16>, vector<64x32xbf16>, vector<9x32xf32> -> vector<9x32xf32>
    %124 = arith.truncf %123 : vector<9x32xf32> to vector<9x32xbf16>
    %c2_108 = arith.constant 2 : index
    %c0_109 = arith.constant 0 : index
    %c0_110 = arith.constant 0 : index
    %125 = vector.load %arg11[%c2_108, %c0_109, %c0_110] : memref<9x32x64xbf16, #tpu.memory_space<vmem>>, vector<1x32x64xbf16>
    %126 = vector.shape_cast %125 : vector<1x32x64xbf16> to vector<32x64xbf16>
    %cst_111 = arith.constant dense<0.000000e+00> : vector<9x64xf32>
    %127 = tpu.matmul %124, %126, %cst_111 {dimension_numbers = #tpu.dot_dimension_numbers<[1], [0], [0], [1], [0, 0, 1, 1], [], []>} : vector<9x32xbf16>, vector<32x64xbf16>, vector<9x64xf32> -> vector<9x64xf32>
    %128 = arith.addf %120, %127 : vector<9x64xf32>
    %c3_112 = arith.constant 3 : index
    %c0_113 = arith.constant 0 : index
    %c0_114 = arith.constant 0 : index
    %129 = vector.load %arg10[%c3_112, %c0_113, %c0_114] : memref<9x9x64xbf16, #tpu.memory_space<vmem>>, vector<1x9x64xbf16>
    %130 = vector.shape_cast %129 : vector<1x9x64xbf16> to vector<9x64xbf16>
    %cst_115 = arith.constant dense<0.000000e+00> : vector<9x32xf32>
    %131 = tpu.matmul %130, %103, %cst_115 {dimension_numbers = #tpu.dot_dimension_numbers<[1], [0], [0], [1], [0, 0, 1, 1], [], []>} : vector<9x64xbf16>, vector<64x32xbf16>, vector<9x32xf32> -> vector<9x32xf32>
    %132 = arith.truncf %131 : vector<9x32xf32> to vector<9x32xbf16>
    %c3_116 = arith.constant 3 : index
    %c0_117 = arith.constant 0 : index
    %c0_118 = arith.constant 0 : index
    %133 = vector.load %arg11[%c3_116, %c0_117, %c0_118] : memref<9x32x64xbf16, #tpu.memory_space<vmem>>, vector<1x32x64xbf16>
    %134 = vector.shape_cast %133 : vector<1x32x64xbf16> to vector<32x64xbf16>
    %cst_119 = arith.constant dense<0.000000e+00> : vector<9x64xf32>
    %135 = tpu.matmul %132, %134, %cst_119 {dimension_numbers = #tpu.dot_dimension_numbers<[1], [0], [0], [1], [0, 0, 1, 1], [], []>} : vector<9x32xbf16>, vector<32x64xbf16>, vector<9x64xf32> -> vector<9x64xf32>
    %136 = arith.addf %128, %135 : vector<9x64xf32>
    %c4_120 = arith.constant 4 : index
    %c0_121 = arith.constant 0 : index
    %c0_122 = arith.constant 0 : index
    %137 = vector.load %arg10[%c4_120, %c0_121, %c0_122] : memref<9x9x64xbf16, #tpu.memory_space<vmem>>, vector<1x9x64xbf16>
    %138 = vector.shape_cast %137 : vector<1x9x64xbf16> to vector<9x64xbf16>
    %cst_123 = arith.constant dense<0.000000e+00> : vector<9x32xf32>
    %139 = tpu.matmul %138, %103, %cst_123 {dimension_numbers = #tpu.dot_dimension_numbers<[1], [0], [0], [1], [0, 0, 1, 1], [], []>} : vector<9x64xbf16>, vector<64x32xbf16>, vector<9x32xf32> -> vector<9x32xf32>
    %140 = arith.truncf %139 : vector<9x32xf32> to vector<9x32xbf16>
    %c4_124 = arith.constant 4 : index
    %c0_125 = arith.constant 0 : index
    %c0_126 = arith.constant 0 : index
    %141 = vector.load %arg11[%c4_124, %c0_125, %c0_126] : memref<9x32x64xbf16, #tpu.memory_space<vmem>>, vector<1x32x64xbf16>
    %142 = vector.shape_cast %141 : vector<1x32x64xbf16> to vector<32x64xbf16>
    %cst_127 = arith.constant dense<0.000000e+00> : vector<9x64xf32>
    %143 = tpu.matmul %140, %142, %cst_127 {dimension_numbers = #tpu.dot_dimension_numbers<[1], [0], [0], [1], [0, 0, 1, 1], [], []>} : vector<9x32xbf16>, vector<32x64xbf16>, vector<9x64xf32> -> vector<9x64xf32>
    %144 = arith.addf %136, %143 : vector<9x64xf32>
    %c5_128 = arith.constant 5 : index
    %c0_129 = arith.constant 0 : index
    %c0_130 = arith.constant 0 : index
    %145 = vector.load %arg10[%c5_128, %c0_129, %c0_130] : memref<9x9x64xbf16, #tpu.memory_space<vmem>>, vector<1x9x64xbf16>
    %146 = vector.shape_cast %145 : vector<1x9x64xbf16> to vector<9x64xbf16>
    %cst_131 = arith.constant dense<0.000000e+00> : vector<9x32xf32>
    %147 = tpu.matmul %146, %103, %cst_131 {dimension_numbers = #tpu.dot_dimension_numbers<[1], [0], [0], [1], [0, 0, 1, 1], [], []>} : vector<9x64xbf16>, vector<64x32xbf16>, vector<9x32xf32> -> vector<9x32xf32>
    %148 = arith.truncf %147 : vector<9x32xf32> to vector<9x32xbf16>
    %c5_132 = arith.constant 5 : index
    %c0_133 = arith.constant 0 : index
    %c0_134 = arith.constant 0 : index
    %149 = vector.load %arg11[%c5_132, %c0_133, %c0_134] : memref<9x32x64xbf16, #tpu.memory_space<vmem>>, vector<1x32x64xbf16>
    %150 = vector.shape_cast %149 : vector<1x32x64xbf16> to vector<32x64xbf16>
    %cst_135 = arith.constant dense<0.000000e+00> : vector<9x64xf32>
    %151 = tpu.matmul %148, %150, %cst_135 {dimension_numbers = #tpu.dot_dimension_numbers<[1], [0], [0], [1], [0, 0, 1, 1], [], []>} : vector<9x32xbf16>, vector<32x64xbf16>, vector<9x64xf32> -> vector<9x64xf32>
    %152 = arith.addf %144, %151 : vector<9x64xf32>
    %c6_136 = arith.constant 6 : index
    %c0_137 = arith.constant 0 : index
    %c0_138 = arith.constant 0 : index
    %153 = vector.load %arg10[%c6_136, %c0_137, %c0_138] : memref<9x9x64xbf16, #tpu.memory_space<vmem>>, vector<1x9x64xbf16>
    %154 = vector.shape_cast %153 : vector<1x9x64xbf16> to vector<9x64xbf16>
    %cst_139 = arith.constant dense<0.000000e+00> : vector<9x32xf32>
    %155 = tpu.matmul %154, %103, %cst_139 {dimension_numbers = #tpu.dot_dimension_numbers<[1], [0], [0], [1], [0, 0, 1, 1], [], []>} : vector<9x64xbf16>, vector<64x32xbf16>, vector<9x32xf32> -> vector<9x32xf32>
    %156 = arith.truncf %155 : vector<9x32xf32> to vector<9x32xbf16>
    %c6_140 = arith.constant 6 : index
    %c0_141 = arith.constant 0 : index
    %c0_142 = arith.constant 0 : index
    %157 = vector.load %arg11[%c6_140, %c0_141, %c0_142] : memref<9x32x64xbf16, #tpu.memory_space<vmem>>, vector<1x32x64xbf16>
    %158 = vector.shape_cast %157 : vector<1x32x64xbf16> to vector<32x64xbf16>
    %cst_143 = arith.constant dense<0.000000e+00> : vector<9x64xf32>
    %159 = tpu.matmul %156, %158, %cst_143 {dimension_numbers = #tpu.dot_dimension_numbers<[1], [0], [0], [1], [0, 0, 1, 1], [], []>} : vector<9x32xbf16>, vector<32x64xbf16>, vector<9x64xf32> -> vector<9x64xf32>
    %160 = arith.addf %152, %159 : vector<9x64xf32>
    %c7_144 = arith.constant 7 : index
    %c0_145 = arith.constant 0 : index
    %c0_146 = arith.constant 0 : index
    %161 = vector.load %arg10[%c7_144, %c0_145, %c0_146] : memref<9x9x64xbf16, #tpu.memory_space<vmem>>, vector<1x9x64xbf16>
    %162 = vector.shape_cast %161 : vector<1x9x64xbf16> to vector<9x64xbf16>
    %cst_147 = arith.constant dense<0.000000e+00> : vector<9x32xf32>
    %163 = tpu.matmul %162, %103, %cst_147 {dimension_numbers = #tpu.dot_dimension_numbers<[1], [0], [0], [1], [0, 0, 1, 1], [], []>} : vector<9x64xbf16>, vector<64x32xbf16>, vector<9x32xf32> -> vector<9x32xf32>
    %164 = arith.truncf %163 : vector<9x32xf32> to vector<9x32xbf16>
    %c7_148 = arith.constant 7 : index
    %c0_149 = arith.constant 0 : index
    %c0_150 = arith.constant 0 : index
    %165 = vector.load %arg11[%c7_148, %c0_149, %c0_150] : memref<9x32x64xbf16, #tpu.memory_space<vmem>>, vector<1x32x64xbf16>
    %166 = vector.shape_cast %165 : vector<1x32x64xbf16> to vector<32x64xbf16>
    %cst_151 = arith.constant dense<0.000000e+00> : vector<9x64xf32>
    %167 = tpu.matmul %164, %166, %cst_151 {dimension_numbers = #tpu.dot_dimension_numbers<[1], [0], [0], [1], [0, 0, 1, 1], [], []>} : vector<9x32xbf16>, vector<32x64xbf16>, vector<9x64xf32> -> vector<9x64xf32>
    %168 = arith.addf %160, %167 : vector<9x64xf32>
    %c8_152 = arith.constant 8 : index
    %c0_153 = arith.constant 0 : index
    %c0_154 = arith.constant 0 : index
    %169 = vector.load %arg10[%c8_152, %c0_153, %c0_154] : memref<9x9x64xbf16, #tpu.memory_space<vmem>>, vector<1x9x64xbf16>
    %170 = vector.shape_cast %169 : vector<1x9x64xbf16> to vector<9x64xbf16>
    %cst_155 = arith.constant dense<0.000000e+00> : vector<9x32xf32>
    %171 = tpu.matmul %170, %103, %cst_155 {dimension_numbers = #tpu.dot_dimension_numbers<[1], [0], [0], [1], [0, 0, 1, 1], [], []>} : vector<9x64xbf16>, vector<64x32xbf16>, vector<9x32xf32> -> vector<9x32xf32>
    %172 = arith.truncf %171 : vector<9x32xf32> to vector<9x32xbf16>
    %c8_156 = arith.constant 8 : index
    %c0_157 = arith.constant 0 : index
    %c0_158 = arith.constant 0 : index
    %173 = vector.load %arg11[%c8_156, %c0_157, %c0_158] : memref<9x32x64xbf16, #tpu.memory_space<vmem>>, vector<1x32x64xbf16>
    %174 = vector.shape_cast %173 : vector<1x32x64xbf16> to vector<32x64xbf16>
    %cst_159 = arith.constant dense<0.000000e+00> : vector<9x64xf32>
    %175 = tpu.matmul %172, %174, %cst_159 {dimension_numbers = #tpu.dot_dimension_numbers<[1], [0], [0], [1], [0, 0, 1, 1], [], []>} : vector<9x32xbf16>, vector<32x64xbf16>, vector<9x64xf32> -> vector<9x64xf32>
    %176 = arith.addf %168, %175 : vector<9x64xf32>
    %c0_160 = arith.constant 0 : index
    %c0_161 = arith.constant 0 : index
    %177 = vector.load %arg12[%c0_160, %c0_161] : memref<1x64xf32, #tpu.memory_space<vmem>>, vector<1x64xf32>
    %178 = vector.broadcast %177 : vector<1x64xf32> to vector<9x64xf32>
    %179 = arith.addf %176, %178 : vector<9x64xf32>
    %cst_162 = arith.constant 0.000000e+00 : f32
    %180 = vector.broadcast %cst_162 : f32 to vector<9x64xf32>
    %181 = arith.maximumf %179, %180 : vector<9x64xf32>
    %182 = arith.truncf %181 : vector<9x64xf32> to vector<9x64xbf16>
    %cst_163 = arith.constant 0.000000e+00 : f32
    %183 = vector.broadcast %cst_163 : f32 to vector<1x128xf32>
    %c0_164 = arith.constant 0 : index
    %c0_165 = arith.constant 0 : index
    %c0_166 = arith.constant 0 : index
    %184 = vector.load %arg13[%c0_164, %c0_165, %c0_166] : memref<9x1x9xbf16, #tpu.memory_space<vmem>>, vector<1x1x9xbf16>
    %185 = vector.shape_cast %184 : vector<1x1x9xbf16> to vector<1x9xbf16>
    %cst_167 = arith.constant dense<0.000000e+00> : vector<1x64xf32>
    %186 = tpu.matmul %185, %182, %cst_167 {dimension_numbers = #tpu.dot_dimension_numbers<[1], [0], [0], [1], [0, 0, 1, 1], [], []>} : vector<1x9xbf16>, vector<9x64xbf16>, vector<1x64xf32> -> vector<1x64xf32>
    %187 = arith.truncf %186 : vector<1x64xf32> to vector<1x64xbf16>
    %c0_168 = arith.constant 0 : index
    %c0_169 = arith.constant 0 : index
    %c0_170 = arith.constant 0 : index
    %188 = vector.load %arg14[%c0_168, %c0_169, %c0_170] : memref<9x64x128xbf16, #tpu.memory_space<vmem>>, vector<1x64x128xbf16>
    %189 = vector.shape_cast %188 : vector<1x64x128xbf16> to vector<64x128xbf16>
    %cst_171 = arith.constant dense<0.000000e+00> : vector<1x128xf32>
    %190 = tpu.matmul %187, %189, %cst_171 {dimension_numbers = #tpu.dot_dimension_numbers<[1], [0], [0], [1], [0, 0, 1, 1], [], []>} : vector<1x64xbf16>, vector<64x128xbf16>, vector<1x128xf32> -> vector<1x128xf32>
    %191 = arith.addf %183, %190 : vector<1x128xf32>
    %c1_172 = arith.constant 1 : index
    %c0_173 = arith.constant 0 : index
    %c0_174 = arith.constant 0 : index
    %192 = vector.load %arg13[%c1_172, %c0_173, %c0_174] : memref<9x1x9xbf16, #tpu.memory_space<vmem>>, vector<1x1x9xbf16>
    %193 = vector.shape_cast %192 : vector<1x1x9xbf16> to vector<1x9xbf16>
    %cst_175 = arith.constant dense<0.000000e+00> : vector<1x64xf32>
    %194 = tpu.matmul %193, %182, %cst_175 {dimension_numbers = #tpu.dot_dimension_numbers<[1], [0], [0], [1], [0, 0, 1, 1], [], []>} : vector<1x9xbf16>, vector<9x64xbf16>, vector<1x64xf32> -> vector<1x64xf32>
    %195 = arith.truncf %194 : vector<1x64xf32> to vector<1x64xbf16>
    %c1_176 = arith.constant 1 : index
    %c0_177 = arith.constant 0 : index
    %c0_178 = arith.constant 0 : index
    %196 = vector.load %arg14[%c1_176, %c0_177, %c0_178] : memref<9x64x128xbf16, #tpu.memory_space<vmem>>, vector<1x64x128xbf16>
    %197 = vector.shape_cast %196 : vector<1x64x128xbf16> to vector<64x128xbf16>
    %cst_179 = arith.constant dense<0.000000e+00> : vector<1x128xf32>
    %198 = tpu.matmul %195, %197, %cst_179 {dimension_numbers = #tpu.dot_dimension_numbers<[1], [0], [0], [1], [0, 0, 1, 1], [], []>} : vector<1x64xbf16>, vector<64x128xbf16>, vector<1x128xf32> -> vector<1x128xf32>
    %199 = arith.addf %191, %198 : vector<1x128xf32>
    %c2_180 = arith.constant 2 : index
    %c0_181 = arith.constant 0 : index
    %c0_182 = arith.constant 0 : index
    %200 = vector.load %arg13[%c2_180, %c0_181, %c0_182] : memref<9x1x9xbf16, #tpu.memory_space<vmem>>, vector<1x1x9xbf16>
    %201 = vector.shape_cast %200 : vector<1x1x9xbf16> to vector<1x9xbf16>
    %cst_183 = arith.constant dense<0.000000e+00> : vector<1x64xf32>
    %202 = tpu.matmul %201, %182, %cst_183 {dimension_numbers = #tpu.dot_dimension_numbers<[1], [0], [0], [1], [0, 0, 1, 1], [], []>} : vector<1x9xbf16>, vector<9x64xbf16>, vector<1x64xf32> -> vector<1x64xf32>
    %203 = arith.truncf %202 : vector<1x64xf32> to vector<1x64xbf16>
    %c2_184 = arith.constant 2 : index
    %c0_185 = arith.constant 0 : index
    %c0_186 = arith.constant 0 : index
    %204 = vector.load %arg14[%c2_184, %c0_185, %c0_186] : memref<9x64x128xbf16, #tpu.memory_space<vmem>>, vector<1x64x128xbf16>
    %205 = vector.shape_cast %204 : vector<1x64x128xbf16> to vector<64x128xbf16>
    %cst_187 = arith.constant dense<0.000000e+00> : vector<1x128xf32>
    %206 = tpu.matmul %203, %205, %cst_187 {dimension_numbers = #tpu.dot_dimension_numbers<[1], [0], [0], [1], [0, 0, 1, 1], [], []>} : vector<1x64xbf16>, vector<64x128xbf16>, vector<1x128xf32> -> vector<1x128xf32>
    %207 = arith.addf %199, %206 : vector<1x128xf32>
    %c3_188 = arith.constant 3 : index
    %c0_189 = arith.constant 0 : index
    %c0_190 = arith.constant 0 : index
    %208 = vector.load %arg13[%c3_188, %c0_189, %c0_190] : memref<9x1x9xbf16, #tpu.memory_space<vmem>>, vector<1x1x9xbf16>
    %209 = vector.shape_cast %208 : vector<1x1x9xbf16> to vector<1x9xbf16>
    %cst_191 = arith.constant dense<0.000000e+00> : vector<1x64xf32>
    %210 = tpu.matmul %209, %182, %cst_191 {dimension_numbers = #tpu.dot_dimension_numbers<[1], [0], [0], [1], [0, 0, 1, 1], [], []>} : vector<1x9xbf16>, vector<9x64xbf16>, vector<1x64xf32> -> vector<1x64xf32>
    %211 = arith.truncf %210 : vector<1x64xf32> to vector<1x64xbf16>
    %c3_192 = arith.constant 3 : index
    %c0_193 = arith.constant 0 : index
    %c0_194 = arith.constant 0 : index
    %212 = vector.load %arg14[%c3_192, %c0_193, %c0_194] : memref<9x64x128xbf16, #tpu.memory_space<vmem>>, vector<1x64x128xbf16>
    %213 = vector.shape_cast %212 : vector<1x64x128xbf16> to vector<64x128xbf16>
    %cst_195 = arith.constant dense<0.000000e+00> : vector<1x128xf32>
    %214 = tpu.matmul %211, %213, %cst_195 {dimension_numbers = #tpu.dot_dimension_numbers<[1], [0], [0], [1], [0, 0, 1, 1], [], []>} : vector<1x64xbf16>, vector<64x128xbf16>, vector<1x128xf32> -> vector<1x128xf32>
    %215 = arith.addf %207, %214 : vector<1x128xf32>
    %c4_196 = arith.constant 4 : index
    %c0_197 = arith.constant 0 : index
    %c0_198 = arith.constant 0 : index
    %216 = vector.load %arg13[%c4_196, %c0_197, %c0_198] : memref<9x1x9xbf16, #tpu.memory_space<vmem>>, vector<1x1x9xbf16>
    %217 = vector.shape_cast %216 : vector<1x1x9xbf16> to vector<1x9xbf16>
    %cst_199 = arith.constant dense<0.000000e+00> : vector<1x64xf32>
    %218 = tpu.matmul %217, %182, %cst_199 {dimension_numbers = #tpu.dot_dimension_numbers<[1], [0], [0], [1], [0, 0, 1, 1], [], []>} : vector<1x9xbf16>, vector<9x64xbf16>, vector<1x64xf32> -> vector<1x64xf32>
    %219 = arith.truncf %218 : vector<1x64xf32> to vector<1x64xbf16>
    %c4_200 = arith.constant 4 : index
    %c0_201 = arith.constant 0 : index
    %c0_202 = arith.constant 0 : index
    %220 = vector.load %arg14[%c4_200, %c0_201, %c0_202] : memref<9x64x128xbf16, #tpu.memory_space<vmem>>, vector<1x64x128xbf16>
    %221 = vector.shape_cast %220 : vector<1x64x128xbf16> to vector<64x128xbf16>
    %cst_203 = arith.constant dense<0.000000e+00> : vector<1x128xf32>
    %222 = tpu.matmul %219, %221, %cst_203 {dimension_numbers = #tpu.dot_dimension_numbers<[1], [0], [0], [1], [0, 0, 1, 1], [], []>} : vector<1x64xbf16>, vector<64x128xbf16>, vector<1x128xf32> -> vector<1x128xf32>
    %223 = arith.addf %215, %222 : vector<1x128xf32>
    %c5_204 = arith.constant 5 : index
    %c0_205 = arith.constant 0 : index
    %c0_206 = arith.constant 0 : index
    %224 = vector.load %arg13[%c5_204, %c0_205, %c0_206] : memref<9x1x9xbf16, #tpu.memory_space<vmem>>, vector<1x1x9xbf16>
    %225 = vector.shape_cast %224 : vector<1x1x9xbf16> to vector<1x9xbf16>
    %cst_207 = arith.constant dense<0.000000e+00> : vector<1x64xf32>
    %226 = tpu.matmul %225, %182, %cst_207 {dimension_numbers = #tpu.dot_dimension_numbers<[1], [0], [0], [1], [0, 0, 1, 1], [], []>} : vector<1x9xbf16>, vector<9x64xbf16>, vector<1x64xf32> -> vector<1x64xf32>
    %227 = arith.truncf %226 : vector<1x64xf32> to vector<1x64xbf16>
    %c5_208 = arith.constant 5 : index
    %c0_209 = arith.constant 0 : index
    %c0_210 = arith.constant 0 : index
    %228 = vector.load %arg14[%c5_208, %c0_209, %c0_210] : memref<9x64x128xbf16, #tpu.memory_space<vmem>>, vector<1x64x128xbf16>
    %229 = vector.shape_cast %228 : vector<1x64x128xbf16> to vector<64x128xbf16>
    %cst_211 = arith.constant dense<0.000000e+00> : vector<1x128xf32>
    %230 = tpu.matmul %227, %229, %cst_211 {dimension_numbers = #tpu.dot_dimension_numbers<[1], [0], [0], [1], [0, 0, 1, 1], [], []>} : vector<1x64xbf16>, vector<64x128xbf16>, vector<1x128xf32> -> vector<1x128xf32>
    %231 = arith.addf %223, %230 : vector<1x128xf32>
    %c6_212 = arith.constant 6 : index
    %c0_213 = arith.constant 0 : index
    %c0_214 = arith.constant 0 : index
    %232 = vector.load %arg13[%c6_212, %c0_213, %c0_214] : memref<9x1x9xbf16, #tpu.memory_space<vmem>>, vector<1x1x9xbf16>
    %233 = vector.shape_cast %232 : vector<1x1x9xbf16> to vector<1x9xbf16>
    %cst_215 = arith.constant dense<0.000000e+00> : vector<1x64xf32>
    %234 = tpu.matmul %233, %182, %cst_215 {dimension_numbers = #tpu.dot_dimension_numbers<[1], [0], [0], [1], [0, 0, 1, 1], [], []>} : vector<1x9xbf16>, vector<9x64xbf16>, vector<1x64xf32> -> vector<1x64xf32>
    %235 = arith.truncf %234 : vector<1x64xf32> to vector<1x64xbf16>
    %c6_216 = arith.constant 6 : index
    %c0_217 = arith.constant 0 : index
    %c0_218 = arith.constant 0 : index
    %236 = vector.load %arg14[%c6_216, %c0_217, %c0_218] : memref<9x64x128xbf16, #tpu.memory_space<vmem>>, vector<1x64x128xbf16>
    %237 = vector.shape_cast %236 : vector<1x64x128xbf16> to vector<64x128xbf16>
    %cst_219 = arith.constant dense<0.000000e+00> : vector<1x128xf32>
    %238 = tpu.matmul %235, %237, %cst_219 {dimension_numbers = #tpu.dot_dimension_numbers<[1], [0], [0], [1], [0, 0, 1, 1], [], []>} : vector<1x64xbf16>, vector<64x128xbf16>, vector<1x128xf32> -> vector<1x128xf32>
    %239 = arith.addf %231, %238 : vector<1x128xf32>
    %c7_220 = arith.constant 7 : index
    %c0_221 = arith.constant 0 : index
    %c0_222 = arith.constant 0 : index
    %240 = vector.load %arg13[%c7_220, %c0_221, %c0_222] : memref<9x1x9xbf16, #tpu.memory_space<vmem>>, vector<1x1x9xbf16>
    %241 = vector.shape_cast %240 : vector<1x1x9xbf16> to vector<1x9xbf16>
    %cst_223 = arith.constant dense<0.000000e+00> : vector<1x64xf32>
    %242 = tpu.matmul %241, %182, %cst_223 {dimension_numbers = #tpu.dot_dimension_numbers<[1], [0], [0], [1], [0, 0, 1, 1], [], []>} : vector<1x9xbf16>, vector<9x64xbf16>, vector<1x64xf32> -> vector<1x64xf32>
    %243 = arith.truncf %242 : vector<1x64xf32> to vector<1x64xbf16>
    %c7_224 = arith.constant 7 : index
    %c0_225 = arith.constant 0 : index
    %c0_226 = arith.constant 0 : index
    %244 = vector.load %arg14[%c7_224, %c0_225, %c0_226] : memref<9x64x128xbf16, #tpu.memory_space<vmem>>, vector<1x64x128xbf16>
    %245 = vector.shape_cast %244 : vector<1x64x128xbf16> to vector<64x128xbf16>
    %cst_227 = arith.constant dense<0.000000e+00> : vector<1x128xf32>
    %246 = tpu.matmul %243, %245, %cst_227 {dimension_numbers = #tpu.dot_dimension_numbers<[1], [0], [0], [1], [0, 0, 1, 1], [], []>} : vector<1x64xbf16>, vector<64x128xbf16>, vector<1x128xf32> -> vector<1x128xf32>
    %247 = arith.addf %239, %246 : vector<1x128xf32>
    %c8_228 = arith.constant 8 : index
    %c0_229 = arith.constant 0 : index
    %c0_230 = arith.constant 0 : index
    %248 = vector.load %arg13[%c8_228, %c0_229, %c0_230] : memref<9x1x9xbf16, #tpu.memory_space<vmem>>, vector<1x1x9xbf16>
    %249 = vector.shape_cast %248 : vector<1x1x9xbf16> to vector<1x9xbf16>
    %cst_231 = arith.constant dense<0.000000e+00> : vector<1x64xf32>
    %250 = tpu.matmul %249, %182, %cst_231 {dimension_numbers = #tpu.dot_dimension_numbers<[1], [0], [0], [1], [0, 0, 1, 1], [], []>} : vector<1x9xbf16>, vector<9x64xbf16>, vector<1x64xf32> -> vector<1x64xf32>
    %251 = arith.truncf %250 : vector<1x64xf32> to vector<1x64xbf16>
    %c8_232 = arith.constant 8 : index
    %c0_233 = arith.constant 0 : index
    %c0_234 = arith.constant 0 : index
    %252 = vector.load %arg14[%c8_232, %c0_233, %c0_234] : memref<9x64x128xbf16, #tpu.memory_space<vmem>>, vector<1x64x128xbf16>
    %253 = vector.shape_cast %252 : vector<1x64x128xbf16> to vector<64x128xbf16>
    %cst_235 = arith.constant dense<0.000000e+00> : vector<1x128xf32>
    %254 = tpu.matmul %251, %253, %cst_235 {dimension_numbers = #tpu.dot_dimension_numbers<[1], [0], [0], [1], [0, 0, 1, 1], [], []>} : vector<1x64xbf16>, vector<64x128xbf16>, vector<1x128xf32> -> vector<1x128xf32>
    %255 = arith.addf %247, %254 : vector<1x128xf32>
    %c0_236 = arith.constant 0 : index
    %c0_237 = arith.constant 0 : index
    %256 = vector.load %arg15[%c0_236, %c0_237] : memref<1x128xf32, #tpu.memory_space<vmem>>, vector<1x128xf32>
    %257 = arith.addf %255, %256 : vector<1x128xf32>
    %cst_238 = arith.constant 0.000000e+00 : f32
    %258 = vector.broadcast %cst_238 : f32 to vector<1x128xf32>
    %259 = arith.maximumf %257, %258 : vector<1x128xf32>
    %260 = arith.truncf %259 : vector<1x128xf32> to vector<1x128xbf16>
    %c0_239 = arith.constant 0 : index
    %c0_240 = arith.constant 0 : index
    %261 = vector.load %arg16[%c0_239, %c0_240] : memref<128x10xbf16, #tpu.memory_space<vmem>>, vector<128x10xbf16>
    %cst_241 = arith.constant dense<0.000000e+00> : vector<1x10xf32>
    %262 = tpu.matmul %260, %261, %cst_241 {dimension_numbers = #tpu.dot_dimension_numbers<[1], [0], [0], [1], [0, 0, 1, 1], [], []>} : vector<1x128xbf16>, vector<128x10xbf16>, vector<1x10xf32> -> vector<1x10xf32>
    %c0_242 = arith.constant 0 : index
    %c0_243 = arith.constant 0 : index
    %263 = vector.load %arg17[%c0_242, %c0_243] : memref<1x10xf32, #tpu.memory_space<vmem>>, vector<1x10xf32>
    %264 = arith.addf %262, %263 : vector<1x10xf32>
    %cst_244 = arith.constant 0.000000e+00 : f32
    %265 = vector.broadcast %cst_244 : f32 to vector<1x10xf32>
    %266 = arith.maximumf %264, %265 : vector<1x10xf32>
    %c0_245 = arith.constant 0 : index
    %c0_246 = arith.constant 0 : index
    %c0_247 = arith.constant 0 : index
    %267 = vector.load %arg18[%c0_245, %c0_246, %c0_247] : memref<1x1x10xf32, #tpu.memory_space<vmem>>, vector<1x1x10xf32>
    %268 = vector.shape_cast %267 : vector<1x1x10xf32> to vector<1x10xf32>
    %269 = vector.shape_cast %266 : vector<1x10xf32> to vector<1x1x10xf32>
    tpu.vector_store %arg18[%c0_245, %c0_246, %c0_247], %269 {strides = array<i32>} : memref<1x1x10xf32, #tpu.memory_space<vmem>>, vector<1x1x10xf32>,
    return
  }
  func.func @transform_0(%arg0: i32) -> (i32, i32, i32) {
    %c0_i32 = arith.constant 0 : i32
    %c0_i32_0 = arith.constant 0 : i32
    %c0_i32_1 = arith.constant 0 : i32
    return %arg0, %c0_i32, %c0_i32_0 : i32, i32, i32
  }
  func.func @transform_1(%arg0: i32) -> (i32, i32) {
    %c0_i32 = arith.constant 0 : i32
    %c0_i32_0 = arith.constant 0 : i32
    %c0_i32_1 = arith.constant 0 : i32
    return %c0_i32, %c0_i32_0 : i32, i32
  }
  func.func @transform_2(%arg0: i32) -> (i32, i32) {
    %c0_i32 = arith.constant 0 : i32
    %c0_i32_0 = arith.constant 0 : i32
    %c0_i32_1 = arith.constant 0 : i32
    return %c0_i32, %c0_i32_0 : i32, i32
  }
  func.func @transform_3(%arg0: i32) -> (i32, i32, i32) {
    %c0_i32 = arith.constant 0 : i32
    %c0_i32_0 = arith.constant 0 : i32
    %c0_i32_1 = arith.constant 0 : i32
    %c0_i32_2 = arith.constant 0 : i32
    return %c0_i32, %c0_i32_0, %c0_i32_1 : i32, i32, i32
  }
  func.func @transform_4(%arg0: i32) -> (i32, i32, i32) {
    %c0_i32 = arith.constant 0 : i32
    %c0_i32_0 = arith.constant 0 : i32
    %c0_i32_1 = arith.constant 0 : i32
    %c0_i32_2 = arith.constant 0 : i32
    return %c0_i32, %c0_i32_0, %c0_i32_1 : i32, i32, i32
  }
  func.func @transform_5(%arg0: i32) -> (i32, i32) {
    %c0_i32 = arith.constant 0 : i32
    %c0_i32_0 = arith.constant 0 : i32
    %c0_i32_1 = arith.constant 0 : i32
    return %c0_i32, %c0_i32_0 : i32, i32
  }
  func.func @transform_6(%arg0: i32) -> (i32, i32, i32) {
    %c0_i32 = arith.constant 0 : i32
    %c0_i32_0 = arith.constant 0 : i32
    %c0_i32_1 = arith.constant 0 : i32
    %c0_i32_2 = arith.constant 0 : i32
    return %c0_i32, %c0_i32_0, %c0_i32_1 : i32, i32, i32
  }
  func.func @transform_7(%arg0: i32) -> (i32, i32, i32) {
    %c0_i32 = arith.constant 0 : i32
    %c0_i32_0 = arith.constant 0 : i32
    %c0_i32_1 = arith.constant 0 : i32
    %c0_i32_2 = arith.constant 0 : i32
    return %c0_i32, %c0_i32_0, %c0_i32_1 : i32, i32, i32
  }
  func.func @transform_8(%arg0: i32) -> (i32, i32) {
    %c0_i32 = arith.constant 0 : i32
    %c0_i32_0 = arith.constant 0 : i32
    %c0_i32_1 = arith.constant 0 : i32
    return %c0_i32, %c0_i32_0 : i32, i32
  }
  func.func @transform_9(%arg0: i32) -> (i32, i32, i32) {
    %c0_i32 = arith.constant 0 : i32
    %c0_i32_0 = arith.constant 0 : i32
    %c0_i32_1 = arith.constant 0 : i32
    %c0_i32_2 = arith.constant 0 : i32
    return %c0_i32, %c0_i32_0, %c0_i32_1 : i32, i32, i32
  }
  func.func @transform_10(%arg0: i32) -> (i32, i32, i32) {
    %c0_i32 = arith.constant 0 : i32
    %c0_i32_0 = arith.constant 0 : i32
    %c0_i32_1 = arith.constant 0 : i32
    %c0_i32_2 = arith.constant 0 : i32
    return %c0_i32, %c0_i32_0, %c0_i32_1 : i32, i32, i32
  }
  func.func @transform_11(%arg0: i32) -> (i32, i32) {
    %c0_i32 = arith.constant 0 : i32
    %c0_i32_0 = arith.constant 0 : i32
    %c0_i32_1 = arith.constant 0 : i32
    return %c0_i32, %c0_i32_0 : i32, i32
  }
  func.func @transform_12(%arg0: i32) -> (i32, i32, i32) {
    %c0_i32 = arith.constant 0 : i32
    %c0_i32_0 = arith.constant 0 : i32
    %c0_i32_1 = arith.constant 0 : i32
    %c0_i32_2 = arith.constant 0 : i32
    return %c0_i32, %c0_i32_0, %c0_i32_1 : i32, i32, i32
  }
  func.func @transform_13(%arg0: i32) -> (i32, i32, i32) {
    %c0_i32 = arith.constant 0 : i32
    %c0_i32_0 = arith.constant 0 : i32
    %c0_i32_1 = arith.constant 0 : i32
    %c0_i32_2 = arith.constant 0 : i32
    return %c0_i32, %c0_i32_0, %c0_i32_1 : i32, i32, i32
  }
  func.func @transform_14(%arg0: i32) -> (i32, i32) {
    %c0_i32 = arith.constant 0 : i32
    %c0_i32_0 = arith.constant 0 : i32
    %c0_i32_1 = arith.constant 0 : i32
    return %c0_i32, %c0_i32_0 : i32, i32
  }
  func.func @transform_15(%arg0: i32) -> (i32, i32) {
    %c0_i32 = arith.constant 0 : i32
    %c0_i32_0 = arith.constant 0 : i32
    %c0_i32_1 = arith.constant 0 : i32
    return %c0_i32, %c0_i32_0 : i32, i32
  }
  func.func @transform_16(%arg0: i32) -> (i32, i32) {
    %c0_i32 = arith.constant 0 : i32
    %c0_i32_0 = arith.constant 0 : i32
    %c0_i32_1 = arith.constant 0 : i32
    return %c0_i32, %c0_i32_0 : i32, i32
  }
  func.func @transform_17(%arg0: i32) -> (i32, i32, i32) {
    %c0_i32 = arith.constant 0 : i32
    %c0_i32_0 = arith.constant 0 : i32
    %c0_i32_1 = arith.constant 0 : i32
    return %arg0, %c0_i32, %c0_i32_0 : i32, i32, i32
  }
}

</mosaic_0001>

<bundles_post_ra>
// kernel: net1_forward.1
= control target key start
LH: loop header
LB: loop body
LE: loop exit
PB: predicated region body
PF: predicated region fallthrough
CT: control target
= control target key end

     0   :  { %s7439_s0 = inlined_call_operand.vmem [shape: bf16[2,196,9], index: 0, kind: input, shape index: {}]   ;;  %s7440_s1 = inlined_call_operand.vmem [shape: bf16[9,16], index: 1, kind: input, shape index: {}]   ;;  %s7441_s2 = inlined_call_operand.vmem [shape: f32[1,16], index: 2, kind: input, shape index: {}]   ;;  %s7442_s3 = inlined_call_operand.vmem [shape: bf16[1,256,196], index: 3, kind: input, shape index: {}]   ;;  %s7443_s4 = inlined_call_operand.vmem [shape: bf16[1,16,16], index: 4, kind: input, shape index: {}]   ;;  %s7444_s5 = inlined_call_operand.vmem [shape: f32[1,16], index: 5, kind: input, shape index: {}]   ;;  %s7445_s6 = inlined_call_operand.vmem [shape: bf16[9,64,256], index: 6, kind: input, shape index: {}]   ;;  %s7446_s7 = inlined_call_operand.vmem [shape: bf16[9,16,32], index: 7, kind: input, shape index: {}]   ;;  %s7447_s8 = inlined_call_operand.vmem [shape: f32[1,32], index: 8, kind: input, shape index: {}]   ;;  %s7448_s9 = inlined_call_operand.vmem [shape: bf16[9,9,64], index: 9, kind: input, shape index: {}]   ;;  %s7449_s10 = inlined_call_operand.vmem [shape: bf16[9,32,64], index: 10, kind: input, shape index: {}]   ;;  %s7450_s11 = inlined_call_operand.vmem [shape: f32[1,64], index: 11, kind: input, shape index: {}]   ;;  %s7451_s12 = inlined_call_operand.vmem [shape: bf16[9,1,9], index: 12, kind: input, shape index: {}]   ;;  %s7452_s13 = inlined_call_operand.vmem [shape: bf16[9,64,128], index: 13, kind: input, shape index: {}]   ;;  %s7453_s14 = inlined_call_operand.vmem [shape: f32[1,128], index: 14, kind: input, shape index: {}]   ;;  %s7454_s15 = inlined_call_operand.vmem [shape: bf16[128,10], index: 15, kind: input, shape index: {}]   ;;  %s7455_s16 = inlined_call_operand.vmem [shape: f32[1,10], index: 16, kind: input, shape index: {}]   ;;  %s7456_s17 = inlined_call_operand.hbm [shape: f32[2,1,10], index: 17, kind: output, shape index: {}]  }
   0x1   :  { %7462 = sst [smem:[#allocation8_spill]] %s7439_s0 }
   0x2   :  { %7463 = sst [smem:[#allocation9_spill]] %s7440_s1 }
   0x3   :  { %7464 = sst [smem:[#allocation10_spill]] %s7441_s2 }
   0x4   :  { %7465 = sst [smem:[#allocation11_spill]] %s7442_s3 }
   0x5   :  { %22 = vsyncpa [#allocation3], 0 }
   0x6   :  { %24 = vsyncpa [#allocation3 + $0x1], 0  ;;  %s5810_s24 = smov 0   ;;  %s5812_s25 = smov 0  }
   0x7   :  { %s5814_s26 = smov 0   ;;  %s5816_s27 = smov 0  }
   0x8 LB: > { %7466 = sst [smem:[#allocation5_spill]] %s5713_s26  ;;  %s5831_s28 = sadd.s32 4294967295, %s5717_s27   ;;  %s5717_s27 = sphi %s5816_s27, %s7475_s27   ;;  %s5713_s26 = sphi %s5814_s26, %s7477_s26   ;;  %s5709_s25 = sphi %s5812_s25, %s7479_s25   ;;  %s5705_s24 = sphi %s5810_s24, %s7478_s24  }
   0x9   : > { %s4288_s29 = sadd.s32 4294967294, %s5717_s27   ;;  %s5835_s0 = sadd.s32 1, %s5717_s27  }
   0xa   : > { %7467 = sst [smem:[#allocation6_spill]] %s5835_s0  ;;  %s399_s30 = sadd.s32 1, %s5713_s26 }
   0xb   : > { %s396_s18 = ssub.s32 %s5717_s27, %s5835_s0  ;;  %p409_p0 = scmp.ne.s32.totalorder %s5713_s26, %s5709_s25 }
   0xc   : > { %p397_p1 = scmp.eq.s32.totalorder %s396_s18, 0  ;;  %p410_p2 = scmp.eq.s32.totalorder %s5831_s28, 1 }
   0xd   : > { %p415_p3 = scmp.ne.s32.totalorder %s5709_s25, %s5705_s24  ;;  %p416_p4 = scmp.eq.s32.totalorder %s4288_s29, 1 }
   0xe   : > { %s5846_s19 = scalar_select %p397_p1, %s5713_s26, %s399_s30  }
   0xf   : > { %p5848_p5 = por %p410_p2, %p409_p0  ;;  %p5852_p6 = por %p416_p4, %p415_p3 }
  0x10   : > { %7468 = sst [smem:[#allocation7_spill]] %s5846_s19  ;;  %p4291_p7 = scmp.ge.s32.totalorder %s5717_s27, 1 }
  0x11   : > { %p490_p8 = scmp.lt.s32.totalorder %s5717_s27, 3 }
  0x13   : > { %p491_p9 = pnand %p4291_p7, %p490_p8 }
  0x14   : > { %s7471_s23 = sld [smem:[#allocation9_spill]] (!%p491_p9)  ;;  %p541_p10 = scmp.lt.s32.totalorder (!%p491_p9), %s5831_s28, 1 }
  0x15   : > { %494 = sbr.rel (%p491_p9) target bundleno = 3182 (0xc6e), region = 88  ;;  %s7472_s26 = sld [smem:[#allocation8_spill]] (!%p491_p9) }
  0x16   : > { %s7473_s2 = sld [smem:[#allocation10_spill]] (!%p491_p9)  ;;  %s539_s29 = sand.u32 (!%p491_p9), 1, %s5709_s25  }
  0x17   : > { %s7474_s3 = sld [smem:[#allocation11_spill]] (!%p491_p9)  ;;  %s4229_s21 = scalar_lea.hbm (!%p491_p9), %s7456_s17, %s5831_s28 }
  0x18   : > { %s5675_s22 = scalar_lea.hbm (!%p491_p9), %s7456_s17, 2 }
  0x1a   : > { %v4343_v0 = vld [vmem:[%s7471_s23] sm:$0xf]  ;;  %v5416_v1 = vld [vmem:[%s7471_s23] sm:$0x10]  ;;  %vm686_vm0 = vcmask 1043456   ;;  %vm687_vm1 = vcmask 1044480  }
  0x1b   : > { %v4344_v2 = vor.u32 %v5416_v1, %v4343_v0  ;;  %v5719_v3 = vmov 65535   ;;  %s542_s18 = scalar_select %p541_p10, %s5831_s28, 1  ;;  %vm646_vm2 = vcmask 72704   ;;  %vm1029_vm3 = vcmask 1041408  }
  0x1c   : > { %v688_v4 = vsel %vm686_vm0, 4294967295, %v5719_v3  ;;  %v5894_v17 = vld [vmem:[%s7473_s2] ss:$0 sm:$0xff]  ;;  %vm980_vm4 = vcmask 556032   ;;  %vm1239_vm5 = vcmask 130048   ;;  %vm2959_vm6 = vcmask 523264  }
  0x1d   : > { %v5865_v5 = vsel %vm687_vm1, %v688_v4, 0  ;;  %s5610_s19 = smul.u32 100, %s542_s18  ;;  %vm3025_vm7 = vcmask 261120   ;;  %s4233_s23 = sshll.u32 %s4229_s21, 4  ;;  %vm4218_vm8 = vcmask 73728   ;;  %s4234_s23 = int_to_ptr.hbm [resolvable:$true] %s4233_s23 }
  0x1e   : > { %v691_v6 = vand.u32 %v4344_v2, %v5865_v5 }
  0x1f   : > { %s5872_s0 = scalar_lea.vmem %s7472_s26, %s5610_s19  ;;  %s540_s19 = scalar_lea.vmem [#allocation2], %s539_s29 }
  0x20   : > { %700 = vmatpush.bf16.msra.mxu0 %v691_v6  ;;  %v5404_v7 = vld [vmem:[%s5872_s0] sm:$0xff]  ;;  %v5405_v8 = vld [vmem:[%s5872_s0 + $0x8] sm:$0xff]  ;;  %v5406_v9 = vld [vmem:[%s5872_s0 + $0x10] sm:$0xff]  ;;  %s4231_s2 = sshll.u32 %s540_s19, 4  ;;  %s4232_s2 = int_to_ptr.vmem [resolvable:$true] %s4231_s2 }
  0x21   : > { %v5407_v10 = vld [vmem:[%s5872_s0 + $0x18] sm:$0xff]  ;;  %v5408_v11 = vld [vmem:[%s5872_s0 + $0x20] sm:$0xff]  ;;  %v5409_v12 = vld [vmem:[%s5872_s0 + $0x28] sm:$0xff] }
  0x22   : > { %v5410_v13 = vld [vmem:[%s5872_s0 + $0x30] sm:$0xff]  ;;  %v5411_v14 = vld [vmem:[%s5872_s0 + $0x38] sm:$0xff]  ;;  %v5412_v15 = vld [vmem:[%s5872_s0 + $0x40] sm:$0xff] }
  0x23   : > { %4345 = vmatmul.msk.bf16.vlgmr.msra.gmra.mxu0 %vm646_vm2, %v5404_v7  ;;  %v5413_v24 = vld [vmem:[%s5872_s0 + $0x48] sm:$0xff]  ;;  %v5414_v27 = vld [vmem:[%s5872_s0 + $0x50] sm:$0xff]  ;;  %v5415_v30 = vld [vmem:[%s5872_s0 + $0x58] sm:$0xff] }
  0x24   : > { %v571_v33 = vld [vmem:[%s5872_s0 + $0x60] sm:$0x3]  ;;  %s4221_s0 = scalar_lea.sflag [#allocation3], %s539_s29 }
  0x25   : > { %v627_v34 = vunpack.c.l.b16 %v571_v33 }
  0x27   : > { %v640_v35 = vpack.c.b16 %v627_v34, %v627_v34 }
  0x33   : > { %4346 = vmatmul.msk.bf16.gmra.mxu0 %vm646_vm2, %v5405_v8 }
  0x43   : > { %4347 = vmatmul.msk.bf16.gmra.mxu0 %vm646_vm2, %v5406_v9 }
  0x53   : > { %4348 = vmatmul.msk.bf16.gmra.mxu0 %vm646_vm2, %v5407_v10 }
  0x63   : > { %4349 = vmatmul.msk.bf16.gmra.mxu0 %vm646_vm2, %v5408_v11 }
  0x73   : > { %4350 = vmatmul.msk.bf16.gmra.mxu0 %vm646_vm2, %v5409_v12 }
  0x83   : > { %4351 = vmatmul.msk.bf16.gmra.mxu0 %vm646_vm2, %v5410_v13 }
  0x93   : > { %4352 = vmatmul.msk.bf16.gmra.mxu0 %vm646_vm2, %v5411_v14 }
  0xa0   : > { %v702_v16 = vpop.f32.mrf.mxu0 }
  0xa1   : > { %v703_v18 = vadd.f32 %v5894_v17, %v702_v16 }
  0xa3   : > { %4353 = vmatmul.msk.bf16.gmra.mxu0 %vm646_vm2, %v5412_v15  ;;  %v766_v21 = vmax.f32 %v703_v18, 0.0 }
  0xa8   : > { %v704_v19 = vpop.f32.mrf.mxu0 }
  0xa9   : > { %v705_v20 = vadd.f32 %v5894_v17, %v704_v19 }
  0xab   : > { %v767_v22 = vmax.f32 %v705_v20, 0.0 }
  0xad   : > { %v5899_v23 = vpack.c.bf16 %v767_v22, %v766_v21 }
  0xb0   : > { %v707_v25 = vpop.f32.mrf.mxu0 }
  0xb1   : > { %v708_v12 = vadd.f32 %v5894_v17, %v707_v25  ;;  %v5418_v25 = vld [vmem:[%s7474_s3 + $0x4] sm:$0xf0] }
  0xb3   : > { %4354 = vmatmul.msk.bf16.gmra.mxu0 %vm646_vm2, %v5413_v24  ;;  %v768_v18 = vmax.f32 %v708_v12, 0.0  ;;  %v5428_v12 = vld [vmem:[%s7474_s3 + $0x54] sm:$0xf0] }
  0xb8   : > { %v709_v26 = vpop.f32.mrf.mxu0 }
  0xb9   : > { %v710_v9 = vadd.f32 %v5894_v17, %v709_v26  ;;  %v4360_v26 = vld [vmem:[%s7474_s3] sm:$0xf] }
  0xbb   : > { %v769_v15 = vmax.f32 %v710_v9, 0.0 }
  0xbd   : > { %v792_v19 = vpack.c.bf16 %v769_v15, %v768_v18  ;;  %v4408_v18 = vld [vmem:[%s7474_s3 + $0x60] sm:$0xf] }
  0xc0   : > { %v712_v28 = vpop.f32.mrf.mxu0 }
  0xc1   : > { %v713_v7 = vadd.f32 %v5894_v17, %v712_v28 }
  0xc3   : > { %4355 = vmatmul.msk.bf16.gmra.mxu0 %vm646_vm2, %v5414_v27  ;;  %v770_v13 = vmax.f32 %v713_v7, 0.0  ;;  %v4361_v27 = vor.u32 %v5418_v25, %v4360_v26  ;;  %v5421_v7 = vld [vmem:[%s7474_s3 + $0x24] sm:$0xf]  ;;  %v4416_v26 = vld [vmem:[%s7474_s3 + $0x70] sm:$0xf] }
  0xc4   : > { %v5432_v25 = vld [vmem:[%s7474_s3 + $0x74] sm:$0xf0] }
  0xc8   : > { %v714_v29 = vpop.f32.mrf.mxu0 }
  0xc9   : > { %v715_v3 = vadd.f32 %v5894_v17, %v714_v29 }
  0xcb   : > { %v771_v10 = vmax.f32 %v715_v3, 0.0 }
  0xcd   : > { %v793_v16 = vpack.c.bf16 %v771_v10, %v770_v13  ;;  %v5423_v13 = vld [vmem:[%s7474_s3 + $0x34] sm:$0xf] }
  0xd0   : > { %v717_v31 = vpop.f32.mrf.mxu0 }
  0xd1   : > { %v718_v0 = vadd.f32 %v5894_v17, %v717_v31 }
  0xd3   : > { %4356 = vmatmul.msk.bf16.gmra.mxu0 %vm646_vm2, %v5415_v30  ;;  %v772_v8 = vmax.f32 %v718_v0, 0.0  ;;  %v5419_v0 = vld [vmem:[%s7474_s3 + $0x14] sm:$0xf] }
  0xd8   : > { %v719_v32 = vpop.f32.mrf.mxu0 }
  0xd9   : > { %v720_v61 = vadd.f32 %v5894_v17, %v719_v32  ;;  %v5420_v32 = vld [vmem:[%s7474_s3 + $0x14] sm:$0xf0] }
  0xdb   : > { %v773_v4 = vmax.f32 %v720_v61, 0.0 }
  0xdd   : > { %v794_v11 = vpack.c.bf16 %v773_v4, %v772_v8  ;;  %v4392_v4 = vld [vmem:[%s7474_s3 + $0x40] sm:$0xf]  ;;  %v4378_v8 = vld [vmem:[%s7474_s3 + $0x28] sm:$0xf0] }
  0xde   : > { %v4381_v10 = vor.u32 %v5421_v7, %v4378_v8 }
  0xe0   : > { %v722_v36 = vpop.f32.mrf.mxu0 }
  0xe1   : > { %v723_v59 = vadd.f32 %v5894_v17, %v722_v36 }
  0xe3   : > { %4357 = vmatmul.msk.bf16.gmra.mxu0 %vm646_vm2, %v640_v35  ;;  %v774_v1 = vmax.f32 %v723_v59, 0.0  ;;  %v5417_v59 = vld [vmem:[%s7474_s3 + $0x4] sm:$0xf] }
  0xe8   : > { %v724_v37 = vpop.f32.mrf.mxu0 }
  0xe9   : > { %v725_v56 = vadd.f32 %v5894_v17, %v724_v37 }
  0xeb   : > { %v775_v62 = vmax.f32 %v725_v56, 0.0  ;;  %v4376_v56 = vld [vmem:[%s7474_s3 + $0x20] sm:$0xf] }
  0xed   : > { %v795_v6 = vpack.c.bf16 %v775_v62, %v774_v1  ;;  %v4384_v62 = vld [vmem:[%s7474_s3 + $0x30] sm:$0xf]  ;;  %v4370_v1 = vld [vmem:[%s7474_s3 + $0x18] sm:$0xf0] }
  0xee   : > { %v4373_v3 = vor.u32 %v5419_v0, %v4370_v1 }
  0xf0   : > { %v727_v38 = vpop.f32.mrf.mxu0 }
  0xf1   : > { %v728_v53 = vadd.f32 %v5894_v17, %v727_v38 }
  0xf3   : > { %v776_v60 = vmax.f32 %v728_v53, 0.0 }
  0xf8   : > { %v729_v39 = vpop.f32.mrf.mxu0 }
  0xf9   : > { %v730_v50 = vadd.f32 %v5894_v17, %v729_v39 }
  0xfb   : > { %v777_v57 = vmax.f32 %v730_v50, 0.0 }
  0xfd   : > { %v796_v63 = vpack.c.bf16 %v777_v57, %v776_v60  ;;  %v5422_v57 = vld [vmem:[%s7474_s3 + $0x24] sm:$0xf0] }
 0x100   : > { %v732_v40 = vpop.f32.mrf.mxu0 }
 0x101   : > { %v733_v47 = vadd.f32 %v5894_v17, %v732_v40 }
 0x103   : > { %v778_v54 = vmax.f32 %v733_v47, 0.0 }
 0x108   : > { %v734_v41 = vpop.f32.mrf.mxu0 }
 0x109   : > { %v735_v45 = vadd.f32 %v5894_v17, %v734_v41 }
 0x10b   : > { %v779_v51 = vmax.f32 %v735_v45, 0.0 }
 0x10d   : > { %v797_v58 = vpack.c.bf16 %v779_v51, %v778_v54 }
 0x110   : > { %v737_v42 = vpop.f32.mrf.mxu0 }
 0x111   : > { %v738_v43 = vadd.f32 %v5894_v17, %v737_v42 }
 0x113   : > { %v780_v48 = vmax.f32 %v738_v43, 0.0 }
 0x118   : > { %v739_v44 = vpop.f32.mrf.mxu0 }
 0x119   : > { %v740_v46 = vadd.f32 %v5894_v17, %v739_v44 }
 0x11b   : > { %v781_v49 = vmax.f32 %v740_v46, 0.0 }
 0x11d   : > { %v798_v52 = vpack.c.bf16 %v781_v49, %v780_v48 }
 0x11f   : > { %1033 = vmatpush.bf16.msra.mxu1 %v798_v52 }
 0x120   : > { %v5915_v55 = vpop.f32.mrf.mxu0 }
 0x121   : > { %v743_v51 = vadd.f32 %v5894_v17, %v5915_v55  ;;  %v4377_v55 = vor.u32 %v5422_v57, %v4376_v56  ;;  %v5435_v57 = vld [vmem:[%s7474_s3 + $0x94] sm:$0xf] }
 0x123   : > { %1034 = vmatpush.bf16.msra.mxu1 %v797_v58  ;;  %v782_v58 = vmax.f32 %v743_v51, 0.0  ;;  %v5438_v51 = vld [vmem:[%s7474_s3 + $0xa4] sm:$0xf0] }
 0x127   : > { %1035 = vmatpush.bf16.msra.mxu1 %v796_v63  ;;  %v5424_v63 = vld [vmem:[%s7474_s3 + $0x34] sm:$0xf0] }
 0x128   : > { %v744_v2 = vpop.f32.mrf.mxu0 }
 0x129   : > { %v745_v48 = vadd.f32 %v5894_v17, %v744_v2  ;;  %v4385_v2 = vor.u32 %v5424_v63, %v4384_v62 }
 0x12b   : > { %1036 = vmatpush.bf16.msra.mxu1 %v795_v6  ;;  %v783_v53 = vmax.f32 %v745_v48, 0.0  ;;  %v5426_v6 = vld [vmem:[%s7474_s3 + $0x44] sm:$0xf0]  ;;  %v4426_v48 = vld [vmem:[%s7474_s3 + $0x88] sm:$0xf0] }
 0x12c   : > { %v4393_v9 = vor.u32 %v5426_v6, %v4392_v4  ;;  %v5437_v4 = vld [vmem:[%s7474_s3 + $0xa4] sm:$0xf]  ;;  %v4442_v6 = vld [vmem:[%s7474_s3 + $0xa8] sm:$0xf0] }
 0x12d   : > { %v799_v60 = vpack.c.bf16 %v783_v53, %v782_v58  ;;  %v4434_v58 = vld [vmem:[%s7474_s3 + $0x98] sm:$0xf0] }
 0x12e   : > { %v4437_v63 = vor.u32 %v5435_v57, %v4434_v58  ;;  %v5445_v58 = vld [vmem:[%s7474_s3 + $0xe4] sm:$0xf] }
 0x12f   : > { %1037 = vmatpush.bf16.msra.mxu1 %v794_v11  ;;  %v4400_v11 = vld [vmem:[%s7474_s3 + $0x50] sm:$0xf] }
 0x130   : > { %v747_v14 = vpop.f32.mrf.mxu0  ;;  %v4401_v15 = vor.u32 %v5428_v12, %v4400_v11 }
 0x131   : > { %v748_v46 = vadd.f32 %v5894_v17, %v747_v14  ;;  %v4386_v14 = vld [vmem:[%s7474_s3 + $0x38] sm:$0xf0] }
 0x133   : > { %1038 = vmatpush.bf16.msra.mxu1 %v793_v16  ;;  %v784_v52 = vmax.f32 %v748_v46, 0.0  ;;  %v4389_v16 = vor.u32 %v5423_v13, %v4386_v14  ;;  %v4445_v13 = vor.u32 %v5437_v4, %v4442_v6 }
 0x137   : > { %1039 = vmatpush.bf16.msra.mxu1 %v792_v19  ;;  %v5430_v19 = vld [vmem:[%s7474_s3 + $0x64] sm:$0xf0] }
 0x138   : > { %v749_v20 = vpop.f32.mrf.mxu0 }
 0x139   : > { %v750_v43 = vadd.f32 %v5894_v17, %v749_v20  ;;  %v5425_v20 = vld [vmem:[%s7474_s3 + $0x44] sm:$0xf] }
 0x13b   : > { %1040 = vmatpush.bf16.msra.mxu1 %v5899_v23  ;;  %v4368_v23 = vld [vmem:[%s7474_s3 + $0x10] sm:$0xf]  ;;  %v785_v49 = vmax.f32 %v750_v43, 0.0  ;;  %v5436_v43 = vld [vmem:[%s7474_s3 + $0x94] sm:$0xf0] }
 0x13c   : > { %v4369_v36 = vor.u32 %v5420_v32, %v4368_v23  ;;  %v5434_v23 = vld [vmem:[%s7474_s3 + $0x84] sm:$0xf0]  ;;  %v5429_v32 = vld [vmem:[%s7474_s3 + $0x64] sm:$0xf] }
 0x13d   : > { %v800_v54 = vpack.c.bf16 %v785_v49, %v784_v52 }
 0x13e   : > { %1041 = vmatmul.bf16.vlgmr.msra.gmra.mxu1 %v4361_v27  ;;  %v5427_v27 = vld [vmem:[%s7474_s3 + $0x54] sm:$0xf] }
 0x140   : > { %v752_v21 = vpop.f32.mrf.mxu0 }
 0x141   : > { %v753_v40 = vadd.f32 %v5894_v17, %v752_v21  ;;  %v4394_v21 = vld [vmem:[%s7474_s3 + $0x48] sm:$0xf0] }
 0x143   : > { %v786_v47 = vmax.f32 %v753_v40, 0.0 }
 0x148   : > { %v754_v22 = vpop.f32.mrf.mxu0 }
 0x149   : > { %v755_v37 = vadd.f32 %v5894_v17, %v754_v22  ;;  %v4409_v22 = vor.u32 %v5430_v19, %v4408_v18  ;;  %v5439_v19 = vld [vmem:[%s7474_s3 + $0xb4] sm:$0xf] }
 0x14b   : > { %v787_v44 = vmax.f32 %v755_v37, 0.0 }
 0x14d   : > { %v801_v50 = vpack.c.bf16 %v787_v44, %v786_v47  ;;  %v5433_v47 = vld [vmem:[%s7474_s3 + $0x84] sm:$0xf] }
 0x14e   : > { %1046 = vmatmul.bf16.gmra.mxu1 %v4369_v36  ;;  %v4429_v52 = vor.u32 %v5433_v47, %v4426_v48  ;;  %v4480_v48 = vld [vmem:[%s7474_s3 + $0xf0] sm:$0xf] }
 0x150   : > { %v757_v24 = vpop.f32.mrf.mxu0 }
 0x151   : > { %v758_v34 = vadd.f32 %v5894_v17, %v757_v24  ;;  %v4397_v24 = vor.u32 %v5425_v20, %v4394_v21  ;;  %v4450_v20 = vld [vmem:[%s7474_s3 + $0xb8] sm:$0xf0] }
 0x153   : > { %v788_v41 = vmax.f32 %v758_v34, 0.0 }
 0x158   : > { %v759_v28 = vpop.f32.mrf.mxu0 }
 0x159   : > { %v760_v31 = vadd.f32 %v5894_v17, %v759_v28  ;;  %v4402_v28 = vld [vmem:[%s7474_s3 + $0x58] sm:$0xf0] }
 0x15b   : > { %v789_v38 = vmax.f32 %v760_v31, 0.0  ;;  %v4424_v31 = vld [vmem:[%s7474_s3 + $0x80] sm:$0xf] }
 0x15c   : > { %v4425_v34 = vor.u32 %v5434_v23, %v4424_v31 }
 0x15d   : > { %v802_v45 = vpack.c.bf16 %v789_v38, %v788_v41  ;;  %v5431_v38 = vld [vmem:[%s7474_s3 + $0x74] sm:$0xf]  ;;  %v5449_v41 = vld [vmem:[%s7443_s4] sm:$0xff] }
 0x15e   : > { %1051 = vmatmul.bf16.gmra.mxu1 %v4377_v55  ;;  %1295 = vmatpush.bf16.msra.mxu3 %v5449_v41  ;;  %v4448_v55 = vld [vmem:[%s7474_s3 + $0xb0] sm:$0xf] }
 0x160   : > { %v762_v29 = vpop.f32.mrf.mxu0 }
 0x161   : > { %v763_v30 = vadd.f32 %v5894_v17, %v762_v29  ;;  %v4362_v17 = vld [vmem:[%s7474_s3 + $0x8] sm:$0xf0]  ;;  %v4417_v29 = vor.u32 %v5432_v25, %v4416_v26  ;;  %v5444_v26 = vld [vmem:[%s7474_s3 + $0xd4] sm:$0xf0] }
 0x162   : > { %v4365_v61 = vor.u32 %v5417_v59, %v4362_v17 }
 0x163   : > { %v790_v33 = vmax.f32 %v763_v30, 0.0  ;;  %v4405_v30 = vor.u32 %v5427_v27, %v4402_v28  ;;  %v4453_v28 = vor.u32 %v5439_v19, %v4450_v20 }
 0x165   : > { %v803_v35 = vpack.c.bf16 %v790_v33, %v790_v33  ;;  %v4410_v33 = vld [vmem:[%s7474_s3 + $0x68] sm:$0xf0] }
 0x166   : > { %v4413_v36 = vor.u32 %v5429_v32, %v4410_v33  ;;  %v5441_v32 = vld [vmem:[%s7474_s3 + $0xc4] sm:$0xf]  ;;  %v4458_v33 = vld [vmem:[%s7474_s3 + $0xc8] sm:$0xf0] }
 0x167   : > { %v1031_v39 = vsel %vm1029_vm3, %v803_v35, 0 }
 0x168   : > { %v764_v42 = vpop.f32.mrf.mxu0  ;;  %1125 = vmatpush.bf16.msra.mxu2 %v1031_v39  ;;  %v4418_v39 = vld [vmem:[%s7474_s3 + $0x78] sm:$0xf0] }
 0x169   : > { %v4432_v42 = vld [vmem:[%s7474_s3 + $0x90] sm:$0xf]  ;;  %v4421_v44 = vor.u32 %v5431_v38, %v4418_v39  ;;  %v4461_v39 = vor.u32 %v5441_v32, %v4458_v33 }
 0x16c   : > { %1126 = vmatpush.bf16.msra.mxu2 %v802_v45  ;;  %v4433_v45 = vor.u32 %v5436_v43, %v4432_v42 }
 0x16e   : > { %1056 = vmatmul.bf16.gmra.mxu1 %v4385_v2 }
 0x170   : > { %1127 = vmatpush.bf16.msra.mxu2 %v801_v50  ;;  %v4440_v50 = vld [vmem:[%s7474_s3 + $0xa0] sm:$0xf] }
 0x171   : > { %v4441_v53 = vor.u32 %v5438_v51, %v4440_v50 }
 0x174   : > { %1128 = vmatpush.bf16.msra.mxu2 %v800_v54 }
 0x178   : > { %1129 = vmatpush.bf16.msra.mxu2 %v799_v60  ;;  %v5440_v60 = vld [vmem:[%s7474_s3 + $0xb4] sm:$0xf0] }
 0x179   : > { %v4449_v0 = vor.u32 %v5440_v60, %v4448_v55 }
 0x17b   : > { %4486 = vmatmul.msk.bf16.vlgmr.msra.gmra.mxu2 %vm980_vm4, %v4365_v61 }
 0x17e   : > { %1061 = vmatmul.bf16.gmra.mxu1 %v4393_v9  ;;  %v4456_v9 = vld [vmem:[%s7474_s3 + $0xc0] sm:$0xf] }
 0x18b   : > { %4487 = vmatmul.msk.bf16.gmra.mxu2 %vm980_vm4, %v4373_v3 }
 0x18e   : > { %1066 = vmatmul.bf16.gmra.mxu1 %v4401_v15 }
 0x19b   : > { %4488 = vmatmul.msk.bf16.gmra.mxu2 %vm980_vm4, %v4381_v10  ;;  %v5442_v10 = vld [vmem:[%s7474_s3 + $0xc4] sm:$0xf0] }
 0x19c   : > { %v4457_v14 = vor.u32 %v5442_v10, %v4456_v9 }
 0x19e   : > { %1071 = vmatmul.bf16.gmra.mxu1 %v4409_v22 }
 0x1ab   : > { %4489 = vmatmul.msk.bf16.gmra.mxu2 %vm980_vm4, %v4389_v16 }
 0x1ae   : > { %1076 = vmatmul.bf16.gmra.mxu1 %v4417_v29 }
 0x1bb   : > { %4490 = vmatmul.msk.bf16.gmra.mxu2 %vm980_vm4, %v4397_v24  ;;  %v1042_v35 = vpop.f32.mrf.mxu1  ;;  %v4464_v24 = vld [vmem:[%s7474_s3 + $0xd0] sm:$0xf] }
 0x1bc   : > { %v4465_v29 = vor.u32 %v5444_v26, %v4464_v24 }
 0x1be   : > { %1081 = vmatmul.bf16.gmra.mxu1 %v4425_v34 }
 0x1c3   : > { %v1044_v37 = vpop.f32.mrf.mxu1 }
 0x1cb   : > { %4491 = vmatmul.msk.bf16.gmra.mxu2 %vm980_vm4, %v4405_v30  ;;  %v1047_v40 = vpop.f32.mrf.mxu1 }
 0x1ce   : > { %1086 = vmatmul.bf16.gmra.mxu1 %v4433_v45  ;;  %v5443_v45 = vld [vmem:[%s7474_s3 + $0xd4] sm:$0xf] }
 0x1d3   : > { %v1049_v46 = vpop.f32.mrf.mxu1 }
 0x1db   : > { %4492 = vmatmul.msk.bf16.gmra.mxu2 %vm980_vm4, %v4413_v36  ;;  %v1052_v49 = vpop.f32.mrf.mxu1  ;;  %v5446_v36 = vld [vmem:[%s7474_s3 + $0xe4] sm:$0xf0] }
 0x1de   : > { %1091 = vmatmul.bf16.gmra.mxu1 %v4441_v53 }
 0x1e3   : > { %v1054_v56 = vpop.f32.mrf.mxu1 }
 0x1eb   : > { %4493 = vmatmul.msk.bf16.gmra.mxu2 %vm980_vm4, %v4421_v44  ;;  %v1057_v17 = vpop.f32.mrf.mxu1 }
 0x1ee   : > { %1096 = vmatmul.bf16.gmra.mxu1 %v4449_v0 }
 0x1f3   : > { %v1059_v3 = vpop.f32.mrf.mxu1 }
 0x1fb   : > { %4494 = vmatmul.msk.bf16.gmra.mxu2 %vm980_vm4, %v4429_v52  ;;  %v1062_v8 = vpop.f32.mrf.mxu1 }
 0x1fe   : > { %v1131_v54 = vpop.f32.mrf.mxu2  ;;  %1101 = vmatmul.bf16.gmra.mxu1 %v4457_v14 }
 0x1ff   : > { %v1132_v61 = vadd.f32 %v1131_v54, %v1042_v35  ;;  %v4472_v35 = vld [vmem:[%s7474_s3 + $0xe0] sm:$0xf] }
 0x200   : > { %v4473_v41 = vor.u32 %v5446_v36, %v4472_v35 }
 0x203   : > { %v1064_v18 = vpop.f32.mrf.mxu1 }
 0x206   : > { %v1133_v59 = vpop.f32.mrf.mxu2 }
 0x207   : > { %v1134_v62 = vadd.f32 %v1133_v59, %v1044_v37  ;;  %v4474_v59 = vld [vmem:[%s7474_s3 + $0xe8] sm:$0xf0] }
 0x209   : > { %v1211_v1 = vpack.c.bf16 %v1134_v62, %v1132_v61  ;;  %v4477_v62 = vor.u32 %v5445_v58, %v4474_v59 }
 0x20b   : > { %4495 = vmatmul.msk.bf16.gmra.mxu2 %vm980_vm4, %v4437_v63  ;;  %4506 = vmatmul.msk.bf16.vlgmr.msra.gmra.mxu3 %vm1239_vm5, %v1211_v1  ;;  %v1067_v22 = vpop.f32.mrf.mxu1 }
 0x20e   : > { %v1136_v2 = vpop.f32.mrf.mxu2  ;;  %1106 = vmatmul.bf16.gmra.mxu1 %v4465_v29 }
 0x20f   : > { %v1137_v11 = vadd.f32 %v1136_v2, %v1047_v40  ;;  %v5447_v2 = vld [vmem:[%s7474_s3 + $0xf4] sm:$0xf] }
 0x213   : > { %v1069_v23 = vpop.f32.mrf.mxu1 }
 0x216   : > { %v1138_v7 = vpop.f32.mrf.mxu2 }
 0x217   : > { %v1139_v12 = vadd.f32 %v1138_v7, %v1049_v46  ;;  %v4466_v46 = vld [vmem:[%s7474_s3 + $0xd8] sm:$0xf0] }
 0x218   : > { %v4469_v52 = vor.u32 %v5443_v45, %v4466_v46 }
 0x219   : > { %v1212_v15 = vpack.c.bf16 %v1139_v12, %v1137_v11 }
 0x21b   : > { %4496 = vmatmul.msk.bf16.gmra.mxu2 %vm980_vm4, %v4445_v13  ;;  %4507 = vmatmul.msk.bf16.gmra.mxu3 %vm1239_vm5, %v1212_v15  ;;  %v1072_v40 = vpop.f32.mrf.mxu1 }
 0x21e   : > { %v1141_v16 = vpop.f32.mrf.mxu2  ;;  %1111 = vmatmul.bf16.gmra.mxu1 %v4473_v41 }
 0x21f   : > { %v1142_v25 = vadd.f32 %v1141_v16, %v1052_v49  ;;  %v5448_v49 = vld [vmem:[%s7474_s3 + $0xf4] sm:$0xf0] }
 0x220   : > { %v4481_v53 = vor.u32 %v5448_v49, %v4480_v48 }
 0x223   : > { %v1074_v44 = vpop.f32.mrf.mxu1 }
 0x226   : > { %v1143_v21 = vpop.f32.mrf.mxu2 }
 0x227   : > { %v1144_v27 = vadd.f32 %v1143_v21, %v1054_v56 }
 0x229   : > { %v1213_v30 = vpack.c.bf16 %v1144_v27, %v1142_v25 }
 0x22b   : > { %4497 = vmatmul.msk.bf16.gmra.mxu2 %vm980_vm4, %v4453_v28  ;;  %4508 = vmatmul.msk.bf16.gmra.mxu3 %vm1239_vm5, %v1213_v30  ;;  %v1077_v56 = vpop.f32.mrf.mxu1  ;;  %v6159_v28 = vld [vmem:[%s7444_s5] ss:$0 sm:$0xff] }
 0x22e   : > { %v1146_v31 = vpop.f32.mrf.mxu2  ;;  %1116 = vmatmul.bf16.gmra.mxu1 %v4481_v53 }
 0x22f   : > { %v1147_v37 = vadd.f32 %v1146_v31, %v1057_v17 }
 0x233   : > { %v1079_v17 = vpop.f32.mrf.mxu1 }
 0x236   : > { %v1148_v34 = vpop.f32.mrf.mxu2 }
 0x237   : > { %v1149_v38 = vadd.f32 %v1148_v34, %v1059_v3  ;;  %v4482_v3 = vld [vmem:[%s7474_s3 + $0xf8] sm:$0xf0]  ;;  %s5669_s3 = sshra.s32 %s4234_s23, 4  ;;  %s5670_s3 = int_to_ptr.hbm [resolvable:$true] %s5669_s3 }
 0x238   : > { %s5671_s30 = scalar_lea.hbm %s5670_s3, 1  ;;  %p5676_p0 = scmp.lt.s32.totalorder %s5670_s3, %s7456_s17 }
 0x239   : > { %v1214_v42 = vpack.c.bf16 %v1149_v38, %v1147_v37  ;;  %p5672_p11 = scmp.ne.s32.totalorder %s5670_s3, %s5671_s30  ;;  %p5677_p1 = scmp.lt.s32.totalorder %s5675_s22, %s5671_s30 }
 0x23b   : > { %4498 = vmatmul.msk.bf16.gmra.mxu2 %vm980_vm4, %v4461_v39  ;;  %4509 = vmatmul.msk.bf16.gmra.mxu3 %vm1239_vm5, %v1214_v42  ;;  %v1082_v1 = vpop.f32.mrf.mxu1  ;;  %p5673_p12 = pnand %p5672_p11, %p5848_p5  ;;  %p5678_p2 = por %p5677_p1, %p5676_p0 }
 0x23d   : > { %p5674_p13 = pneg %p5673_p12 }
 0x23e   : > { %v1151_v43 = vpop.f32.mrf.mxu2 }
 0x23f   : > { %v1152_v50 = vadd.f32 %v1151_v43, %v1062_v8  ;;  %v4485_v8 = vor.u32 %v5447_v2, %v4482_v3  ;;  %p5679_p3 = pnand %p5678_p2, %p5674_p13 }
 0x243   : > { %v1084_v10 = vpop.f32.mrf.mxu1 }
 0x246   : > { %v1153_v47 = vpop.f32.mrf.mxu2 }
 0x247   : > { %v1154_v51 = vadd.f32 %v1153_v47, %v1064_v18 }
 0x249   : > { %v1215_v54 = vpack.c.bf16 %v1154_v51, %v1152_v50 }
 0x24b   : > { %4499 = vmatmul.msk.bf16.gmra.mxu2 %vm980_vm4, %v4469_v52  ;;  %4510 = vmatmul.msk.bf16.gmra.mxu3 %vm1239_vm5, %v1215_v54  ;;  %v1087_v12 = vpop.f32.mrf.mxu1 }
 0x24e   : > { %v1156_v57 = vpop.f32.mrf.mxu2 }
 0x24f   : > { %v1157_v60 = vadd.f32 %v1156_v57, %v1067_v22 }
 0x253   : > { %v1089_v18 = vpop.f32.mrf.mxu1 }
 0x256   : > { %v1158_v55 = vpop.f32.mrf.mxu2 }
 0x257   : > { %v1159_v61 = vadd.f32 %v1158_v55, %v1069_v23 }
 0x259   : > { %v1216_v63 = vpack.c.bf16 %v1159_v61, %v1157_v60 }
 0x25b   : > { %4500 = vmatmul.msk.bf16.gmra.mxu2 %vm980_vm4, %v4477_v62  ;;  %4511 = vmatmul.msk.bf16.gmra.mxu3 %vm1239_vm5, %v1216_v63  ;;  %v1092_v24 = vpop.f32.mrf.mxu1 }
 0x25e   : > { %v1161_v0 = vpop.f32.mrf.mxu2 }
 0x25f   : > { %v1162_v6 = vadd.f32 %v1161_v0, %v1072_v40 }
 0x263   : > { %v1094_v29 = vpop.f32.mrf.mxu1 }
 0x266   : > { %v1163_v4 = vpop.f32.mrf.mxu2 }
 0x267   : > { %v1164_v7 = vadd.f32 %v1163_v4, %v1074_v44 }
 0x269   : > { %v1217_v9 = vpack.c.bf16 %v1164_v7, %v1162_v6 }
 0x26b   : > { %4501 = vmatmul.msk.bf16.gmra.mxu2 %vm980_vm4, %v4485_v8  ;;  %4512 = vmatmul.msk.bf16.gmra.mxu3 %vm1239_vm5, %v1217_v9  ;;  %v1097_v39 = vpop.f32.mrf.mxu1 }
 0x26e   : > { %v1166_v11 = vpop.f32.mrf.mxu2 }
 0x26f   : > { %v1167_v14 = vadd.f32 %v1166_v11, %v1077_v56 }
 0x273   : > { %v1099_v43 = vpop.f32.mrf.mxu1 }
 0x276   : > { %v1168_v13 = vpop.f32.mrf.mxu2 }
 0x277   : > { %v1169_v15 = vadd.f32 %v1168_v13, %v1079_v17 }
 0x279   : > { %v1218_v16 = vpack.c.bf16 %v1169_v15, %v1167_v14 }
 0x27b   : > { %4513 = vmatmul.msk.bf16.gmra.mxu3 %vm1239_vm5, %v1218_v16  ;;  %v1102_v56 = vpop.f32.mrf.mxu1 }
 0x27e   : > { %v1171_v19 = vpop.f32.mrf.mxu2 }
 0x27f   : > { %v1172_v21 = vadd.f32 %v1171_v19, %v1082_v1 }
 0x283   : > { %v1104_v0 = vpop.f32.mrf.mxu1 }
 0x286   : > { %v1173_v20 = vpop.f32.mrf.mxu2 }
 0x287   : > { %v1174_v22 = vadd.f32 %v1173_v20, %v1084_v10 }
 0x289   : > { %v1219_v26 = vpack.c.bf16 %v1174_v22, %v1172_v21 }
 0x28b   : > { %4514 = vmatmul.msk.bf16.gmra.mxu3 %vm1239_vm5, %v1219_v26  ;;  %v1107_v4 = vpop.f32.mrf.mxu1 }
 0x28e   : > { %v1176_v25 = vpop.f32.mrf.mxu2  ;;  %v1297_v27 = vpop.f32.mrf.mxu3 }
 0x28f   : > { %v1298_v30 = vadd.f32 %v6159_v28, %v1297_v27  ;;  %v1177_v32 = vadd.f32 %v1176_v25, %v1087_v12 }
 0x291   : > { %v1377_v35 = vmax.f32 %v1298_v30, 0.0 }
 0x293   : > { %v1109_v16 = vpop.f32.mrf.mxu1 }
 0x296   : > { %v1178_v31 = vpop.f32.mrf.mxu2  ;;  %v1299_v23 = vpop.f32.mrf.mxu3 }
 0x297   : > { %v1179_v33 = vadd.f32 %v1178_v31, %v1089_v18  ;;  %v1300_v34 = vadd.f32 %v6159_v28, %v1299_v23 }
 0x299   : > { %v1220_v36 = vpack.c.bf16 %v1179_v33, %v1177_v32  ;;  %v1378_v37 = vmax.f32 %v1300_v34, 0.0 }
 0x29b   : > { %v6163_v38 = vpack.c.bf16 %v1378_v37, %v1377_v35  ;;  %4515 = vmatmul.msk.bf16.gmra.mxu3 %vm1239_vm5, %v1220_v36 }
 0x29e   : > { %v1181_v40 = vpop.f32.mrf.mxu2  ;;  %v1302_v41 = vpop.f32.mrf.mxu3 }
 0x29f   : > { %v1303_v42 = vadd.f32 %v6159_v28, %v1302_v41  ;;  %v1182_v46 = vadd.f32 %v1181_v40, %v1092_v24  ;;  %v1112_v24 = vpop.f32.mrf.mxu1 }
 0x2a1   : > { %v1379_v49 = vmax.f32 %v1303_v42, 0.0 }
 0x2a6   : > { %v1183_v44 = vpop.f32.mrf.mxu2  ;;  %v1304_v45 = vpop.f32.mrf.mxu3 }
 0x2a7   : > { %v1184_v47 = vadd.f32 %v1183_v44, %v1094_v29  ;;  %v1305_v48 = vadd.f32 %v6159_v28, %v1304_v45  ;;  %v1114_v30 = vpop.f32.mrf.mxu1 }
 0x2a9   : > { %v1221_v50 = vpack.c.bf16 %v1184_v47, %v1182_v46  ;;  %v1380_v51 = vmax.f32 %v1305_v48, 0.0 }
 0x2ab   : > { %v6168_v52 = vpack.c.bf16 %v1380_v51, %v1379_v49  ;;  %4516 = vmatmul.msk.bf16.gmra.mxu3 %vm1239_vm5, %v1221_v50 }
 0x2ae   : > { %v1186_v53 = vpop.f32.mrf.mxu2  ;;  %v1307_v54 = vpop.f32.mrf.mxu3 }
 0x2af   : > { %v1308_v57 = vadd.f32 %v6159_v28, %v1307_v54  ;;  %v1187_v17 = vadd.f32 %v1186_v53, %v1097_v39  ;;  %v1117_v35 = vpop.f32.mrf.mxu1 }
 0x2b1   : > { %v1381_v61 = vmax.f32 %v1308_v57, 0.0 }
 0x2b6   : > { %v1188_v58 = vpop.f32.mrf.mxu2  ;;  %v1309_v59 = vpop.f32.mrf.mxu3 }
 0x2b7   : > { %v1189_v55 = vadd.f32 %v1188_v58, %v1099_v43  ;;  %v1310_v60 = vadd.f32 %v6159_v28, %v1309_v59  ;;  %v1119_v39 = vpop.f32.mrf.mxu1 }
 0x2b9   : > { %v1222_v62 = vpack.c.bf16 %v1189_v55, %v1187_v17  ;;  %v1382_v63 = vmax.f32 %v1310_v60, 0.0 }
 0x2bb   : > { %v6173_v1 = vpack.c.bf16 %v1382_v63, %v1381_v61  ;;  %4517 = vmatmul.msk.bf16.gmra.mxu3 %vm1239_vm5, %v1222_v62 }
 0x2be   : > { %v1191_v2 = vpop.f32.mrf.mxu2  ;;  %v1312_v3 = vpop.f32.mrf.mxu3 }
 0x2bf   : > { %v1313_v6 = vadd.f32 %v6159_v28, %v1312_v3  ;;  %v1192_v9 = vadd.f32 %v1191_v2, %v1102_v56 }
 0x2c1   : > { %v1383_v12 = vmax.f32 %v1313_v6, 0.0 }
 0x2c6   : > { %v1193_v7 = vpop.f32.mrf.mxu2  ;;  %v1314_v8 = vpop.f32.mrf.mxu3 }
 0x2c7   : > { %v1194_v10 = vadd.f32 %v1193_v7, %v1104_v0  ;;  %v1315_v11 = vadd.f32 %v6159_v28, %v1314_v8  ;;  %v4524_v8 = vld [vmem:[%s7445_s6] sm:$0xf] }
 0x2c9   : > { %v1223_v13 = vpack.c.bf16 %v1194_v10, %v1192_v9  ;;  %v1384_v14 = vmax.f32 %v1315_v11, 0.0  ;;  %v5451_v9 = vld [vmem:[%s7445_s6 + $0x4] sm:$0xf0] }
 0x2ca   : > { %v4525_v11 = vor.u32 %v5451_v9, %v4524_v8 }
 0x2cb   : > { %v6178_v15 = vpack.c.bf16 %v1384_v14, %v1383_v12  ;;  %4518 = vmatmul.msk.bf16.gmra.mxu3 %vm1239_vm5, %v1223_v13  ;;  %v4532_v13 = vld [vmem:[%s7445_s6 + $0x10] sm:$0xf]  ;;  %v5453_v14 = vld [vmem:[%s7445_s6 + $0x14] sm:$0xf0] }
 0x2ce   : > { %v1196_v18 = vpop.f32.mrf.mxu2  ;;  %v1317_v19 = vpop.f32.mrf.mxu3 }
 0x2cf   : > { %v1197_v22 = vadd.f32 %v1196_v18, %v1107_v4  ;;  %v1318_v62 = vadd.f32 %v6159_v28, %v1317_v19  ;;  %v4533_v18 = vor.u32 %v5453_v14, %v4532_v13  ;;  %v4588_v14 = vld [vmem:[%s7445_s6 + $0x70] sm:$0xf] }
 0x2d1   : > { %v1385_v3 = vmax.f32 %v1318_v62, 0.0 }
 0x2d6   : > { %v1198_v20 = vpop.f32.mrf.mxu2  ;;  %v1319_v21 = vpop.f32.mrf.mxu3 }
 0x2d7   : > { %v1199_v26 = vadd.f32 %v1198_v20, %v1109_v16  ;;  %v1320_v55 = vadd.f32 %v6159_v28, %v1319_v21  ;;  %v4540_v20 = vld [vmem:[%s7445_s6 + $0x20] sm:$0xf]  ;;  %v5455_v21 = vld [vmem:[%s7445_s6 + $0x24] sm:$0xf0] }
 0x2d9   : > { %v1224_v25 = vpack.c.bf16 %v1199_v26, %v1197_v22  ;;  %v1386_v0 = vmax.f32 %v1320_v55, 0.0 }
 0x2db   : > { %4519 = vmatmul.msk.bf16.gmra.mxu3 %vm1239_vm5, %v1224_v25  ;;  %v6205_v6 = vpack.c.bf16 %v1386_v0, %v1385_v3  ;;  %v4548_v25 = vld [vmem:[%s7445_s6 + $0x30] sm:$0xf] }
 0x2de   : > { %v1201_v27 = vpop.f32.mrf.mxu2  ;;  %v1322_v29 = vpop.f32.mrf.mxu3 }
 0x2df   : > { %v1202_v32 = vadd.f32 %v1201_v27, %v1112_v24  ;;  %v1323_v58 = vadd.f32 %v6159_v28, %v1322_v29  ;;  %v4541_v24 = vor.u32 %v5455_v21, %v4540_v20  ;;  %v5457_v27 = vld [vmem:[%s7445_s6 + $0x34] sm:$0xf0] }
 0x2e1   : > { %v1387_v63 = vmax.f32 %v1323_v58, 0.0 }
 0x2e6   : > { %v1203_v31 = vpop.f32.mrf.mxu2  ;;  %v1324_v23 = vpop.f32.mrf.mxu3 }
 0x2e7   : > { %v1204_v33 = vadd.f32 %v1203_v31, %v1114_v30  ;;  %v1325_v54 = vadd.f32 %v6159_v28, %v1324_v23  ;;  %v4549_v30 = vor.u32 %v5457_v27, %v4548_v25  ;;  %v4564_v23 = vld [vmem:[%s7445_s6 + $0x40] sm:$0xf] }
 0x2e9   : > { %v1225_v34 = vpack.c.bf16 %v1204_v33, %v1202_v32  ;;  %v1388_v60 = vmax.f32 %v1325_v54, 0.0  ;;  %v5460_v32 = vld [vmem:[%s7445_s6 + $0x44] sm:$0xf0] }
 0x2eb   : > { %4520 = vmatmul.msk.bf16.gmra.mxu3 %vm1239_vm5, %v1225_v34  ;;  %v6200_v2 = vpack.c.bf16 %v1388_v60, %v1387_v63  ;;  %v4565_v34 = vor.u32 %v5460_v32, %v4564_v23 }
 0x2ee   : > { %v1206_v36 = vpop.f32.mrf.mxu2  ;;  %v1327_v37 = vpop.f32.mrf.mxu3 }
 0x2ef   : > { %v1207_v42 = vadd.f32 %v1206_v36, %v1117_v35  ;;  %v1328_v50 = vadd.f32 %v6159_v28, %v1327_v37  ;;  %v4572_v36 = vld [vmem:[%s7445_s6 + $0x50] sm:$0xf]  ;;  %v5462_v37 = vld [vmem:[%s7445_s6 + $0x54] sm:$0xf0] }
 0x2f1   : > { %v1389_v59 = vmax.f32 %v1328_v50, 0.0 }
 0x2f6   : > { %v1208_v40 = vpop.f32.mrf.mxu2  ;;  %v1329_v41 = vpop.f32.mrf.mxu3 }
 0x2f7   : > { %v1209_v43 = vadd.f32 %v1208_v40, %v1119_v39  ;;  %v1330_v48 = vadd.f32 %v6159_v28, %v1329_v41  ;;  %v4573_v40 = vor.u32 %v5462_v37, %v4572_v36  ;;  %v4622_v36 = vld [vmem:[%s7445_s6 + $0x80] sm:$0xf]  ;;  %v5469_v37 = vld [vmem:[%s7445_s6 + $0x84] sm:$0xf0] }
 0x2f9   : > { %v1226_v44 = vpack.c.bf16 %v1209_v43, %v1207_v42  ;;  %v1390_v56 = vmax.f32 %v1330_v48, 0.0  ;;  %v4580_v43 = vld [vmem:[%s7445_s6 + $0x60] sm:$0xf] }
 0x2fb   : > { %4521 = vmatmul.msk.bf16.gmra.mxu3 %vm1239_vm5, %v1226_v44  ;;  %v6196_v61 = vpack.c.bf16 %v1390_v56, %v1389_v59  ;;  %v5464_v44 = vld [vmem:[%s7445_s6 + $0x64] sm:$0xf0] }
 0x2fc   : > { %v4581_v48 = vor.u32 %v5464_v44, %v4580_v43  ;;  %v4623_v43 = vor.u32 %v5469_v37, %v4622_v36  ;;  %v5452_v44 = vld [vmem:[%s7445_s6 + $0x14] sm:$0xf]  ;;  %v4632_v36 = vld [vmem:[%s7445_s6 + $0x98] sm:$0xf0] }
 0x2fd   : > { %v5479_v37 = vld [vmem:[%s7445_s6 + $0xd4] sm:$0xf] }
 0x2fe   : > { %v1332_v45 = vpop.f32.mrf.mxu3 }
 0x2ff   : > { %v1333_v46 = vadd.f32 %v6159_v28, %v1332_v45 }
 0x301   : > { %v1391_v51 = vmax.f32 %v1333_v46, 0.0 }
 0x306   : > { %v1334_v47 = vpop.f32.mrf.mxu3 }
 0x307   : > { %v1335_v49 = vadd.f32 %v6159_v28, %v1334_v47 }
 0x309   : > { %v1392_v53 = vmax.f32 %v1335_v49, 0.0 }
 0x30b   : > { %v6189_v57 = vpack.c.bf16 %v1392_v53, %v1391_v51 }
 0x30d   : > { %1473 = vmatpush.bf16.msrb.mxu0 %v6189_v57 }
 0x30e   : > { %v6193_v17 = vpop.f32.mrf.mxu3 }
 0x311   : > { %1474 = vmatpush.bf16.msrb.mxu0 %v6196_v61 }
 0x315   : > { %1475 = vmatpush.bf16.msrb.mxu0 %v6200_v2 }
 0x316   : > { %v6203_v4 = vpop.f32.mrf.mxu3 }
 0x319   : > { %1476 = vmatpush.bf16.msrb.mxu0 %v6205_v6 }
 0x31d   : > { %1477 = vmatpush.bf16.msrb.mxu0 %v6178_v15 }
 0x31e   : > { %v6209_v7 = vpop.f32.mrf.mxu3 }
 0x321   : > { %1478 = vmatpush.bf16.msrb.mxu0 %v6173_v1 }
 0x325   : > { %1479 = vmatpush.bf16.msrb.mxu0 %v6168_v52 }
 0x326   : > { %v6219_v10 = vpop.f32.mrf.mxu3 }
 0x327   : > { %v1345_v25 = vadd.f32 %v6159_v28, %v6219_v10  ;;  %v1338_v10 = vadd.f32 %v6159_v28, %v6193_v17  ;;  %v5459_v17 = vld [vmem:[%s7445_s6 + $0x44] sm:$0xf] }
 0x329   : > { %1480 = vmatpush.bf16.msrb.mxu0 %v6163_v38 }
 0x32c   : > { %1481 = vmatmul.bf16.vlgmr.msrb.gmra.mxu0 %v4525_v11 }
 0x32d   : > { %1586 = vmatpush.bf16.msra.mxu0 %v6189_v57 }
 0x32e   : > { %v6223_v12 = vpop.f32.mrf.mxu3 }
 0x331   : > { %1587 = vmatpush.bf16.msra.mxu0 %v6196_v61 }
 0x335   : > { %1588 = vmatpush.bf16.msra.mxu0 %v6200_v2 }
 0x336   : > { %v6233_v16 = vpop.f32.mrf.mxu3 }
 0x337   : > { %v1350_v20 = vadd.f32 %v6159_v28, %v6233_v16  ;;  %v1343_v16 = vadd.f32 %v6159_v28, %v6209_v7 }
 0x339   : > { %1589 = vmatpush.bf16.msra.mxu0 %v6205_v6  ;;  %v1398_v27 = vmax.f32 %v1350_v20, 0.0  ;;  %v1395_v32 = vmax.f32 %v1343_v16, 0.0 }
 0x33c   : > { %1486 = vmatmul.bf16.gmra.mxu0 %v4533_v18  ;;  %v5466_v18 = vld [vmem:[%s7445_s6 + $0x74] sm:$0xf0] }
 0x33d   : > { %1590 = vmatpush.bf16.msra.mxu0 %v6178_v15 }
 0x33e   : > { %v6237_v19 = vpop.f32.mrf.mxu3 }
 0x33f   : > { %v1353_v11 = vadd.f32 %v6159_v28, %v6237_v19 }
 0x341   : > { %1591 = vmatpush.bf16.msra.mxu0 %v6173_v1 }
 0x345   : > { %1592 = vmatpush.bf16.msra.mxu0 %v6168_v52 }
 0x346   : > { %v1354_v22 = vpop.f32.mrf.mxu3 }
 0x347   : > { %v1355_v3 = vadd.f32 %v6159_v28, %v1354_v22  ;;  %v4589_v22 = vor.u32 %v5466_v18, %v4588_v14  ;;  %v5456_v18 = vld [vmem:[%s7445_s6 + $0x34] sm:$0xf] }
 0x349   : > { %1593 = vmatpush.bf16.msra.mxu0 %v6163_v38  ;;  %v1400_v21 = vmax.f32 %v1355_v3, 0.0  ;;  %v5473_v3 = vld [vmem:[%s7445_s6 + $0xa4] sm:$0xf0] }
 0x34c   : > { %1491 = vmatmul.bf16.gmra.mxu0 %v4541_v24  ;;  %v1348_v24 = vadd.f32 %v6159_v28, %v6223_v12  ;;  %v1340_v12 = vadd.f32 %v6159_v28, %v6203_v4  ;;  %v5450_v4 = vld [vmem:[%s7445_s6 + $0x4] sm:$0xf] }
 0x34d   : > { %1794 = vmatpush.bf16.msrb.mxu0 %v6189_v57 }
 0x34e   : > { %v1357_v26 = vpop.f32.mrf.mxu3  ;;  %v1394_v7 = vmax.f32 %v1340_v12, 0.0 }
 0x34f   : > { %v1358_v63 = vadd.f32 %v6159_v28, %v1357_v26  ;;  %v1399_v26 = vmax.f32 %v1353_v11, 0.0 }
 0x351   : > { %1795 = vmatpush.bf16.msrb.mxu0 %v6196_v61  ;;  %v1401_v13 = vmax.f32 %v1358_v63, 0.0  ;;  %v4582_v63 = vld [vmem:[%s7445_s6 + $0x68] sm:$0xf0] }
 0x355   : > { %1796 = vmatpush.bf16.msrb.mxu0 %v6200_v2 }
 0x356   : > { %v1359_v29 = vpop.f32.mrf.mxu3 }
 0x357   : > { %v1360_v55 = vadd.f32 %v6159_v28, %v1359_v29  ;;  %v6323_v29 = vpack.c.bf16 %v1400_v21, %v1399_v26  ;;  %v4550_v21 = vld [vmem:[%s7445_s6 + $0x38] sm:$0xf0]  ;;  %v4646_v26 = vld [vmem:[%s7445_s6 + $0xb0] sm:$0xf] }
 0x359   : > { %1797 = vmatpush.bf16.msrb.mxu0 %v6205_v6  ;;  %v1402_v8 = vmax.f32 %v1360_v55, 0.0  ;;  %v4542_v55 = vld [vmem:[%s7445_s6 + $0x28] sm:$0xf0] }
 0x35b   : > { %v6314_v19 = vpack.c.bf16 %v1402_v8, %v1401_v13 }
 0x35c   : > { %1496 = vmatmul.bf16.gmra.mxu0 %v4549_v30  ;;  %v1397_v30 = vmax.f32 %v1348_v24, 0.0  ;;  %v4590_v24 = vld [vmem:[%s7445_s6 + $0x78] sm:$0xf0] }
 0x35d   : > { %1798 = vmatpush.bf16.msrb.mxu0 %v6178_v15 }
 0x35e   : > { %v1362_v31 = vpop.f32.mrf.mxu3  ;;  %v6332_v23 = vpack.c.bf16 %v1398_v27, %v1397_v30  ;;  %v4553_v27 = vor.u32 %v5456_v18, %v4550_v21  ;;  %v4722_v18 = vld [vmem:[%s7445_s6 + $0x100] sm:$0xf]  ;;  %v5487_v21 = vld [vmem:[%s7445_s6 + $0x104] sm:$0xf0] }
 0x35f   : > { %v1363_v58 = vadd.f32 %v6159_v28, %v1362_v31  ;;  %v1396_v31 = vmax.f32 %v1345_v25, 0.0  ;;  %v5475_v25 = vld [vmem:[%s7445_s6 + $0xb4] sm:$0xf0] }
 0x360   : > { %v4647_v30 = vor.u32 %v5475_v25, %v4646_v26 }
 0x361   : > { %1799 = vmatpush.bf16.msrb.mxu0 %v6173_v1  ;;  %v1403_v0 = vmax.f32 %v1363_v58, 0.0  ;;  %v5485_v58 = vld [vmem:[%s7446_s7 + $0x18] sm:$0xff] }
 0x365   : > { %1800 = vmatpush.bf16.msrb.mxu0 %v6168_v52 }
 0x366   : > { %v1364_v33 = vpop.f32.mrf.mxu3 }
 0x367   : > { %v1365_v53 = vadd.f32 %v6159_v28, %v1364_v33  ;;  %v6339_v33 = vpack.c.bf16 %v1396_v31, %v1395_v32  ;;  %v5468_v31 = vld [vmem:[%s7445_s6 + $0x84] sm:$0xf] }
 0x368   : > { %v5477_v32 = vld [vmem:[%s7445_s6 + $0xc4] sm:$0xf] }
 0x369   : > { %1801 = vmatpush.bf16.msrb.mxu0 %v6163_v38  ;;  %v1404_v60 = vmax.f32 %v1365_v53, 0.0 }
 0x36b   : > { %v6299_v9 = vpack.c.bf16 %v1404_v60, %v1403_v0  ;;  %v5463_v60 = vld [vmem:[%s7445_s6 + $0x64] sm:$0xf]  ;;  %v4638_v0 = vld [vmem:[%s7445_s6 + $0xa0] sm:$0xf] }
 0x36c   : > { %1594 = vmatmul.bf16.vlgmr.msra.gmra.mxu0 %v4565_v34  ;;  %v1393_v34 = vmax.f32 %v1338_v10, 0.0  ;;  %v4585_v11 = vor.u32 %v5463_v60, %v4582_v63  ;;  %v4639_v13 = vor.u32 %v5473_v3, %v4638_v0  ;;  %v4624_v10 = vld [vmem:[%s7445_s6 + $0x88] sm:$0xf0]  ;;  %v4698_v60 = vld [vmem:[%s7445_s6 + $0xf8] sm:$0xf0] }
 0x36d   : > { %v5467_v0 = vld [vmem:[%s7446_s7 + $0x8] sm:$0xff] }
 0x36e   : > { %v1367_v35 = vpop.f32.mrf.mxu3  ;;  %1676 = vmatpush.bf16.msrb.mxu1 %v5467_v0 }
 0x36f   : > { %v1368_v49 = vadd.f32 %v6159_v28, %v1367_v35  ;;  %v4566_v35 = vld [vmem:[%s7445_s6 + $0x48] sm:$0xf0] }
 0x371   : > { %v1405_v59 = vmax.f32 %v1368_v49, 0.0  ;;  %v5471_v49 = vld [vmem:[%s7445_s6 + $0x94] sm:$0xf0] }
 0x376   : > { %v1369_v39 = vpop.f32.mrf.mxu3 }
 0x377   : > { %v1370_v46 = vadd.f32 %v6159_v28, %v1369_v39  ;;  %v6362_v39 = vpack.c.bf16 %v1394_v7, %v1393_v34  ;;  %v4674_v7 = vld [vmem:[%s7445_s6 + $0xc8] sm:$0xf0]  ;;  %v4627_v34 = vor.u32 %v5468_v31, %v4624_v10 }
 0x379   : > { %v1406_v54 = vmax.f32 %v1370_v46, 0.0  ;;  %v5461_v46 = vld [vmem:[%s7445_s6 + $0x54] sm:$0xf] }
 0x37b   : > { %v6292_v62 = vpack.c.bf16 %v1406_v54, %v1405_v59  ;;  %v5454_v59 = vld [vmem:[%s7445_s6 + $0x24] sm:$0xf] }
 0x37c   : > { %1599 = vmatmul.bf16.gmra.mxu0 %v4573_v40  ;;  %v5458_v40 = vld [vmem:[%s7446_s7] sm:$0xff]  ;;  %v4545_v8 = vor.u32 %v5454_v59, %v4542_v55  ;;  %v4648_v59 = vld [vmem:[%s7445_s6 + $0xb8] sm:$0xf0]  ;;  %v5483_v55 = vld [vmem:[%s7445_s6 + $0xf4] sm:$0xf] }
 0x37d   : > { %v4701_v3 = vor.u32 %v5483_v55, %v4698_v60 }
 0x37e   : > { %v1372_v41 = vpop.f32.mrf.mxu3 }
 0x37f   : > { %v1373_v42 = vadd.f32 %v6159_v28, %v1372_v41 }
 0x381   : > { %v1407_v50 = vmax.f32 %v1373_v42, 0.0  ;;  %v4569_v42 = vor.u32 %v5459_v17, %v4566_v35  ;;  %v5470_v35 = vld [vmem:[%s7445_s6 + $0x94] sm:$0xf] }
 0x386   : > { %v1374_v45 = vpop.f32.mrf.mxu3 }
 0x387   : > { %v1375_v47 = vadd.f32 %v6159_v28, %v1374_v45  ;;  %v4526_v28 = vld [vmem:[%s7445_s6 + $0x8] sm:$0xf0]  ;;  %v4534_v45 = vld [vmem:[%s7445_s6 + $0x18] sm:$0xf0] }
 0x388   : > { %v4529_v41 = vor.u32 %v5450_v4, %v4526_v28  ;;  %v4677_v28 = vor.u32 %v5477_v32, %v4674_v7 }
 0x389   : > { %v1408_v51 = vmax.f32 %v1375_v47, 0.0  ;;  %v4574_v47 = vld [vmem:[%s7445_s6 + $0x58] sm:$0xf0] }
 0x38b   : > { %v6285_v56 = vpack.c.bf16 %v1408_v51, %v1407_v50  ;;  %v4537_v50 = vor.u32 %v5452_v44, %v4534_v45  ;;  %v4577_v51 = vor.u32 %v5461_v46, %v4574_v47  ;;  %v5494_v44 = vld [vmem:[%s7446_s7 + $0x20] sm:$0xff]  ;;  %v4640_v46 = vld [vmem:[%s7445_s6 + $0xa8] sm:$0xf0] }
 0x38c   : > { %1604 = vmatmul.bf16.gmra.mxu0 %v4581_v48  ;;  %v4630_v48 = vld [vmem:[%s7445_s6 + $0x90] sm:$0xf]  ;;  %v5472_v45 = vld [vmem:[%s7445_s6 + $0xa4] sm:$0xf] }
 0x38d   : > { %1502 = vmatpush.bf16.msrb.mxu3 %v6285_v56  ;;  %1615 = vmatpush.bf16.msrb.mxu2 %v6285_v56  ;;  %v4631_v53 = vor.u32 %v5471_v49, %v4630_v48  ;;  %v5481_v47 = vld [vmem:[%s7445_s6 + $0xe4] sm:$0xf]  ;;  %v4690_v48 = vld [vmem:[%s7445_s6 + $0xe8] sm:$0xf0] }
 0x38e   : > { %1992 = vmatpush.bf16.msra.mxu0 %v6285_v56 }
 0x391   : > { %1503 = vmatpush.bf16.msrb.mxu3 %v6292_v62  ;;  %1616 = vmatpush.bf16.msrb.mxu2 %v6292_v62 }
 0x392   : > { %1993 = vmatpush.bf16.msra.mxu0 %v6292_v62 }
 0x395   : > { %1504 = vmatpush.bf16.msrb.mxu3 %v6299_v9  ;;  %1617 = vmatpush.bf16.msrb.mxu2 %v6299_v9 }
 0x396   : > { %1994 = vmatpush.bf16.msra.mxu0 %v6299_v9 }
 0x399   : > { %1505 = vmatpush.bf16.msrb.mxu3 %v6314_v19  ;;  %1618 = vmatpush.bf16.msrb.mxu2 %v6314_v19 }
 0x39a   : > { %1995 = vmatpush.bf16.msra.mxu0 %v6314_v19 }
 0x39c   : > { %1609 = vmatmul.bf16.gmra.mxu0 %v4589_v22  ;;  %v5465_v22 = vld [vmem:[%s7445_s6 + $0x74] sm:$0xf] }
 0x39d   : > { %1506 = vmatpush.bf16.msrb.mxu3 %v6323_v29  ;;  %1619 = vmatpush.bf16.msrb.mxu2 %v6323_v29  ;;  %v4593_v16 = vor.u32 %v5465_v22, %v4590_v24  ;;  %v4723_v22 = vor.u32 %v5487_v21, %v4722_v18 }
 0x39e   : > { %1996 = vmatpush.bf16.msra.mxu0 %v6323_v29 }
 0x3a1   : > { %1507 = vmatpush.bf16.msrb.mxu3 %v6332_v23  ;;  %1620 = vmatpush.bf16.msrb.mxu2 %v6332_v23 }
 0x3a2   : > { %1997 = vmatpush.bf16.msra.mxu0 %v6332_v23 }
 0x3a5   : > { %1508 = vmatpush.bf16.msrb.mxu3 %v6339_v33  ;;  %1621 = vmatpush.bf16.msrb.mxu2 %v6339_v33 }
 0x3a6   : > { %1998 = vmatpush.bf16.msra.mxu0 %v6339_v33 }
 0x3a9   : > { %1509 = vmatpush.bf16.msrb.mxu3 %v6362_v39  ;;  %1622 = vmatpush.bf16.msrb.mxu2 %v6362_v39  ;;  %v6404_v54 = vpop.f32.mrf.mxu0 }
 0x3aa   : > { %1999 = vmatpush.bf16.msra.mxu0 %v6362_v39 }
 0x3ac   : > { %1510 = vmatmul.bf16.vlgmr.msrb.gmra.mxu3 %v4529_v41  ;;  %1623 = vmatmul.bf16.vlgmr.msrb.gmra.mxu2 %v4569_v42  ;;  %v4635_v41 = vor.u32 %v5470_v35, %v4632_v36 }
 0x3ad   : > { %1823 = vmatpush.bf16.msra.mxu2 %v6285_v56  ;;  %1723 = vmatpush.bf16.msra.mxu3 %v5458_v40  ;;  %v4682_v40 = vld [vmem:[%s7445_s6 + $0xd8] sm:$0xf0] }
 0x3ae   : > { %1802 = vmatmul.bf16.vlgmr.msrb.gmra.mxu0 %v4623_v43  ;;  %v4685_v42 = vor.u32 %v5479_v37, %v4682_v40 }
 0x3af   : > { %2132 = vmatpush.bf16.msrb.mxu0 %v6189_v57 }
 0x3b1   : > { %1963 = vmatpush.bf16.msrb.mxu3 %v6189_v57  ;;  %1824 = vmatpush.bf16.msra.mxu2 %v6292_v62  ;;  %v6435_v14 = vpop.f32.mrf.mxu0 }
 0x3b3   : > { %2133 = vmatpush.bf16.msrb.mxu0 %v6196_v61 }
 0x3b5   : > { %1964 = vmatpush.bf16.msrb.mxu3 %v6196_v61  ;;  %1825 = vmatpush.bf16.msra.mxu2 %v6299_v9 }
 0x3b7   : > { %2134 = vmatpush.bf16.msrb.mxu0 %v6200_v2 }
 0x3b9   : > { %1965 = vmatpush.bf16.msrb.mxu3 %v6200_v2  ;;  %1826 = vmatpush.bf16.msra.mxu2 %v6314_v19  ;;  %v6440_v20 = vpop.f32.mrf.mxu0 }
 0x3bb   : > { %2135 = vmatpush.bf16.msrb.mxu0 %v6205_v6 }
 0x3bc   : > { %1515 = vmatmul.bf16.gmra.mxu3 %v4537_v50  ;;  %1628 = vmatmul.bf16.gmra.mxu2 %v4577_v51  ;;  %v4643_v50 = vor.u32 %v5472_v45, %v4640_v46  ;;  %v4693_v51 = vor.u32 %v5481_v47, %v4690_v48 }
 0x3bd   : > { %1966 = vmatpush.bf16.msrb.mxu3 %v6205_v6  ;;  %1827 = vmatpush.bf16.msra.mxu2 %v6323_v29 }
 0x3be   : > { %1807 = vmatmul.bf16.gmra.mxu0 %v4631_v53 }
 0x3bf   : > { %2136 = vmatpush.bf16.msrb.mxu0 %v6178_v15 }
 0x3c1   : > { %1967 = vmatpush.bf16.msrb.mxu3 %v6178_v15  ;;  %1828 = vmatpush.bf16.msra.mxu2 %v6332_v23  ;;  %v6457_v12 = vpop.f32.mrf.mxu0 }
 0x3c3   : > { %2137 = vmatpush.bf16.msrb.mxu0 %v6173_v1 }
 0x3c5   : > { %1968 = vmatpush.bf16.msrb.mxu3 %v6173_v1  ;;  %1829 = vmatpush.bf16.msra.mxu2 %v6339_v33 }
 0x3c7   : > { %2138 = vmatpush.bf16.msrb.mxu0 %v6168_v52 }
 0x3c9   : > { %1969 = vmatpush.bf16.msrb.mxu3 %v6168_v52  ;;  %1830 = vmatpush.bf16.msra.mxu2 %v6362_v39  ;;  %v6471_v4 = vpop.f32.mrf.mxu0 }
 0x3cb   : > { %2139 = vmatpush.bf16.msrb.mxu0 %v6163_v38 }
 0x3cc   : > { %1520 = vmatmul.bf16.gmra.mxu3 %v4545_v8  ;;  %1633 = vmatmul.bf16.gmra.mxu2 %v4585_v11  ;;  %v5476_v11 = vld [vmem:[%s7446_s7 + $0x10] sm:$0xff] }
 0x3cd   : > { %2053 = vmatpush.bf16.msrb.mxu2 %v5485_v58  ;;  %1970 = vmatpush.bf16.msrb.mxu3 %v6163_v38  ;;  %v5474_v58 = vld [vmem:[%s7445_s6 + $0xb4] sm:$0xf] }
 0x3ce   : > { %1812 = vmatmul.bf16.gmra.mxu0 %v4639_v13  ;;  %v4651_v63 = vor.u32 %v5474_v58, %v4648_v59  ;;  %1884 = vmatpush.bf16.msra.mxu1 %v5476_v11 }
 0x3d1   : > { %v6475_v17 = vpop.f32.mrf.mxu0 }
 0x3d9   : > { %v6491_v43 = vpop.f32.mrf.mxu0 }
 0x3dc   : > { %1525 = vmatmul.bf16.gmra.mxu3 %v4553_v27  ;;  %1638 = vmatmul.bf16.gmra.mxu2 %v4593_v16 }
 0x3de   : > { %1817 = vmatmul.bf16.gmra.mxu0 %v4647_v30 }
 0x3e1   : > { %v6511_v49 = vpop.f32.mrf.mxu0 }
 0x3e9   : > { %v1595_v53 = vpop.f32.mrf.mxu0 }
 0x3ec   : > { %1831 = vmatmul.bf16.vlgmr.msra.gmra.mxu2 %v4627_v34 }
 0x3ed   : > { %2301 = vmatpush.bf16.msra.mxu2 %v6189_v57 }
 0x3ee   : > { %2000 = vmatmul.bf16.vlgmr.msra.gmra.mxu0 %v4677_v28 }
 0x3ef   : > { %2222 = vmatpush.bf16.msra.mxu0 %v5494_v44 }
 0x3f1   : > { %2302 = vmatpush.bf16.msra.mxu2 %v6196_v61  ;;  %v1597_v8 = vpop.f32.mrf.mxu0 }
 0x3f5   : > { %2303 = vmatpush.bf16.msra.mxu2 %v6200_v2 }
 0x3f9   : > { %2304 = vmatpush.bf16.msra.mxu2 %v6205_v6  ;;  %v1600_v13 = vpop.f32.mrf.mxu0 }
 0x3fc   : > { %1836 = vmatmul.bf16.gmra.mxu2 %v4635_v41 }
 0x3fd   : > { %2305 = vmatpush.bf16.msra.mxu2 %v6178_v15 }
 0x3fe   : > { %2005 = vmatmul.bf16.gmra.mxu0 %v4685_v42 }
 0x401   : > { %2306 = vmatpush.bf16.msra.mxu2 %v6173_v1  ;;  %v1602_v24 = vpop.f32.mrf.mxu0 }
 0x405   : > { %2307 = vmatpush.bf16.msra.mxu2 %v6168_v52 }
 0x409   : > { %2308 = vmatpush.bf16.msra.mxu2 %v6163_v38  ;;  %v1605_v16 = vpop.f32.mrf.mxu0 }
 0x40c   : > { %1841 = vmatmul.bf16.gmra.mxu2 %v4643_v50 }
 0x40e   : > { %2010 = vmatmul.bf16.gmra.mxu0 %v4693_v51 }
 0x41c   : > { %1846 = vmatmul.bf16.gmra.mxu2 %v4651_v63 }
 0x41e   : > { %2015 = vmatmul.bf16.gmra.mxu0 %v4701_v3 }
 0x42e   : > { %2140 = vmatmul.bf16.vlgmr.msrb.gmra.mxu0 %v4723_v22 }
 0x42f   : > { %2470 = vmatpush.bf16.msrb.mxu0 %v6189_v57  ;;  %v1511_v26 = vpop.f32.mrf.mxu3  ;;  %v1624_v25 = vpop.f32.mrf.mxu2 }
 0x430   : > { %v1625_v27 = vadd.f32 %v1624_v25, %v1595_v53  ;;  %v1512_v10 = vadd.f32 %v1511_v26, %v6404_v54  ;;  %v1607_v54 = vpop.f32.mrf.mxu0 }
 0x433   : > { %2471 = vmatpush.bf16.msrb.mxu0 %v6196_v61 }
 0x437   : > { %2472 = vmatpush.bf16.msrb.mxu0 %v6200_v2  ;;  %v1513_v30 = vpop.f32.mrf.mxu3  ;;  %v1626_v31 = vpop.f32.mrf.mxu2 }
 0x438   : > { %v1514_v32 = vadd.f32 %v1513_v30, %v6435_v14  ;;  %v1627_v7 = vadd.f32 %v1626_v31, %v1597_v8  ;;  %v1610_v47 = vpop.f32.mrf.mxu0 }
 0x43a   : > { %v1531_v34 = vpack.c.bf16 %v1514_v32, %v1512_v10  ;;  %v1644_v28 = vpack.c.bf16 %v1627_v7, %v1625_v27 }
 0x43b   : > { %2473 = vmatpush.bf16.msrb.mxu0 %v6205_v6 }
 0x43c   : > { %4600 = vmatmul.msk.bf16.vlgmr.msrb.gmra.mxu1 %vm1239_vm5, %v1644_v28  ;;  %4608 = vmatmul.msk.bf16.vlgmr.msra.gmra.mxu3 %vm1239_vm5, %v1531_v34  ;;  %v4680_v28 = vld [vmem:[%s7445_s6 + $0xd0] sm:$0xf] }
 0x43d   : > { %5602 = vmatpush.bf16.msrb.mxu1 %v6189_v57  ;;  %2161 = vmatpush.bf16.msra.mxu3 %v6285_v56 }
 0x43f   : > { %2474 = vmatpush.bf16.msrb.mxu0 %v6178_v15  ;;  %v1516_v35 = vpop.f32.mrf.mxu3  ;;  %v1629_v36 = vpop.f32.mrf.mxu2 }
 0x440   : > { %v1630_v14 = vadd.f32 %v1629_v36, %v1600_v13  ;;  %v1517_v41 = vadd.f32 %v1516_v35, %v6440_v20  ;;  %v1612_v48 = vpop.f32.mrf.mxu0  ;;  %v5480_v35 = vld [vmem:[%s7445_s6 + $0xd4] sm:$0xf0] }
 0x441   : > { %5603 = vmatpush.bf16.msrb.mxu1 %v6196_v61  ;;  %2162 = vmatpush.bf16.msra.mxu3 %v6292_v62 }
 0x443   : > { %2475 = vmatpush.bf16.msrb.mxu0 %v6173_v1 }
 0x445   : > { %5604 = vmatpush.bf16.msrb.mxu1 %v6200_v2  ;;  %2163 = vmatpush.bf16.msra.mxu3 %v6299_v9 }
 0x447   : > { %2476 = vmatpush.bf16.msrb.mxu0 %v6168_v52  ;;  %v1518_v37 = vpop.f32.mrf.mxu3  ;;  %v1631_v40 = vpop.f32.mrf.mxu2 }
 0x448   : > { %v1519_v42 = vadd.f32 %v1518_v37, %v6457_v12  ;;  %v1632_v44 = vadd.f32 %v1631_v40, %v1602_v24  ;;  %v1803_v0 = vpop.f32.mrf.mxu0  ;;  %v4681_v40 = vor.u32 %v5480_v35, %v4680_v28 }
 0x449   : > { %5605 = vmatpush.bf16.msrb.mxu1 %v6205_v6  ;;  %2164 = vmatpush.bf16.msra.mxu3 %v6314_v19 }
 0x44a   : > { %v1532_v45 = vpack.c.bf16 %v1519_v42, %v1517_v41  ;;  %v1645_v46 = vpack.c.bf16 %v1632_v44, %v1630_v14  ;;  %v5503_v42 = vld [vmem:[%s7446_s7 + $0x28] sm:$0xff] }
 0x44b   : > { %2477 = vmatpush.bf16.msrb.mxu0 %v6163_v38 }
 0x44c   : > { %4601 = vmatmul.msk.bf16.gmra.mxu1 %vm1239_vm5, %v1645_v46  ;;  %4609 = vmatmul.msk.bf16.gmra.mxu3 %vm1239_vm5, %v1532_v45  ;;  %v4688_v46 = vld [vmem:[%s7445_s6 + $0xe0] sm:$0xf] }
 0x44d   : > { %5606 = vmatpush.bf16.msrb.mxu1 %v6178_v15  ;;  %2165 = vmatpush.bf16.msra.mxu3 %v6323_v29 }
 0x44f   : > { %v1521_v20 = vpop.f32.mrf.mxu3  ;;  %v1634_v12 = vpop.f32.mrf.mxu2 }
 0x450   : > { %v1635_v50 = vadd.f32 %v1634_v12, %v1605_v16  ;;  %v1522_v58 = vadd.f32 %v1521_v20, %v6471_v4  ;;  %v1805_v22 = vpop.f32.mrf.mxu0  ;;  %v4672_v16 = vld [vmem:[%s7445_s6 + $0xc0] sm:$0xf] }
 0x451   : > { %5607 = vmatpush.bf16.msrb.mxu1 %v6173_v1  ;;  %2166 = vmatpush.bf16.msra.mxu3 %v6332_v23 }
 0x455   : > { %5608 = vmatpush.bf16.msrb.mxu1 %v6168_v52  ;;  %2167 = vmatpush.bf16.msra.mxu3 %v6339_v33 }
 0x457   : > { %v1523_v51 = vpop.f32.mrf.mxu3  ;;  %v1636_v53 = vpop.f32.mrf.mxu2 }
 0x458   : > { %v1524_v59 = vadd.f32 %v1523_v51, %v6475_v17  ;;  %v1637_v55 = vadd.f32 %v1636_v53, %v1607_v54  ;;  %v1808_v27 = vpop.f32.mrf.mxu0 }
 0x459   : > { %5609 = vmatpush.bf16.msrb.mxu1 %v6163_v38  ;;  %2168 = vmatpush.bf16.msra.mxu3 %v6362_v39 }
 0x45a   : > { %v1533_v60 = vpack.c.bf16 %v1524_v59, %v1522_v58  ;;  %v1646_v63 = vpack.c.bf16 %v1637_v55, %v1635_v50  ;;  %v4696_v55 = vld [vmem:[%s7445_s6 + $0xf0] sm:$0xf] }
 0x45c   : > { %4602 = vmatmul.msk.bf16.gmra.mxu1 %vm1239_vm5, %v1646_v63  ;;  %4610 = vmatmul.msk.bf16.gmra.mxu3 %vm1239_vm5, %v1533_v60  ;;  %v5484_v60 = vld [vmem:[%s7445_s6 + $0xf4] sm:$0xf0] }
 0x45f   : > { %v1526_v3 = vpop.f32.mrf.mxu3  ;;  %v1639_v8 = vpop.f32.mrf.mxu2 }
 0x460   : > { %v1640_v11 = vadd.f32 %v1639_v8, %v1610_v47  ;;  %v1527_v4 = vadd.f32 %v1526_v3, %v6491_v43  ;;  %v5478_v43 = vld [vmem:[%s7445_s6 + $0xc4] sm:$0xf0]  ;;  %v1810_v7 = vpop.f32.mrf.mxu0  ;;  %v4697_v8 = vor.u32 %v5484_v60, %v4696_v55 }
 0x461   : > { %v4673_v10 = vor.u32 %v5478_v43, %v4672_v16  ;;  %v5482_v47 = vld [vmem:[%s7445_s6 + $0xe4] sm:$0xf0]  ;;  %v4738_v16 = vld [vmem:[%s7445_s6 + $0x120] sm:$0xf] }
 0x462   : > { %v4689_v50 = vor.u32 %v5482_v47, %v4688_v46  ;;  %v5491_v43 = vld [vmem:[%s7445_s6 + $0x124] sm:$0xf0] }
 0x467   : > { %v1528_v13 = vpop.f32.mrf.mxu3  ;;  %v1641_v18 = vpop.f32.mrf.mxu2 }
 0x468   : > { %v1529_v17 = vadd.f32 %v1528_v13, %v6511_v49  ;;  %v1642_v21 = vadd.f32 %v1641_v18, %v1612_v48  ;;  %v1813_v14 = vpop.f32.mrf.mxu0  ;;  %v4730_v13 = vld [vmem:[%s7445_s6 + $0x110] sm:$0xf]  ;;  %v5489_v18 = vld [vmem:[%s7445_s6 + $0x114] sm:$0xf0] }
 0x46a   : > { %v1534_v24 = vpack.c.bf16 %v1529_v17, %v1527_v4  ;;  %v1647_v26 = vpack.c.bf16 %v1642_v21, %v1640_v11  ;;  %v5486_v4 = vld [vmem:[%s7445_s6 + $0x104] sm:$0xf]  ;;  %v4724_v17 = vld [vmem:[%s7445_s6 + $0x108] sm:$0xf0]  ;;  %v4731_v21 = vor.u32 %v5489_v18, %v4730_v13 }
 0x46c   : > { %4603 = vmatmul.msk.bf16.gmra.mxu1 %vm1239_vm5, %v1647_v26  ;;  %4611 = vmatmul.msk.bf16.gmra.mxu3 %vm1239_vm5, %v1534_v24 }
 0x46f   : > { %v1832_v25 = vpop.f32.mrf.mxu2 }
 0x470   : > { %v1833_v30 = vadd.f32 %v1832_v25, %v1803_v0  ;;  %v1815_v45 = vpop.f32.mrf.mxu0 }
 0x477   : > { %v1834_v49 = vpop.f32.mrf.mxu2 }
 0x478   : > { %v1835_v31 = vadd.f32 %v1834_v49, %v1805_v22  ;;  %v1818_v53 = vpop.f32.mrf.mxu0  ;;  %v4727_v22 = vor.u32 %v5486_v4, %v4724_v17  ;;  %v4732_v49 = vld [vmem:[%s7445_s6 + $0x118] sm:$0xf0] }
 0x47a   : > { %v1852_v32 = vpack.c.bf16 %v1835_v31, %v1833_v30  ;;  %v5488_v30 = vld [vmem:[%s7445_s6 + $0x114] sm:$0xf] }
 0x47c   : > { %4658 = vmatmul.msk.bf16.vlgmr.msra.gmra.mxu1 %vm1239_vm5, %v1852_v32  ;;  %1971 = vmatmul.bf16.vlgmr.msrb.gmra.mxu3 %v4673_v10  ;;  %v5512_v10 = vld [vmem:[%s7446_s7 + $0x30] sm:$0xff]  ;;  %v4739_v32 = vor.u32 %v5491_v43, %v4738_v16 }
 0x47d   : > { %2330 = vmatpush.bf16.msra.mxu1 %v6285_v56  ;;  %2391 = vmatpush.bf16.msrb.mxu3 %v5503_v42 }
 0x47f   : > { %v1837_v34 = vpop.f32.mrf.mxu2 }
 0x480   : > { %v1838_v36 = vadd.f32 %v1837_v34, %v1808_v27  ;;  %v1820_v59 = vpop.f32.mrf.mxu0 }
 0x481   : > { %2331 = vmatpush.bf16.msra.mxu1 %v6292_v62 }
 0x485   : > { %2332 = vmatpush.bf16.msra.mxu1 %v6299_v9 }
 0x487   : > { %v1839_v54 = vpop.f32.mrf.mxu2 }
 0x488   : > { %v1840_v37 = vadd.f32 %v1839_v54, %v1810_v7  ;;  %v4735_v7 = vor.u32 %v5488_v30, %v4732_v49  ;;  %v4746_v54 = vld [vmem:[%s7445_s6 + $0x130] sm:$0xf]  ;;  %v2001_v60 = vpop.f32.mrf.mxu0 }
 0x489   : > { %2333 = vmatpush.bf16.msra.mxu1 %v6314_v19 }
 0x48a   : > { %v1853_v41 = vpack.c.bf16 %v1840_v37, %v1838_v36  ;;  %v5490_v37 = vld [vmem:[%s7445_s6 + $0x124] sm:$0xf] }
 0x48c   : > { %4659 = vmatmul.msk.bf16.gmra.mxu1 %vm1239_vm5, %v1853_v41  ;;  %1976 = vmatmul.bf16.gmra.mxu3 %v4681_v40  ;;  %v4740_v40 = vld [vmem:[%s7445_s6 + $0x128] sm:$0xf0] }
 0x48d   : > { %2334 = vmatpush.bf16.msra.mxu1 %v6323_v29 }
 0x48f   : > { %v1842_v44 = vpop.f32.mrf.mxu2 }
 0x490   : > { %v1843_v20 = vadd.f32 %v1842_v44, %v1813_v14  ;;  %v5493_v14 = vld [vmem:[%s7445_s6 + $0x134] sm:$0xf0]  ;;  %v4743_v44 = vor.u32 %v5490_v37, %v4740_v40 }
 0x491   : > { %2335 = vmatpush.bf16.msra.mxu1 %v6332_v23  ;;  %v4747_v42 = vor.u32 %v5493_v14, %v4746_v54 }
 0x495   : > { %2336 = vmatpush.bf16.msra.mxu1 %v6339_v33 }
 0x497   : > { %v1844_v12 = vpop.f32.mrf.mxu2 }
 0x498   : > { %v1845_v48 = vadd.f32 %v1844_v12, %v1815_v45  ;;  %v5492_v12 = vld [vmem:[%s7445_s6 + $0x134] sm:$0xf] }
 0x499   : > { %2337 = vmatpush.bf16.msra.mxu1 %v6362_v39 }
 0x49a   : > { %v1854_v51 = vpack.c.bf16 %v1845_v48, %v1843_v20  ;;  %v4748_v48 = vld [vmem:[%s7445_s6 + $0x138] sm:$0xf0] }
 0x49c   : > { %4660 = vmatmul.msk.bf16.gmra.mxu1 %vm1239_vm5, %v1854_v51  ;;  %1981 = vmatmul.bf16.gmra.mxu3 %v4689_v50  ;;  %v5495_v50 = vld [vmem:[%s7445_s6 + $0x144] sm:$0xf]  ;;  %v4774_v51 = vld [vmem:[%s7445_s6 + $0x148] sm:$0xf0] }
 0x49f   : > { %v1847_v58 = vpop.f32.mrf.mxu2 }
 0x4a0   : > { %v1848_v63 = vadd.f32 %v1847_v58, %v1818_v53  ;;  %v4751_v58 = vor.u32 %v5492_v12, %v4748_v48  ;;  %v5497_v12 = vld [vmem:[%s7445_s6 + $0x154] sm:$0xf]  ;;  %v4782_v48 = vld [vmem:[%s7445_s6 + $0x158] sm:$0xf0] }
 0x4a7   : > { %v1849_v0 = vpop.f32.mrf.mxu2 }
 0x4a8   : > { %v1850_v3 = vadd.f32 %v1849_v0, %v1820_v59  ;;  %v4777_v59 = vor.u32 %v5495_v50, %v4774_v51  ;;  %v4785_v51 = vor.u32 %v5497_v12, %v4782_v48 }
 0x4aa   : > { %v1855_v11 = vpack.c.bf16 %v1850_v3, %v1848_v63 }
 0x4ac   : > { %4661 = vmatmul.msk.bf16.gmra.mxu1 %vm1239_vm5, %v1855_v11  ;;  %1986 = vmatmul.bf16.gmra.mxu3 %v4697_v8  ;;  %v2003_v11 = vpop.f32.mrf.mxu0 }
 0x4b4   : > { %v2006_v4 = vpop.f32.mrf.mxu0 }
 0x4b9   : > { %v1678_v24 = vpop.f32.mrf.mxu1 }
 0x4bc   : > { %2145 = vmatmul.bf16.vlgmr.msrb.gmra.mxu1 %v4731_v21  ;;  %2169 = vmatmul.bf16.vlgmr.msra.gmra.mxu3 %v4727_v22 }
 0x4bd   : > { %2639 = vmatpush.bf16.msra.mxu3 %v6189_v57  ;;  %2560 = vmatpush.bf16.msrb.mxu1 %v5512_v10 }
 0x4bf   : > { %v1725_v26 = vpop.f32.mrf.mxu3 }
 0x4c0   : > { %v1726_v25 = vadd.f32 %v1725_v26, %v1678_v24  ;;  %v2008_v26 = vpop.f32.mrf.mxu0 }
 0x4c1   : > { %2640 = vmatpush.bf16.msra.mxu3 %v6196_v61  ;;  %v6631_v27 = vpop.f32.mrf.mxu1 }
 0x4c5   : > { %2641 = vmatpush.bf16.msra.mxu3 %v6200_v2 }
 0x4c7   : > { %v6646_v31 = vpop.f32.mrf.mxu3 }
 0x4c9   : > { %2642 = vmatpush.bf16.msra.mxu3 %v6205_v6  ;;  %v1683_v34 = vpop.f32.mrf.mxu1 }
 0x4cc   : > { %2150 = vmatmul.bf16.gmra.mxu1 %v4739_v32  ;;  %2174 = vmatmul.bf16.gmra.mxu3 %v4735_v7 }
 0x4cd   : > { %2643 = vmatpush.bf16.msra.mxu3 %v6178_v15 }
 0x4cf   : > { %v1730_v28 = vpop.f32.mrf.mxu3 }
 0x4d0   : > { %v1731_v35 = vadd.f32 %v1730_v28, %v1683_v34 }
 0x4d1   : > { %2644 = vmatpush.bf16.msra.mxu3 %v6173_v1  ;;  %v6654_v36 = vpop.f32.mrf.mxu1 }
 0x4d5   : > { %2645 = vmatpush.bf16.msra.mxu3 %v6168_v52 }
 0x4d7   : > { %v6669_v41 = vpop.f32.mrf.mxu3 }
 0x4d9   : > { %2646 = vmatpush.bf16.msra.mxu3 %v6163_v38  ;;  %v1688_v45 = vpop.f32.mrf.mxu1 }
 0x4dc   : > { %2155 = vmatmul.bf16.gmra.mxu1 %v4747_v42  ;;  %2179 = vmatmul.bf16.gmra.mxu3 %v4743_v44 }
 0x4df   : > { %v1735_v46 = vpop.f32.mrf.mxu3 }
 0x4e0   : > { %v1736_v47 = vadd.f32 %v1735_v46, %v1688_v45 }
 0x4e1   : > { %v6672_v20 = vpop.f32.mrf.mxu1 }
 0x4e7   : > { %v6686_v53 = vpop.f32.mrf.mxu3 }
 0x4e9   : > { %v1693_v55 = vpop.f32.mrf.mxu1 }
 0x4ec   : > { %2184 = vmatmul.bf16.gmra.mxu3 %v4751_v58  ;;  %2338 = vmatmul.bf16.vlgmr.msra.gmra.mxu1 %v4777_v59 }
 0x4ed   : > { %2808 = vmatpush.bf16.msra.mxu1 %v6189_v57 }
 0x4ef   : > { %v1740_v63 = vpop.f32.mrf.mxu3 }
 0x4f0   : > { %v1741_v0 = vadd.f32 %v1740_v63, %v1693_v55 }
 0x4f1   : > { %2809 = vmatpush.bf16.msra.mxu1 %v6196_v61  ;;  %v6690_v3 = vpop.f32.mrf.mxu1 }
 0x4f5   : > { %2810 = vmatpush.bf16.msra.mxu1 %v6200_v2 }
 0x4f7   : > { %v6693_v8 = vpop.f32.mrf.mxu3 }
 0x4f9   : > { %2811 = vmatpush.bf16.msra.mxu1 %v6205_v6  ;;  %v1886_v13 = vpop.f32.mrf.mxu1 }
 0x4fa   : > { %v6696_v18 = vadd.f32 %v1886_v13, %v1726_v25 }
 0x4fc   : > { %2343 = vmatmul.bf16.gmra.mxu1 %v4785_v51 }
 0x4fd   : > { %2812 = vmatpush.bf16.msra.mxu1 %v6178_v15 }
 0x4ff   : > { %v1972_v57 = vpop.f32.mrf.mxu3 }
 0x500   : > { %v2002_v2 = vadd.f32 %v2001_v60, %v1972_v57 }
 0x501   : > { %2813 = vmatpush.bf16.msra.mxu1 %v6173_v1  ;;  %v6700_v17 = vpop.f32.mrf.mxu1 }
 0x505   : > { %2814 = vmatpush.bf16.msra.mxu1 %v6168_v52  ;;  %v2011_v52 = vpop.f32.mrf.mxu0 }
 0x507   : > { %v1974_v61 = vpop.f32.mrf.mxu3 }
 0x508   : > { %v2004_v21 = vadd.f32 %v2003_v11, %v1974_v61  ;;  %v5496_v11 = vld [vmem:[%s7445_s6 + $0x144] sm:$0xf0] }
 0x509   : > { %2815 = vmatpush.bf16.msra.mxu1 %v6163_v38  ;;  %v1891_v22 = vpop.f32.mrf.mxu1 }
 0x50a   : > { %v2021_v6 = vpack.c.bf16 %v2004_v21, %v2002_v2  ;;  %v6704_v24 = vadd.f32 %v1891_v22, %v1731_v35  ;;  %v5499_v2 = vld [vmem:[%s7445_s6 + $0x164] sm:$0xf]  ;;  %v4790_v21 = vld [vmem:[%s7445_s6 + $0x168] sm:$0xf0] }
 0x50c   : > { %4708 = vmatmul.msk.bf16.vlgmr.msrb.gmra.mxu2 %vm1239_vm5, %v2021_v6  ;;  %v4793_v6 = vor.u32 %v5499_v2, %v4790_v21  ;;  %v5505_v2 = vld [vmem:[%s7445_s6 + $0x184] sm:$0xf0] }
 0x50d   : > { %2499 = vmatpush.bf16.msrb.mxu2 %v6285_v56  ;;  %v2013_v32 = vpop.f32.mrf.mxu0 }
 0x50e   : > { %2348 = vmatmul.bf16.gmra.mxu1 %v4793_v6 }
 0x50f   : > { %v1977_v1 = vpop.f32.mrf.mxu3 }
 0x510   : > { %v2007_v16 = vadd.f32 %v2006_v4, %v1977_v1 }
 0x511   : > { %2500 = vmatpush.bf16.msrb.mxu2 %v6292_v62  ;;  %v6709_v15 = vpop.f32.mrf.mxu1 }
 0x515   : > { %2501 = vmatpush.bf16.msrb.mxu2 %v6299_v9  ;;  %v2016_v54 = vpop.f32.mrf.mxu0 }
 0x517   : > { %v1979_v25 = vpop.f32.mrf.mxu3 }
 0x518   : > { %v2009_v38 = vadd.f32 %v2008_v26, %v1979_v25  ;;  %v5498_v25 = vld [vmem:[%s7445_s6 + $0x154] sm:$0xf0] }
 0x519   : > { %2502 = vmatpush.bf16.msrb.mxu2 %v6314_v19  ;;  %v1896_v43 = vpop.f32.mrf.mxu1 }
 0x51a   : > { %v2022_v30 = vpack.c.bf16 %v2009_v38, %v2007_v16  ;;  %v6713_v49 = vadd.f32 %v1896_v43, %v1736_v47 }
 0x51c   : > { %4709 = vmatmul.msk.bf16.gmra.mxu2 %vm1239_vm5, %v2022_v30 }
 0x51d   : > { %2503 = vmatpush.bf16.msrb.mxu2 %v6323_v29  ;;  %v2018_v44 = vpop.f32.mrf.mxu0 }
 0x51f   : > { %v1982_v10 = vpop.f32.mrf.mxu3 }
 0x520   : > { %v2012_v28 = vadd.f32 %v2011_v52, %v1982_v10  ;;  %v4780_v52 = vld [vmem:[%s7445_s6 + $0x150] sm:$0xf] }
 0x521   : > { %2504 = vmatpush.bf16.msrb.mxu2 %v6332_v23  ;;  %v6718_v7 = vpop.f32.mrf.mxu1  ;;  %v4781_v10 = vor.u32 %v5498_v25, %v4780_v52  ;;  %v4832_v52 = vld [vmem:[%s7445_s6 + $0x198] sm:$0xf0]  ;;  %v4830_v25 = vld [vmem:[%s7445_s6 + $0x190] sm:$0xf] }
 0x525   : > { %2505 = vmatpush.bf16.msrb.mxu2 %v6339_v33  ;;  %v2141_v58 = vpop.f32.mrf.mxu0 }
 0x527   : > { %v1984_v34 = vpop.f32.mrf.mxu3 }
 0x528   : > { %v2014_v35 = vadd.f32 %v2013_v32, %v1984_v34  ;;  %v5501_v32 = vld [vmem:[%s7445_s6 + $0x174] sm:$0xf]  ;;  %v4798_v34 = vld [vmem:[%s7445_s6 + $0x178] sm:$0xf0] }
 0x529   : > { %2506 = vmatpush.bf16.msrb.mxu2 %v6362_v39  ;;  %v1901_v14 = vpop.f32.mrf.mxu1 }
 0x52a   : > { %v2023_v37 = vpack.c.bf16 %v2014_v35, %v2012_v28  ;;  %v6722_v40 = vadd.f32 %v1901_v14, %v1741_v0  ;;  %v4772_v0 = vld [vmem:[%s7445_s6 + $0x140] sm:$0xf]  ;;  %v4801_v35 = vor.u32 %v5501_v32, %v4798_v34  ;;  %v5508_v32 = vld [vmem:[%s7445_s6 + $0x1a4] sm:$0xf]  ;;  %v4840_v34 = vld [vmem:[%s7445_s6 + $0x1a8] sm:$0xf0] }
 0x52b   : > { %v4773_v61 = vor.u32 %v5496_v11, %v4772_v0 }
 0x52c   : > { %4710 = vmatmul.msk.bf16.gmra.mxu2 %vm1239_vm5, %v2023_v37  ;;  %2353 = vmatmul.bf16.gmra.mxu1 %v4801_v35  ;;  %v4788_v37 = vld [vmem:[%s7445_s6 + $0x160] sm:$0xf]  ;;  %v5509_v35 = vld [vmem:[%s7445_s6 + $0x1a4] sm:$0xf0] }
 0x52d   : > { %v2143_v63 = vpop.f32.mrf.mxu0 }
 0x52f   : > { %v1987_v42 = vpop.f32.mrf.mxu3 }
 0x530   : > { %v2017_v46 = vadd.f32 %v2016_v54, %v1987_v42  ;;  %v5500_v42 = vld [vmem:[%s7445_s6 + $0x164] sm:$0xf0] }
 0x531   : > { %v6731_v59 = vpop.f32.mrf.mxu1 }
 0x537   : > { %v1989_v45 = vpop.f32.mrf.mxu3 }
 0x538   : > { %v2019_v47 = vadd.f32 %v2018_v44, %v1989_v45 }
 0x539   : > { %v2146_v60 = vpop.f32.mrf.mxu1 }
 0x53a   : > { %v2024_v50 = vpack.c.bf16 %v2019_v47, %v2017_v46  ;;  %v4789_v47 = vor.u32 %v5500_v42, %v4788_v37 }
 0x53c   : > { %4711 = vmatmul.msk.bf16.gmra.mxu2 %vm1239_vm5, %v2024_v50 }
 0x53f   : > { %v2170_v55 = vpop.f32.mrf.mxu3 }
 0x540   : > { %v2171_v13 = vadd.f32 %v2170_v55, %v2141_v58  ;;  %v4796_v58 = vld [vmem:[%s7445_s6 + $0x170] sm:$0xf]  ;;  %v5502_v55 = vld [vmem:[%s7445_s6 + $0x174] sm:$0xf0] }
 0x541   : > { %v2148_v26 = vpop.f32.mrf.mxu1  ;;  %v4797_v11 = vor.u32 %v5502_v55, %v4796_v58 }
 0x547   : > { %v2172_v57 = vpop.f32.mrf.mxu3 }
 0x548   : > { %v2173_v4 = vadd.f32 %v2172_v57, %v2143_v63  ;;  %v5504_v57 = vld [vmem:[%s7445_s6 + $0x184] sm:$0xf] }
 0x549   : > { %v2151_v43 = vpop.f32.mrf.mxu1 }
 0x54a   : > { %v2190_v22 = vpack.c.bf16 %v2173_v4, %v2171_v13  ;;  %v4824_v4 = vld [vmem:[%s7445_s6 + $0x188] sm:$0xf0] }
 0x54b   : > { %v4827_v21 = vor.u32 %v5504_v57, %v4824_v4 }
 0x54c   : > { %4758 = vmatmul.msk.bf16.vlgmr.msra.gmra.mxu0 %vm1239_vm5, %v2190_v22  ;;  %2309 = vmatmul.bf16.vlgmr.msra.gmra.mxu2 %v4773_v61  ;;  %v4822_v61 = vld [vmem:[%s7445_s6 + $0x180] sm:$0xf] }
 0x54d   : > { %2668 = vmatpush.bf16.msra.mxu0 %v6285_v56  ;;  %v4823_v22 = vor.u32 %v5505_v2, %v4822_v61 }
 0x54f   : > { %v2175_v1 = vpop.f32.mrf.mxu3 }
 0x550   : > { %v2176_v16 = vadd.f32 %v2175_v1, %v2146_v60  ;;  %v5506_v1 = vld [vmem:[%s7445_s6 + $0x194] sm:$0xf] }
 0x551   : > { %2669 = vmatpush.bf16.msra.mxu0 %v6292_v62  ;;  %v2153_v14 = vpop.f32.mrf.mxu1 }
 0x555   : > { %2670 = vmatpush.bf16.msra.mxu0 %v6299_v9 }
 0x557   : > { %v2177_v38 = vpop.f32.mrf.mxu3 }
 0x558   : > { %v2178_v30 = vadd.f32 %v2177_v38, %v2148_v26 }
 0x559   : > { %2671 = vmatpush.bf16.msra.mxu0 %v6314_v19  ;;  %v2156_v48 = vpop.f32.mrf.mxu1 }
 0x55a   : > { %v2191_v28 = vpack.c.bf16 %v2178_v30, %v2176_v16  ;;  %v5507_v16 = vld [vmem:[%s7445_s6 + $0x194] sm:$0xf0] }
 0x55c   : > { %4759 = vmatmul.msk.bf16.gmra.mxu0 %vm1239_vm5, %v2191_v28  ;;  %2314 = vmatmul.bf16.gmra.mxu2 %v4781_v10  ;;  %v4838_v28 = vld [vmem:[%s7445_s6 + $0x1a0] sm:$0xf] }
 0x55d   : > { %2672 = vmatpush.bf16.msra.mxu0 %v6323_v29 }
 0x55f   : > { %v2180_v54 = vpop.f32.mrf.mxu3 }
 0x560   : > { %v2181_v44 = vadd.f32 %v2180_v54, %v2151_v43  ;;  %v4835_v43 = vor.u32 %v5506_v1, %v4832_v52 }
 0x561   : > { %2673 = vmatpush.bf16.msra.mxu0 %v6332_v23  ;;  %v2158_v51 = vpop.f32.mrf.mxu1 }
 0x565   : > { %2674 = vmatpush.bf16.msra.mxu0 %v6339_v33 }
 0x567   : > { %v2182_v45 = vpop.f32.mrf.mxu3 }
 0x568   : > { %v2183_v46 = vadd.f32 %v2182_v45, %v2153_v14  ;;  %v4843_v14 = vor.u32 %v5508_v32, %v4840_v34  ;;  %v4848_v45 = vld [vmem:[%s7445_s6 + $0x1b8] sm:$0xf0] }
 0x569   : > { %2675 = vmatpush.bf16.msra.mxu0 %v6362_v39  ;;  %v2339_v58 = vpop.f32.mrf.mxu1 }
 0x56a   : > { %v2192_v12 = vpack.c.bf16 %v2183_v46, %v2181_v44  ;;  %v5510_v44 = vld [vmem:[%s7445_s6 + $0x1b4] sm:$0xf]  ;;  %v4846_v46 = vld [vmem:[%s7445_s6 + $0x1b0] sm:$0xf] }
 0x56c   : > { %4760 = vmatmul.msk.bf16.gmra.mxu0 %vm1239_vm5, %v2192_v12  ;;  %2319 = vmatmul.bf16.gmra.mxu2 %v4789_v47  ;;  %v5511_v47 = vld [vmem:[%s7445_s6 + $0x1b4] sm:$0xf0] }
 0x56f   : > { %v2185_v50 = vpop.f32.mrf.mxu3 }
 0x570   : > { %v2186_v60 = vadd.f32 %v2185_v50, %v2156_v48  ;;  %v4851_v48 = vor.u32 %v5510_v44, %v4848_v45 }
 0x577   : > { %v2187_v63 = vpop.f32.mrf.mxu3 }
 0x578   : > { %v2188_v0 = vadd.f32 %v2187_v63, %v2158_v51 }
 0x57a   : > { %v2193_v13 = vpack.c.bf16 %v2188_v0, %v2186_v60  ;;  %v2341_v0 = vpop.f32.mrf.mxu1 }
 0x57c   : > { %4761 = vmatmul.msk.bf16.gmra.mxu0 %vm1239_vm5, %v2193_v13  ;;  %2324 = vmatmul.bf16.gmra.mxu2 %v4797_v11 }
 0x582   : > { %v2344_v57 = vpop.f32.mrf.mxu1 }
 0x58a   : > { %v2346_v1 = vpop.f32.mrf.mxu1 }
 0x58c   : > { %2507 = vmatmul.bf16.vlgmr.msrb.gmra.mxu2 %v4827_v21  ;;  %2478 = vmatmul.bf16.vlgmr.msrb.gmra.mxu0 %v4823_v22 }
 0x58f   : > { %v2055_v6 = vpop.f32.mrf.mxu2 }
 0x590   : > { %v2075_v26 = vadd.f32 %v2055_v6, %v6696_v18  ;;  %v4831_v18 = vor.u32 %v5507_v16, %v4830_v25 }
 0x597   : > { %v6807_v38 = vpop.f32.mrf.mxu2 }
 0x59c   : > { %2512 = vmatmul.bf16.gmra.mxu2 %v4835_v43  ;;  %2483 = vmatmul.bf16.gmra.mxu0 %v4831_v18  ;;  %v2349_v18 = vpop.f32.mrf.mxu1 }
 0x59f   : > { %v2060_v30 = vpop.f32.mrf.mxu2 }
 0x5a0   : > { %v2077_v10 = vadd.f32 %v2060_v30, %v6704_v24  ;;  %v4839_v24 = vor.u32 %v5509_v35, %v4838_v28 }
 0x5a7   : > { %v6822_v54 = vpop.f32.mrf.mxu2 }
 0x5ac   : > { %2517 = vmatmul.bf16.gmra.mxu2 %v4843_v14  ;;  %2488 = vmatmul.bf16.gmra.mxu0 %v4839_v24 }
 0x5af   : > { %v2065_v37 = vpop.f32.mrf.mxu2 }
 0x5b0   : > { %v2079_v42 = vadd.f32 %v2065_v37, %v6713_v49  ;;  %v4847_v49 = vor.u32 %v5511_v47, %v4846_v46 }
 0x5b7   : > { %v6837_v12 = vpop.f32.mrf.mxu2 }
 0x5bc   : > { %2522 = vmatmul.bf16.gmra.mxu2 %v4851_v48  ;;  %2493 = vmatmul.bf16.gmra.mxu0 %v4847_v49 }
 0x5bf   : > { %v2070_v50 = vpop.f32.mrf.mxu2 }
 0x5c0   : > { %v2081_v51 = vadd.f32 %v2070_v50, %v6722_v40  ;;  %v5515_v50 = vld [vmem:[%s7445_s6 + $0x1d4] sm:$0xf] }
 0x5c7   : > { %v6840_v55 = vpop.f32.mrf.mxu2 }
 0x5c9   : > { %v2224_v60 = vpop.f32.mrf.mxu0 }
 0x5ca   : > { %v6842_v63 = vadd.f32 %v2224_v60, %v2075_v26 }
 0x5cf   : > { %v2310_v11 = vpop.f32.mrf.mxu2 }
 0x5d0   : > { %v2340_v61 = vadd.f32 %v2339_v58, %v2310_v11  ;;  %v5514_v11 = vld [vmem:[%s7445_s6 + $0x1c4] sm:$0xf0] }
 0x5d1   : > { %v6844_v13 = vpop.f32.mrf.mxu0 }
 0x5d7   : > { %v2312_v4 = vpop.f32.mrf.mxu2 }
 0x5d8   : > { %v2342_v2 = vadd.f32 %v2341_v0, %v2312_v4  ;;  %v4872_v0 = vld [vmem:[%s7445_s6 + $0x1c0] sm:$0xf] }
 0x5d9   : > { %v2229_v21 = vpop.f32.mrf.mxu0 }
 0x5da   : > { %v2359_v22 = vpack.c.bf16 %v2342_v2, %v2340_v61  ;;  %v6846_v6 = vadd.f32 %v2229_v21, %v2077_v10  ;;  %v4873_v2 = vor.u32 %v5514_v11, %v4872_v0 }
 0x5dc   : > { %4808 = vmatmul.msk.bf16.vlgmr.msrb.gmra.mxu3 %vm1239_vm5, %v2359_v22 }
 0x5dd   : > { %2837 = vmatpush.bf16.msrb.mxu3 %v6285_v56 }
 0x5df   : > { %v2315_v40 = vpop.f32.mrf.mxu2 }
 0x5e0   : > { %v2345_v25 = vadd.f32 %v2344_v57, %v2315_v40 }
 0x5e1   : > { %2838 = vmatpush.bf16.msrb.mxu3 %v6292_v62  ;;  %v6851_v26 = vpop.f32.mrf.mxu0 }
 0x5e5   : > { %2839 = vmatpush.bf16.msrb.mxu3 %v6299_v9  ;;  %v2351_v9 = vpop.f32.mrf.mxu1 }
 0x5e7   : > { %v2317_v52 = vpop.f32.mrf.mxu2 }
 0x5e8   : > { %v2347_v16 = vadd.f32 %v2346_v1, %v2317_v52  ;;  %v5517_v1 = vld [vmem:[%s7445_s6 + $0x1e4] sm:$0xf]  ;;  %v4890_v52 = vld [vmem:[%s7445_s6 + $0x1e8] sm:$0xf0] }
 0x5e9   : > { %2840 = vmatpush.bf16.msrb.mxu3 %v6314_v19  ;;  %v2234_v43 = vpop.f32.mrf.mxu0 }
 0x5ea   : > { %v2360_v30 = vpack.c.bf16 %v2347_v16, %v2345_v25  ;;  %v6855_v10 = vadd.f32 %v2234_v43, %v2079_v42  ;;  %v4893_v16 = vor.u32 %v5517_v1, %v4890_v52  ;;  %v4880_v43 = vld [vmem:[%s7445_s6 + $0x1d0] sm:$0xf] }
 0x5ec   : > { %4809 = vmatmul.msk.bf16.gmra.mxu3 %vm1239_vm5, %v2360_v30 }
 0x5ed   : > { %2841 = vmatpush.bf16.msrb.mxu3 %v6323_v29  ;;  %v2354_v29 = vpop.f32.mrf.mxu1 }
 0x5ef   : > { %v2320_v56 = vpop.f32.mrf.mxu2 }
 0x5f0   : > { %v2350_v34 = vadd.f32 %v2349_v18, %v2320_v56  ;;  %v5516_v18 = vld [vmem:[%s7445_s6 + $0x1d4] sm:$0xf0] }
 0x5f1   : > { %2842 = vmatpush.bf16.msrb.mxu3 %v6332_v23  ;;  %v6860_v62 = vpop.f32.mrf.mxu0  ;;  %v5513_v23 = vld [vmem:[%s7445_s6 + $0x1c4] sm:$0xf] }
 0x5f5   : > { %2843 = vmatpush.bf16.msrb.mxu3 %v6339_v33  ;;  %v4874_v33 = vld [vmem:[%s7445_s6 + $0x1c8] sm:$0xf0]  ;;  %v2356_v44 = vpop.f32.mrf.mxu1 }
 0x5f6   : > { %v4877_v42 = vor.u32 %v5513_v23, %v4874_v33  ;;  %v4888_v33 = vld [vmem:[%s7445_s6 + $0x1e0] sm:$0xf] }
 0x5f7   : > { %v2322_v32 = vpop.f32.mrf.mxu2 }
 0x5f8   : > { %v2352_v19 = vadd.f32 %v2351_v9, %v2322_v32  ;;  %2676 = vmatmul.bf16.vlgmr.msra.gmra.mxu0 %v4877_v42  ;;  %v4881_v32 = vor.u32 %v5516_v18, %v4880_v43  ;;  %v5518_v42 = vld [vmem:[%s7445_s6 + $0x1e4] sm:$0xf0]  ;;  %v4932_v43 = vld [vmem:[%s7445_s6 + $0x218] sm:$0xf0]  ;;  %v4930_v18 = vld [vmem:[%s7445_s6 + $0x210] sm:$0xf] }
 0x5f9   : > { %2844 = vmatpush.bf16.msrb.mxu3 %v6362_v39  ;;  %v2239_v28 = vpop.f32.mrf.mxu0 }
 0x5fa   : > { %v2361_v35 = vpack.c.bf16 %v2352_v19, %v2350_v34  ;;  %v6864_v14 = vadd.f32 %v2239_v28, %v2081_v51  ;;  %v4882_v51 = vld [vmem:[%s7445_s6 + $0x1d8] sm:$0xf0]  ;;  %v5519_v28 = vld [vmem:[%s7445_s6 + $0x1f4] sm:$0xf] }
 0x5fb   : > { %v4885_v60 = vor.u32 %v5515_v50, %v4882_v51  ;;  %v4896_v50 = vld [vmem:[%s7445_s6 + $0x1f0] sm:$0xf]  ;;  %v5520_v51 = vld [vmem:[%s7445_s6 + $0x1f4] sm:$0xf0] }
 0x5fc   : > { %4810 = vmatmul.msk.bf16.gmra.mxu3 %vm1239_vm5, %v2361_v35  ;;  %v4898_v35 = vld [vmem:[%s7445_s6 + $0x1f8] sm:$0xf0] }
 0x5ff   : > { %v2325_v24 = vpop.f32.mrf.mxu2 }
 0x600   : > { %v2355_v45 = vadd.f32 %v2354_v29, %v2325_v24  ;;  %v4901_v24 = vor.u32 %v5519_v28, %v4898_v35  ;;  %v4940_v28 = vld [vmem:[%s7445_s6 + $0x228] sm:$0xf0]  ;;  %v4938_v35 = vld [vmem:[%s7445_s6 + $0x220] sm:$0xf] }
 0x601   : > { %v6873_v37 = vpop.f32.mrf.mxu0 }
 0x607   : > { %v2327_v39 = vpop.f32.mrf.mxu2 }
 0x608   : > { %v2357_v46 = vadd.f32 %v2356_v44, %v2327_v39  ;;  %2681 = vmatmul.bf16.gmra.mxu0 %v4885_v60 }
 0x609   : > { %v2479_v47 = vpop.f32.mrf.mxu0 }
 0x60a   : > { %v2362_v48 = vpack.c.bf16 %v2357_v46, %v2355_v45  ;;  %v4889_v46 = vor.u32 %v5518_v42, %v4888_v33 }
 0x60c   : > { %4811 = vmatmul.msk.bf16.gmra.mxu3 %vm1239_vm5, %v2362_v48 }
 0x60f   : > { %v2508_v49 = vpop.f32.mrf.mxu2 }
 0x610   : > { %v2509_v4 = vadd.f32 %v2508_v49, %v2479_v47 }
 0x611   : > { %v2481_v58 = vpop.f32.mrf.mxu0 }
 0x617   : > { %v2510_v57 = vpop.f32.mrf.mxu2 }
 0x618   : > { %v2511_v61 = vadd.f32 %v2510_v57, %v2481_v58  ;;  %2686 = vmatmul.bf16.gmra.mxu0 %v4893_v16  ;;  %v4897_v57 = vor.u32 %v5520_v51, %v4896_v50  ;;  %v5524_v16 = vld [vmem:[%s7445_s6 + $0x214] sm:$0xf] }
 0x619   : > { %v2484_v21 = vpop.f32.mrf.mxu0 }
 0x61a   : > { %v2528_v22 = vpack.c.bf16 %v2511_v61, %v2509_v4  ;;  %v5522_v61 = vld [vmem:[%s7445_s6 + $0x204] sm:$0xf] }
 0x61c   : > { %4858 = vmatmul.msk.bf16.vlgmr.msrb.gmra.mxu1 %vm1239_vm5, %v2528_v22  ;;  %2647 = vmatmul.bf16.vlgmr.msra.gmra.mxu3 %v4873_v2  ;;  %v4924_v2 = vld [vmem:[%s7445_s6 + $0x208] sm:$0xf0]  ;;  %v5523_v22 = vld [vmem:[%s7445_s6 + $0x204] sm:$0xf0] }
 0x61f   : > { %v2513_v40 = vpop.f32.mrf.mxu2 }
 0x620   : > { %v2514_v56 = vadd.f32 %v2513_v40, %v2484_v21  ;;  %v4922_v21 = vld [vmem:[%s7445_s6 + $0x200] sm:$0xf]  ;;  %v4927_v40 = vor.u32 %v5522_v61, %v4924_v2 }
 0x621   : > { %v2486_v25 = vpop.f32.mrf.mxu0  ;;  %v4923_v1 = vor.u32 %v5523_v22, %v4922_v21 }
 0x627   : > { %v2515_v30 = vpop.f32.mrf.mxu2 }
 0x628   : > { %v2516_v9 = vadd.f32 %v2515_v30, %v2486_v25  ;;  %2691 = vmatmul.bf16.gmra.mxu0 %v4901_v24  ;;  %v5525_v30 = vld [vmem:[%s7445_s6 + $0x214] sm:$0xf0] }
 0x629   : > { %v2489_v34 = vpop.f32.mrf.mxu0 }
 0x62a   : > { %v2529_v19 = vpack.c.bf16 %v2516_v9, %v2514_v56  ;;  %v4935_v9 = vor.u32 %v5524_v16, %v4932_v43 }
 0x62c   : > { %4859 = vmatmul.msk.bf16.gmra.mxu1 %vm1239_vm5, %v2529_v19  ;;  %2652 = vmatmul.bf16.gmra.mxu3 %v4881_v32  ;;  %v5526_v19 = vld [vmem:[%s7445_s6 + $0x224] sm:$0xf] }
 0x62f   : > { %v2518_v29 = vpop.f32.mrf.mxu2 }
 0x630   : > { %v2519_v44 = vadd.f32 %v2518_v29, %v2489_v34  ;;  %v5527_v29 = vld [vmem:[%s7445_s6 + $0x224] sm:$0xf0] }
 0x631   : > { %v2491_v23 = vpop.f32.mrf.mxu0 }
 0x637   : > { %v2520_v39 = vpop.f32.mrf.mxu2 }
 0x638   : > { %v2521_v45 = vadd.f32 %v2520_v39, %v2491_v23  ;;  %v4943_v23 = vor.u32 %v5526_v19, %v4940_v28  ;;  %v5528_v39 = vld [vmem:[%s7445_s6 + $0x234] sm:$0xf] }
 0x639   : > { %v2494_v48 = vpop.f32.mrf.mxu0 }
 0x63a   : > { %v2530_v47 = vpack.c.bf16 %v2521_v45, %v2519_v44  ;;  %v4948_v44 = vld [vmem:[%s7445_s6 + $0x238] sm:$0xf0]  ;;  %v4946_v45 = vld [vmem:[%s7445_s6 + $0x230] sm:$0xf] }
 0x63c   : > { %4860 = vmatmul.msk.bf16.gmra.mxu1 %vm1239_vm5, %v2530_v47  ;;  %2657 = vmatmul.bf16.gmra.mxu3 %v4889_v46  ;;  %v5529_v46 = vld [vmem:[%s7445_s6 + $0x234] sm:$0xf0] }
 0x63f   : > { %v2523_v49 = vpop.f32.mrf.mxu2 }
 0x640   : > { %v2524_v0 = vadd.f32 %v2523_v49, %v2494_v48  ;;  %v4951_v48 = vor.u32 %v5528_v39, %v4948_v44  ;;  %v5521_v49 = vld [vmem:[%s7446_s7 + $0x38] sm:$0xff]  ;;  %v5530_v44 = vld [vmem:[%s7446_s7 + $0x40] sm:$0xff] }
 0x641   : > { %v2496_v58 = vpop.f32.mrf.mxu0  ;;  %2729 = vmatpush.bf16.msra.mxu2 %v5521_v49  ;;  %2898 = vmatpush.bf16.msrb.mxu0 %v5530_v44 }
 0x647   : > { %v2525_v60 = vpop.f32.mrf.mxu2 }
 0x648   : > { %v2526_v11 = vadd.f32 %v2525_v60, %v2496_v58 }
 0x64a   : > { %v2531_v4 = vpack.c.bf16 %v2526_v11, %v2524_v0 }
 0x64c   : > { %4861 = vmatmul.msk.bf16.gmra.mxu1 %vm1239_vm5, %v2531_v4  ;;  %2662 = vmatmul.bf16.gmra.mxu3 %v4897_v57 }
 0x65c   : > { %2845 = vmatmul.bf16.vlgmr.msrb.gmra.mxu3 %v4927_v40  ;;  %2816 = vmatmul.bf16.vlgmr.msra.gmra.mxu1 %v4923_v1 }
 0x65f   : > { %v2393_v52 = vpop.f32.mrf.mxu3 }
 0x660   : > { %v2413_v25 = vadd.f32 %v2393_v52, %v6842_v63  ;;  %v4931_v63 = vor.u32 %v5525_v30, %v4930_v18 }
 0x667   : > { %v6947_v56 = vpop.f32.mrf.mxu3 }
 0x66c   : > { %2850 = vmatmul.bf16.gmra.mxu3 %v4935_v9  ;;  %2821 = vmatmul.bf16.gmra.mxu1 %v4931_v63 }
 0x66f   : > { %v2398_v32 = vpop.f32.mrf.mxu3 }
 0x670   : > { %v2415_v34 = vadd.f32 %v2398_v32, %v6846_v6  ;;  %v4939_v6 = vor.u32 %v5527_v29, %v4938_v35 }
 0x675   : > { %v2677_v51 = vpop.f32.mrf.mxu0 }
 0x677   : > { %v6962_v24 = vpop.f32.mrf.mxu3 }
 0x67c   : > { %2855 = vmatmul.bf16.gmra.mxu3 %v4943_v23  ;;  %2826 = vmatmul.bf16.gmra.mxu1 %v4939_v6 }
 0x67d   : > { %v2679_v11 = vpop.f32.mrf.mxu0 }
 0x67f   : > { %v2403_v33 = vpop.f32.mrf.mxu3 }
 0x680   : > { %v2417_v42 = vadd.f32 %v2403_v33, %v6855_v10  ;;  %v4947_v10 = vor.u32 %v5529_v46, %v4946_v45 }
 0x685   : > { %v2682_v2 = vpop.f32.mrf.mxu0 }
 0x687   : > { %v6977_v47 = vpop.f32.mrf.mxu3 }
 0x68c   : > { %2860 = vmatmul.bf16.gmra.mxu3 %v4951_v48  ;;  %2831 = vmatmul.bf16.gmra.mxu1 %v4947_v10 }
 0x68f   : > { %v2408_v50 = vpop.f32.mrf.mxu3 }
 0x690   : > { %v2419_v58 = vadd.f32 %v2408_v50, %v6864_v14  ;;  %v2684_v14 = vpop.f32.mrf.mxu0 }
 0x697   : > { %v6983_v60 = vpop.f32.mrf.mxu3 }
 0x699   : > { %v2562_v0 = vpop.f32.mrf.mxu1 }
 0x69a   : > { %v6985_v57 = vadd.f32 %v2562_v0, %v2413_v25  ;;  %v2687_v25 = vpop.f32.mrf.mxu0 }
 0x69f   : > { %v2648_v4 = vpop.f32.mrf.mxu3 }
 0x6a0   : > { %v2678_v22 = vadd.f32 %v2677_v51, %v2648_v4 }
 0x6a1   : > { %v6987_v61 = vpop.f32.mrf.mxu1 }
 0x6a7   : > { %v2650_v21 = vpop.f32.mrf.mxu3 }
 0x6a8   : > { %v2680_v40 = vadd.f32 %v2679_v11, %v2650_v21 }
 0x6a9   : > { %v2567_v1 = vpop.f32.mrf.mxu1 }
 0x6aa   : > { %v2697_v52 = vpack.c.bf16 %v2680_v40, %v2678_v22  ;;  %v6989_v16 = vadd.f32 %v2567_v1, %v2415_v34  ;;  %v2689_v34 = vpop.f32.mrf.mxu0 }
 0x6ac   : > { %4908 = vmatmul.msk.bf16.vlgmr.msra.gmra.mxu2 %vm1239_vm5, %v2697_v52 }
 0x6af   : > { %v2653_v43 = vpop.f32.mrf.mxu3 }
 0x6b0   : > { %v2683_v9 = vadd.f32 %v2682_v2, %v2653_v43 }
 0x6b1   : > { %v6992_v18 = vpop.f32.mrf.mxu1 }
 0x6b2   : > { %v2692_v48 = vpop.f32.mrf.mxu0 }
 0x6b7   : > { %v2655_v30 = vpop.f32.mrf.mxu3 }
 0x6b8   : > { %v2685_v63 = vadd.f32 %v2684_v14, %v2655_v30 }
 0x6b9   : > { %v2572_v32 = vpop.f32.mrf.mxu1 }
 0x6ba   : > { %v2698_v19 = vpack.c.bf16 %v2685_v63, %v2683_v9  ;;  %v6994_v28 = vadd.f32 %v2572_v32, %v2417_v42  ;;  %v2694_v49 = vpop.f32.mrf.mxu0 }
 0x6bc   : > { %4909 = vmatmul.msk.bf16.gmra.mxu2 %vm1239_vm5, %v2698_v19 }
 0x6bf   : > { %v2658_v35 = vpop.f32.mrf.mxu3 }
 0x6c0   : > { %v2688_v6 = vadd.f32 %v2687_v25, %v2658_v35 }
 0x6c1   : > { %v6997_v29 = vpop.f32.mrf.mxu1 }
 0x6c7   : > { %v2660_v23 = vpop.f32.mrf.mxu3 }
 0x6c8   : > { %v2690_v33 = vadd.f32 %v2689_v34, %v2660_v23 }
 0x6c9   : > { %v2577_v39 = vpop.f32.mrf.mxu1 }
 0x6ca   : > { %v2699_v45 = vpack.c.bf16 %v2690_v33, %v2688_v6  ;;  %v7002_v46 = vadd.f32 %v2577_v39, %v2419_v58 }
 0x6cc   : > { %4910 = vmatmul.msk.bf16.gmra.mxu2 %vm1239_vm5, %v2699_v45 }
 0x6cf   : > { %v2663_v42 = vpop.f32.mrf.mxu3 }
 0x6d0   : > { %v2693_v51 = vadd.f32 %v2692_v48, %v2663_v42 }
 0x6d1   : > { %v7005_v10 = vpop.f32.mrf.mxu1 }
 0x6d7   : > { %v2665_v50 = vpop.f32.mrf.mxu3 }
 0x6d8   : > { %v2695_v0 = vadd.f32 %v2694_v49, %v2665_v50 }
 0x6d9   : > { %v2817_v11 = vpop.f32.mrf.mxu1 }
 0x6da   : > { %v2700_v4 = vpack.c.bf16 %v2695_v0, %v2693_v51 }
 0x6dc   : > { %4911 = vmatmul.msk.bf16.gmra.mxu2 %vm1239_vm5, %v2700_v4 }
 0x6df   : > { %v2846_v2 = vpop.f32.mrf.mxu3 }
 0x6e0   : > { %v2847_v58 = vadd.f32 %v2846_v2, %v2817_v11 }
 0x6e1   : > { %v2819_v21 = vpop.f32.mrf.mxu1 }
 0x6e7   : > { %v2848_v22 = vpop.f32.mrf.mxu3 }
 0x6e8   : > { %v2849_v40 = vadd.f32 %v2848_v22, %v2819_v21 }
 0x6e9   : > { %v2822_v1 = vpop.f32.mrf.mxu1 }
 0x6ea   : > { %v2866_v52 = vpack.c.bf16 %v2849_v40, %v2847_v58 }
 0x6ec   : > { %4958 = vmatmul.msk.bf16.vlgmr.msrb.gmra.mxu0 %vm1239_vm5, %v2866_v52 }
 0x6ef   : > { %v2851_v14 = vpop.f32.mrf.mxu3 }
 0x6f0   : > { %v2852_v25 = vadd.f32 %v2851_v14, %v2822_v1 }
 0x6f1   : > { %v2824_v43 = vpop.f32.mrf.mxu1 }
 0x6f7   : > { %v2853_v30 = vpop.f32.mrf.mxu3 }
 0x6f8   : > { %v2854_v9 = vadd.f32 %v2853_v30, %v2824_v43 }
 0x6f9   : > { %v2827_v63 = vpop.f32.mrf.mxu1 }
 0x6fa   : > { %v2867_v32 = vpack.c.bf16 %v2854_v9, %v2852_v25  ;;  %v1738_v25 = vadd.f32 %v6686_v53, %v6672_v20  ;;  %v1728_v20 = vadd.f32 %v6646_v31, %v6631_v27 }
 0x6fc   : > { %4959 = vmatmul.msk.bf16.gmra.mxu0 %vm1239_vm5, %v2867_v32  ;;  %v1733_v32 = vadd.f32 %v6669_v41, %v6654_v36  ;;  %v1907_v41 = vadd.f32 %v6700_v17, %v1728_v20  ;;  %v5539_v20 = vld [vmem:[%s7449_s10 + $0x28] sm:$0xff] }
 0x6ff   : > { %v2856_v19 = vpop.f32.mrf.mxu3 }
 0x700   : > { %v2857_v23 = vadd.f32 %v2856_v19, %v2827_v63  ;;  %v1911_v63 = vadd.f32 %v6718_v7, %v1738_v25  ;;  %v4964_v25 = vld [vmem:[%s7448_s9] sm:$0xf] }
 0x701   : > { %v2829_v35 = vpop.f32.mrf.mxu1 }
 0x707   : > { %v2858_v34 = vpop.f32.mrf.mxu3 }
 0x708   : > { %v2859_v6 = vadd.f32 %v2858_v34, %v2829_v35  ;;  %v2080_v35 = vadd.f32 %v6837_v12, %v1911_v63  ;;  %v1909_v34 = vadd.f32 %v6709_v15, %v1733_v32  ;;  %v5536_v63 = vld [vmem:[%s7449_s10 + $0x18] sm:$0xff] }
 0x709   : > { %v2832_v39 = vpop.f32.mrf.mxu1 }
 0x70a   : > { %v2868_v33 = vpack.c.bf16 %v2859_v6, %v2857_v23  ;;  %v2249_v6 = vadd.f32 %v6860_v62, %v2080_v35 }
 0x70c   : > { %4960 = vmatmul.msk.bf16.gmra.mxu0 %vm1239_vm5, %v2868_v33  ;;  %v2418_v36 = vadd.f32 %v6977_v47, %v2249_v6  ;;  %v5532_v6 = vld [vmem:[%s7449_s10] sm:$0xff] }
 0x70f   : > { %v2861_v44 = vpop.f32.mrf.mxu3 }
 0x710   : > { %v2862_v42 = vadd.f32 %v2861_v44, %v2832_v39 }
 0x711   : > { %v2834_v45 = vpop.f32.mrf.mxu1 }
 0x717   : > { %v2863_v48 = vpop.f32.mrf.mxu3 }
 0x718   : > { %v2864_v49 = vadd.f32 %v2863_v48, %v2834_v45 }
 0x71a   : > { %v2869_v50 = vpack.c.bf16 %v2864_v49, %v2862_v42 }
 0x71c   : > { %4961 = vmatmul.msk.bf16.gmra.mxu0 %vm1239_vm5, %v2869_v50 }
 0x72f   : > { %v2731_v51 = vpop.f32.mrf.mxu2 }
 0x730   : > { %v2751_v0 = vadd.f32 %v2731_v51, %v6985_v57  ;;  %v1743_v57 = vadd.f32 %v6693_v8, %v6690_v3  ;;  %v2078_v3 = vadd.f32 %v6822_v54, %v1909_v34  ;;  %v5535_v34 = vld [vmem:[%s7449_s10 + $0x10] sm:$0xff] }
 0x732   : > { %v1913_v19 = vadd.f32 %v6731_v59, %v1743_v57  ;;  %v2247_v7 = vadd.f32 %v6851_v26, %v2078_v3  ;;  %v2587_v59 = vadd.f32 %v6997_v29, %v2418_v36  ;;  %v5653_v29 = vld [vmem:[%s7447_s8] ss:$0 sm:$0xff]  ;;  %v5534_v57 = vld [vmem:[%s7448_s9 + $0x8] sm:$0x10] }
 0x734   : > { %v2082_v23 = vadd.f32 %v6840_v55, %v1913_v19  ;;  %v2076_v55 = vadd.f32 %v6807_v38, %v1907_v41  ;;  %v2416_v31 = vadd.f32 %v6962_v24, %v2247_v7 }
 0x736   : > { %v2251_v8 = vadd.f32 %v6873_v37, %v2082_v23  ;;  %v2245_v47 = vadd.f32 %v6844_v13, %v2076_v55  ;;  %v2585_v17 = vadd.f32 %v6992_v18, %v2416_v31  ;;  %v5533_v23 = vld [vmem:[%s7449_s10 + $0x8] sm:$0xff]  ;;  %v5540_v31 = vld [vmem:[%s7448_s9 + $0x18] sm:$0x10] }
 0x737   : > { %v2733_v11 = vpop.f32.mrf.mxu2 }
 0x738   : > { %v2420_v15 = vadd.f32 %v6983_v60, %v2251_v8  ;;  %v2414_v38 = vadd.f32 %v6947_v56, %v2245_v47 }
 0x73a   : > { %v2589_v54 = vadd.f32 %v7005_v10, %v2420_v15  ;;  %v2583_v45 = vadd.f32 %v6987_v61, %v2414_v38  ;;  %v5541_v38 = vld [vmem:[%s7449_s10 + $0x30] sm:$0xff] }
 0x73c   : > { %v2752_v42 = vadd.f32 %v2733_v11, %v2583_v45 }
 0x73f   : > { %v2736_v21 = vpop.f32.mrf.mxu2 }
 0x740   : > { %v2753_v13 = vadd.f32 %v2736_v21, %v6989_v16 }
 0x747   : > { %v2738_v58 = vpop.f32.mrf.mxu2 }
 0x748   : > { %v2754_v24 = vadd.f32 %v2738_v58, %v2585_v17 }
 0x74f   : > { %v2741_v1 = vpop.f32.mrf.mxu2 }
 0x750   : > { %v2755_v26 = vadd.f32 %v2741_v1, %v6994_v28 }
 0x757   : > { %v2743_v14 = vpop.f32.mrf.mxu2 }
 0x758   : > { %v2756_v62 = vadd.f32 %v2743_v14, %v2587_v59  ;;  %v5000_v59 = vld [vmem:[%s7448_s9 + $0x10] sm:$0xf] }
 0x75f   : > { %v2746_v9 = vpop.f32.mrf.mxu2 }
 0x760   : > { %v2757_v12 = vadd.f32 %v2746_v9, %v7002_v46  ;;  %v4971_v9 = vld [vmem:[%s7448_s9 + $0x8] sm:$0xf] }
 0x761   : > { %v4972_v35 = vor.u32 %v5534_v57, %v4971_v9 }
 0x767   : > { %v2748_v27 = vpop.f32.mrf.mxu2 }
 0x768   : > { %v2758_v60 = vadd.f32 %v2748_v27, %v2589_v54  ;;  %v5020_v27 = vld [vmem:[%s7448_s9 + $0x18] sm:$0xf] }
 0x769   : > { %v2900_v4 = vpop.f32.mrf.mxu0  ;;  %v5021_v54 = vor.u32 %v5540_v31, %v5020_v27  ;;  %v5565_v31 = vld [vmem:[%s7452_s13 + $0x38] sm:$0xff] }
 0x76a   : > { %v7013_v2 = vadd.f32 %v2900_v4, %v2751_v0 }
 0x76c   : > { %v2932_v11 = vadd.f32 %v5653_v29, %v7013_v2  ;;  %v5531_v2 = vld [vmem:[%s7448_s9] sm:$0x10] }
 0x76d   : > { %v4965_v19 = vor.u32 %v5531_v2, %v4964_v25  ;;  %v5551_v25 = vld [vmem:[%s7449_s10 + $0x68] sm:$0xff]  ;;  %v5553_v2 = vld [vmem:[%s7449_s10 + $0x70] sm:$0xff] }
 0x771   : > { %v2902_v22 = vpop.f32.mrf.mxu0 }
 0x772   : > { %v2921_v4 = vadd.f32 %v2902_v22, %v2752_v42 }
 0x774   : > { %v2933_v61 = vadd.f32 %v5653_v29, %v2921_v4  ;;  %v5120_v4 = vld [vmem:[%s7448_s9 + $0x40] sm:$0xf] }
 0x776   : > { %v2941_v22 = vmax.f32 %v2933_v61, 0.0  ;;  %v5547_v61 = vld [vmem:[%s7449_s10 + $0x50] sm:$0xff] }
 0x779   : > { %v2905_v40 = vpop.f32.mrf.mxu0 }
 0x77a   : > { %v2922_v49 = vadd.f32 %v2905_v40, %v2753_v13 }
 0x77c   : > { %v2934_v58 = vadd.f32 %v5653_v29, %v2922_v49 }
 0x77e   : > { %v2942_v40 = vmax.f32 %v2934_v58, 0.0  ;;  %v5548_v58 = vld [vmem:[%s7449_s10 + $0x58] sm:$0xff] }
 0x781   : > { %v2907_v52 = vpop.f32.mrf.mxu0 }
 0x782   : > { %v2923_v18 = vadd.f32 %v2907_v52, %v2754_v24  ;;  %v5552_v24 = vld [vmem:[%s7448_s9 + $0x38] sm:$0x10] }
 0x784   : > { %v2935_v1 = vadd.f32 %v5653_v29, %v2923_v18  ;;  %v5040_v18 = vld [vmem:[%s7448_s9 + $0x20] sm:$0xf] }
 0x786   : > { %v2943_v16 = vmax.f32 %v2935_v1, 0.0  ;;  %v5555_v1 = vld [vmem:[%s7448_s9 + $0x40] sm:$0x10] }
 0x788   : > { %v7058_v52 = vpack.c.bf16 %v2943_v16, %v2942_v40  ;;  %v5544_v40 = vld [vmem:[%s7449_s10 + $0x40] sm:$0xff] }
 0x789   : > { %v2910_v43 = vpop.f32.mrf.mxu0 }
 0x78a   : > { %v2924_v39 = vadd.f32 %v2910_v43, %v2755_v26 }
 0x78c   : > { %v2936_v50 = vadd.f32 %v5653_v29, %v2924_v39 }
 0x78e   : > { %v2944_v43 = vmax.f32 %v2936_v50, 0.0  ;;  %v5080_v50 = vld [vmem:[%s7448_s9 + $0x30] sm:$0xf] }
 0x791   : > { %v2912_v30 = vpop.f32.mrf.mxu0 }
 0x792   : > { %v2925_v46 = vadd.f32 %v2912_v30, %v2756_v62  ;;  %v2940_v30 = vmax.f32 %v2932_v11, 0.0  ;;  %v5060_v62 = vld [vmem:[%s7448_s9 + $0x28] sm:$0xf] }
 0x794   : > { %v2937_v48 = vadd.f32 %v5653_v29, %v2925_v46  ;;  %v7077_v32 = vpack.c.bf16 %v2941_v22, %v2940_v30 }
 0x796   : > { %v2945_v56 = vmax.f32 %v2937_v48, 0.0  ;;  %v5543_v48 = vld [vmem:[%s7448_s9 + $0x20] sm:$0x10] }
 0x798   : > { %v7053_v21 = vpack.c.bf16 %v2945_v56, %v2944_v43  ;;  %v5121_v56 = vor.u32 %v5555_v1, %v5120_v4  ;;  %v5545_v43 = vld [vmem:[%s7449_s10 + $0x48] sm:$0xff] }
 0x799   : > { %v2915_v53 = vpop.f32.mrf.mxu0  ;;  %3248 = vmatpush.bf16.msra.mxu0 %v5545_v43 }
 0x79a   : > { %v2926_v37 = vadd.f32 %v2915_v53, %v2757_v12  ;;  %v5538_v53 = vld [vmem:[%s7449_s10 + $0x20] sm:$0xff]  ;;  %v5537_v12 = vld [vmem:[%s7448_s9 + $0x10] sm:$0x10] }
 0x79b   : > { %v5001_v55 = vor.u32 %v5537_v12, %v5000_v59 }
 0x79c   : > { %v2938_v10 = vadd.f32 %v5653_v29, %v2926_v37  ;;  %v5546_v37 = vld [vmem:[%s7448_s9 + $0x28] sm:$0x10] }
 0x79d   : > { %v5061_v47 = vor.u32 %v5546_v37, %v5060_v62  ;;  %3249 = vmatpush.bf16.msra.mxu0 %v5544_v40  ;;  %v5564_v37 = vld [vmem:[%s7452_s13 + $0x30] sm:$0xff] }
 0x79e   : > { %v2946_v51 = vmax.f32 %v2938_v10, 0.0  ;;  %v5560_v40 = vld [vmem:[%s7452_s13 + $0x10] sm:$0xff] }
 0x7a1   : > { %v2917_v33 = vpop.f32.mrf.mxu0  ;;  %3372 = vmatpush.bf16.msrb.mxu0 %v5551_v25  ;;  %v5568_v25 = vld [vmem:[%s7452_s13 + $0x50] sm:$0xff] }
 0x7a2   : > { %v2927_v44 = vadd.f32 %v2917_v33, %v2758_v60  ;;  %v5100_v33 = vld [vmem:[%s7448_s9 + $0x38] sm:$0xf] }
 0x7a3   : > { %v5101_v39 = vor.u32 %v5552_v24, %v5100_v33 }
 0x7a4   : > { %v2939_v28 = vadd.f32 %v5653_v29, %v2927_v44  ;;  %v5542_v29 = vld [vmem:[%s7449_s10 + $0x38] sm:$0xff] }
 0x7a5   : > { %3186 = vmatpush.bf16.msra.mxu3 %v5542_v29 }
 0x7a6   : > { %v2947_v0 = vmax.f32 %v2939_v28, 0.0  ;;  %v5041_v28 = vor.u32 %v5543_v48, %v5040_v18 }
 0x7a8   : > { %v7049_v14 = vpack.c.bf16 %v2947_v0, %v2946_v51  ;;  %v5549_v51 = vld [vmem:[%s7448_s9 + $0x30] sm:$0x10] }
 0x7a9   : > { %3187 = vmatpush.bf16.msra.mxu3 %v5541_v38  ;;  %v5081_v0 = vor.u32 %v5549_v51, %v5080_v50 }
 0x7aa   : > { %2967 = vmatpush.bf16.msrb.mxu2 %v7049_v14  ;;  %2997 = vmatpush.bf16.msrb.mxu1 %v7049_v14 }
 0x7ad   : > { %3310 = vmatpush.bf16.msrb.mxu3 %v5548_v58 }
 0x7ae   : > { %2968 = vmatpush.bf16.msrb.mxu2 %v7053_v21  ;;  %2998 = vmatpush.bf16.msrb.mxu1 %v7053_v21 }
 0x7b1   : > { %3311 = vmatpush.bf16.msrb.mxu3 %v5547_v61  ;;  %v3515_v61 = vld [vmem:[%s7451_s12] sm:$0x1] }
 0x7b2   : > { %2969 = vmatpush.bf16.msrb.mxu2 %v7058_v52  ;;  %2999 = vmatpush.bf16.msrb.mxu1 %v7058_v52 }
 0x7b6   : > { %2970 = vmatpush.bf16.msrb.mxu2 %v7077_v32  ;;  %3000 = vmatpush.bf16.msrb.mxu1 %v7077_v32 }
 0x7b9   : > { %4966 = vmatmul.msk.bf16.vlgmr.msrb.gmra.mxu2 %vm2959_vm6, %v4965_v19  ;;  %4973 = vmatmul.msk.bf16.vlgmr.msrb.gmra.mxu1 %vm2959_vm6, %v4972_v35  ;;  %v5550_v35 = vld [vmem:[%s7449_s10 + $0x60] sm:$0xff] }
 0x7ba   : > { %3035 = vmatpush.bf16.msra.mxu2 %v5536_v63  ;;  %3064 = vmatpush.bf16.msra.mxu1 %v5533_v23 }
 0x7bb   : > { %3373 = vmatpush.bf16.msrb.mxu0 %v5550_v35 }
 0x7be   : > { %3036 = vmatpush.bf16.msra.mxu2 %v5535_v34  ;;  %3065 = vmatpush.bf16.msra.mxu1 %v5532_v6 }
 0x7c2   : > { %3087 = vmatpush.bf16.msrb.mxu2 %v7049_v14  ;;  %3124 = vmatpush.bf16.msrb.mxu1 %v5539_v20  ;;  %v5557_v20 = vld [vmem:[%s7449_s10 + $0x88] sm:$0xff] }
 0x7c6   : > { %3088 = vmatpush.bf16.msrb.mxu2 %v7053_v21  ;;  %3125 = vmatpush.bf16.msrb.mxu1 %v5538_v53 }
 0x7ca   : > { %3089 = vmatpush.bf16.msrb.mxu2 %v7058_v52 }
 0x7ce   : > { %3090 = vmatpush.bf16.msrb.mxu2 %v7077_v32 }
 0x836   : > { %v3002_v3 = vpop.f32.mrf.mxu1 }
 0x83c   : > { %v2972_v8 = vpop.f32.mrf.mxu2 }
 0x83e   : > { %v3004_v36 = vpop.f32.mrf.mxu1 }
 0x83f   : > { %v3007_v41 = vpack.c.bf16 %v3004_v36, %v3002_v3  ;;  %v5556_v3 = vld [vmem:[%s7449_s10 + $0x80] sm:$0xff] }
 0x841   : > { %4986 = vmatmul.msk.bf16.vlgmr.msra.gmra.mxu2 %vm3025_vm7, %v3007_v41 }
 0x842   : > { %3149 = vmatpush.bf16.msra.mxu2 %v7049_v14 }
 0x844   : > { %v2974_v7 = vpop.f32.mrf.mxu2 }
 0x845   : > { %v2977_v15 = vpack.c.bf16 %v2974_v7, %v2972_v8 }
 0x846   : > { %3150 = vmatpush.bf16.msra.mxu2 %v7053_v21 }
 0x847   : > { %4995 = vmatmul.msk.bf16.vlgmr.msra.gmra.mxu1 %vm3025_vm7, %v2977_v15 }
 0x848   : > { %3211 = vmatpush.bf16.msra.mxu1 %v7049_v14 }
 0x84a   : > { %3151 = vmatpush.bf16.msra.mxu2 %v7058_v52 }
 0x84c   : > { %3212 = vmatpush.bf16.msra.mxu1 %v7053_v21 }
 0x84e   : > { %3152 = vmatpush.bf16.msra.mxu2 %v7077_v32 }
 0x850   : > { %3213 = vmatpush.bf16.msra.mxu1 %v7058_v52 }
 0x851   : > { %5002 = vmatmul.msk.bf16.vlgmr.msrb.gmra.mxu2 %vm2959_vm6, %v5001_v55 }
 0x852   : > { %3273 = vmatpush.bf16.msrb.mxu2 %v7049_v14 }
 0x854   : > { %3214 = vmatpush.bf16.msra.mxu1 %v7077_v32 }
 0x856   : > { %3274 = vmatpush.bf16.msrb.mxu2 %v7053_v21 }
 0x85a   : > { %3275 = vmatpush.bf16.msrb.mxu2 %v7058_v52 }
 0x85e   : > { %3276 = vmatpush.bf16.msrb.mxu2 %v7077_v32 }
 0x861   : > { %5022 = vmatmul.msk.bf16.vlgmr.msra.gmra.mxu2 %vm2959_vm6, %v5021_v54 }
 0x862   : > { %3397 = vmatpush.bf16.msra.mxu2 %v7049_v14 }
 0x866   : > { %3398 = vmatpush.bf16.msra.mxu2 %v7053_v21 }
 0x86a   : > { %3399 = vmatpush.bf16.msra.mxu2 %v7058_v52 }
 0x86e   : > { %3400 = vmatpush.bf16.msra.mxu2 %v7077_v32 }
 0x871   : > { %5062 = vmatmul.msk.bf16.vlgmr.msrb.gmra.mxu2 %vm2959_vm6, %v5061_v47  ;;  %v5563_v47 = vld [vmem:[%s7452_s13 + $0x28] sm:$0xff] }
 0x881   : > { %5102 = vmatmul.msk.bf16.vlgmr.msra.gmra.mxu2 %vm2959_vm6, %v5101_v39 }
 0x8c4   : > { %v3038_v17 = vpop.f32.mrf.mxu2  ;;  %v3067_v26 = vpop.f32.mrf.mxu1 }
 0x8c5   : > { %v3068_v60 = vadd.f32 %v3067_v26, %v3038_v17  ;;  %v5562_v26 = vld [vmem:[%s7452_s13 + $0x20] sm:$0xff] }
 0x8cc   : > { %v3040_v46 = vpop.f32.mrf.mxu2  ;;  %v3069_v11 = vpop.f32.mrf.mxu1 }
 0x8d4   : > { %v3092_v10 = vpop.f32.mrf.mxu2 }
 0x8dc   : > { %v3094_v44 = vpop.f32.mrf.mxu2 }
 0x8dd   : > { %v3097_v45 = vpack.c.bf16 %v3094_v44, %v3092_v10 }
 0x8df   : > { %5015 = vmatmul.msk.bf16.vlgmr.msrb.gmra.mxu1 %vm3025_vm7, %v3097_v45 }
 0x8e0   : > { %3335 = vmatpush.bf16.msrb.mxu1 %v7049_v14 }
 0x8e4   : > { %3336 = vmatpush.bf16.msrb.mxu1 %v7053_v21  ;;  %v3154_v13 = vpop.f32.mrf.mxu2 }
 0x8e8   : > { %3337 = vmatpush.bf16.msrb.mxu1 %v7058_v52 }
 0x8ec   : > { %3338 = vmatpush.bf16.msrb.mxu1 %v7077_v32  ;;  %v3156_v42 = vpop.f32.mrf.mxu2 }
 0x8ed   : > { %v3159_v49 = vpack.c.bf16 %v3156_v42, %v3154_v13  ;;  %v5654_v42 = vld [vmem:[%s7450_s11] ss:$0 sm:$0xff] }
 0x8ef   : > { %5042 = vmatmul.msk.bf16.vlgmr.msra.gmra.mxu1 %vm2959_vm6, %v5041_v28  ;;  %5035 = vmatmul.msk.bf16.vlgmr.msra.gmra.mxu3 %vm3025_vm7, %v3159_v49 }
 0x8f0   : > { %3459 = vmatpush.bf16.msra.mxu1 %v7049_v14 }
 0x8f4   : > { %3460 = vmatpush.bf16.msra.mxu1 %v7053_v21  ;;  %v3278_v14 = vpop.f32.mrf.mxu2 }
 0x8f8   : > { %3461 = vmatpush.bf16.msra.mxu1 %v7058_v52  ;;  %v5554_v52 = vld [vmem:[%s7449_s10 + $0x78] sm:$0xff] }
 0x8f9   : > { %3434 = vmatpush.bf16.msra.mxu3 %v5554_v52  ;;  %v5558_v52 = vld [vmem:[%s7452_s13] sm:$0xff] }
 0x8fc   : > { %3462 = vmatpush.bf16.msra.mxu1 %v7077_v32  ;;  %v3280_v16 = vpop.f32.mrf.mxu2  ;;  %v3070_v32 = vadd.f32 %v3069_v11, %v3040_v46  ;;  %v5561_v11 = vld [vmem:[%s7452_s13 + $0x18] sm:$0xff] }
 0x8fd   : > { %v3283_v21 = vpack.c.bf16 %v3280_v16, %v3278_v14  ;;  %3435 = vmatpush.bf16.msra.mxu3 %v5553_v2  ;;  %v5137_v16 = vld [vmem:[%s7451_s12 + $0x1] sm:$0x1]  ;;  %v5567_v2 = vld [vmem:[%s7452_s13 + $0x48] sm:$0xff] }
 0x8ff   : > { %5082 = vmatmul.msk.bf16.vlgmr.msrb.gmra.mxu1 %vm2959_vm6, %v5081_v0  ;;  %5075 = vmatmul.msk.bf16.vlgmr.msrb.gmra.mxu3 %vm3025_vm7, %v3283_v21  ;;  %v5235_v21 = vld [vmem:[%s7451_s12 + $0x4] sm:$0x1] }
 0x900   : > { %3603 = vmatpush.bf16.msrb.mxu1 %v5565_v31 }
 0x904   : > { %v3402_v22 = vpop.f32.mrf.mxu2  ;;  %3604 = vmatpush.bf16.msrb.mxu1 %v5564_v37  ;;  %v5571_v37 = vld [vmem:[%s7452_s13 + $0x68] sm:$0xff] }
 0x908   : > { %3605 = vmatpush.bf16.msrb.mxu1 %v5563_v47  ;;  %v5584_v47 = vld [vmem:[%s7452_s13 + $0xd0] sm:$0xff] }
 0x90c   : > { %v3404_v57 = vpop.f32.mrf.mxu2  ;;  %3606 = vmatpush.bf16.msrb.mxu1 %v5562_v26  ;;  %v5570_v26 = vld [vmem:[%s7452_s13 + $0x60] sm:$0xff] }
 0x90d   : > { %v3407_v63 = vpack.c.bf16 %v3404_v57, %v3402_v22  ;;  %v5559_v22 = vld [vmem:[%s7452_s13 + $0x8] sm:$0xff]  ;;  %v5289_v57 = vld [vmem:[%s7451_s12 + $0x6] sm:$0x1] }
 0x90f   : > { %5122 = vmatmul.msk.bf16.vlgmr.msra.gmra.mxu1 %vm2959_vm6, %v5121_v56  ;;  %5115 = vmatmul.msk.bf16.vlgmr.msra.gmra.mxu3 %vm3025_vm7, %v3407_v63 }
 0x95c   : > { %v3127_v30 = vpop.f32.mrf.mxu1 }
 0x95d   : > { %v3132_v9 = vadd.f32 %v3127_v30, %v3068_v60  ;;  %v5569_v30 = vld [vmem:[%s7452_s13 + $0x58] sm:$0xff] }
 0x964   : > { %v3129_v19 = vpop.f32.mrf.mxu1 }
 0x965   : > { %v3133_v34 = vadd.f32 %v3129_v19, %v3070_v32 }
 0x96c   : > { %v3216_v23 = vpop.f32.mrf.mxu1 }
 0x972   : > { %v3189_v12 = vpop.f32.mrf.mxu3 }
 0x973   : > { %v3194_v29 = vadd.f32 %v3189_v12, %v3132_v9  ;;  %v5566_v9 = vld [vmem:[%s7452_s13 + $0x40] sm:$0xff]  ;;  %v5575_v12 = vld [vmem:[%s7452_s13 + $0x88] sm:$0xff] }
 0x974   : > { %v3218_v6 = vpop.f32.mrf.mxu1 }
 0x975   : > { %v3221_v53 = vpack.c.bf16 %v3218_v6, %v3216_v23 }
 0x977   : > { %5055 = vmatmul.msk.bf16.vlgmr.msra.gmra.mxu0 %vm3025_vm7, %v3221_v53 }
 0x978   : > { %3496 = vmatpush.bf16.msra.mxu0 %v5557_v20  ;;  %v5208_v20 = vld [vmem:[%s7451_s12 + $0x3] sm:$0x1] }
 0x97a   : > { %v3191_v55 = vpop.f32.mrf.mxu3 }
 0x97b   : > { %v3195_v33 = vadd.f32 %v3191_v55, %v3133_v34  ;;  %v5343_v34 = vld [vmem:[%s7451_s12 + $0x8] sm:$0x1]  ;;  %v5574_v55 = vld [vmem:[%s7452_s13 + $0x80] sm:$0xff] }
 0x97c   : > { %v3340_v8 = vpop.f32.mrf.mxu1  ;;  %3497 = vmatpush.bf16.msra.mxu0 %v5556_v3 }
 0x982   : > { %v3313_v54 = vpop.f32.mrf.mxu3 }
 0x984   : > { %v3342_v36 = vpop.f32.mrf.mxu1 }
 0x985   : > { %v3345_v41 = vpack.c.bf16 %v3342_v36, %v3340_v8  ;;  %v5262_v36 = vld [vmem:[%s7451_s12 + $0x5] sm:$0x1] }
 0x987   : > { %5095 = vmatmul.msk.bf16.vlgmr.msrb.gmra.mxu0 %vm3025_vm7, %v3345_v41  ;;  %v5316_v41 = vld [vmem:[%s7451_s12 + $0x7] sm:$0x1] }
 0x988   : > { %3643 = vmatpush.bf16.msrb.mxu0 %v5561_v11  ;;  %v5586_v11 = vld [vmem:[%s7452_s13 + $0xe0] sm:$0xff] }
 0x98a   : > { %v3315_v60 = vpop.f32.mrf.mxu3 }
 0x98c   : > { %v3464_v7 = vpop.f32.mrf.mxu1  ;;  %3644 = vmatpush.bf16.msrb.mxu0 %v5560_v40 }
 0x990   : > { %3645 = vmatpush.bf16.msrb.mxu0 %v5559_v22 }
 0x992   : > { %v3437_v24 = vpop.f32.mrf.mxu3 }
 0x994   : > { %v3466_v15 = vpop.f32.mrf.mxu1  ;;  %3646 = vmatpush.bf16.msrb.mxu0 %v5558_v52 }
 0x995   : > { %v3469_v59 = vpack.c.bf16 %v3466_v15, %v3464_v7  ;;  %v5577_v7 = vld [vmem:[%s7452_s13 + $0x98] sm:$0xff]  ;;  %v5576_v15 = vld [vmem:[%s7452_s13 + $0x90] sm:$0xff] }
 0x997   : > { %5135 = vmatmul.msk.bf16.vlgmr.msra.gmra.mxu0 %vm3025_vm7, %v3469_v59  ;;  %v5573_v59 = vld [vmem:[%s7452_s13 + $0x78] sm:$0xff] }
 0x998   : > { %3780 = vmatpush.bf16.msra.mxu0 %v5573_v59 }
 0x99a   : > { %v3439_v49 = vpop.f32.mrf.mxu3 }
 0x9f4   : > { %v3251_v27 = vpop.f32.mrf.mxu0 }
 0x9f5   : > { %v3256_v38 = vadd.f32 %v3251_v27, %v3194_v29  ;;  %v5581_v29 = vld [vmem:[%s7452_s13 + $0xb8] sm:$0xff] }
 0x9f7   : > { %v3318_v39 = vadd.f32 %v3313_v54, %v3256_v38  ;;  %v5572_v54 = vld [vmem:[%s7452_s13 + $0x70] sm:$0xff] }
 0x9f8   : > { %3781 = vmatpush.bf16.msra.mxu0 %v5572_v54 }
 0x9fc   : > { %v3253_v62 = vpop.f32.mrf.mxu0  ;;  %3782 = vmatpush.bf16.msra.mxu0 %v5571_v37 }
 0x9fd   : > { %v3257_v10 = vadd.f32 %v3253_v62, %v3195_v33  ;;  %v5585_v62 = vld [vmem:[%s7452_s13 + $0xd8] sm:$0xff] }
 0x9ff   : > { %v3319_v13 = vadd.f32 %v3315_v60, %v3257_v10  ;;  %v5583_v60 = vld [vmem:[%s7452_s13 + $0xc8] sm:$0xff] }
 0xa00   : > { %3783 = vmatpush.bf16.msra.mxu0 %v5570_v26  ;;  %v5579_v10 = vld [vmem:[%s7452_s13 + $0xa8] sm:$0xff] }
 0xa04   : > { %v3375_v17 = vpop.f32.mrf.mxu0 }
 0xa05   : > { %v3380_v44 = vadd.f32 %v3375_v17, %v3318_v39  ;;  %v5593_v39 = vld [vmem:[%s7452_s13 + $0x118] sm:$0xff] }
 0xa07   : > { %v3442_v18 = vadd.f32 %v3437_v24, %v3380_v44  ;;  %v5580_v24 = vld [vmem:[%s7452_s13 + $0xb0] sm:$0xff] }
 0xa08   : > { %v5592_v44 = vld [vmem:[%s7452_s13 + $0x110] sm:$0xff] }
 0xa0c   : > { %v3377_v46 = vpop.f32.mrf.mxu0 }
 0xa0d   : > { %v3381_v48 = vadd.f32 %v3377_v46, %v3319_v13  ;;  %v5582_v46 = vld [vmem:[%s7452_s13 + $0xc0] sm:$0xff] }
 0xa0f   : > { %v3443_v50 = vadd.f32 %v3439_v49, %v3381_v48  ;;  %v5591_v48 = vld [vmem:[%s7452_s13 + $0x108] sm:$0xff]  ;;  %v5590_v49 = vld [vmem:[%s7452_s13 + $0x100] sm:$0xff] }
 0xa14   : > { %v3499_v45 = vpop.f32.mrf.mxu0 }
 0xa15   : > { %v3504_v28 = vadd.f32 %v3499_v45, %v3442_v18  ;;  %v5578_v18 = vld [vmem:[%s7452_s13 + $0xa0] sm:$0xff] }
 0xa17   : > { %v3510_v0 = vadd.f32 %v5654_v42, %v3504_v28 }
 0xa19   : > { %v3512_v56 = vmax.f32 %v3510_v0, 0.0 }
 0xa1c   : > { %v3501_v51 = vpop.f32.mrf.mxu0 }
 0xa1d   : > { %v3505_v4 = vadd.f32 %v3501_v51, %v3443_v50 }
 0xa1f   : > { %v3511_v1 = vadd.f32 %v5654_v42, %v3505_v4 }
 0xa21   : > { %v3513_v14 = vmax.f32 %v3511_v1, 0.0 }
 0xa23   : > { %v3514_v58 = vpack.c.bf16 %v3513_v14, %v3512_v56  ;;  %v5589_v14 = vld [vmem:[%s7452_s13 + $0xf8] sm:$0xff] }
 0xa25   : > { %v3520_v43 = vand.u32 %v3514_v58, %v5865_v5  ;;  %v5181_v5 = vld [vmem:[%s7451_s12 + $0x2] sm:$0x1] }
 0xa27   : > { %3529 = vmatpush.bf16.msrb.mxu2 %v3520_v43  ;;  %3556 = vmatpush.bf16.msrb.mxu3 %v3520_v43 }
 0xa28   : > { %3733 = vmatpush.bf16.msra.mxu1 %v3520_v43 }
 0xa2a   : > { %5136 = vmatmul.msk.bf16.vlgmr.msrb.gmra.mxu2 %vm646_vm2, %v3515_v61  ;;  %5138 = vmatmul.msk.bf16.vlgmr.msrb.gmra.mxu3 %vm646_vm2, %v5137_v16 }
 0xa2b   : > { %3664 = vmatpush.bf16.msra.mxu2 %v3520_v43  ;;  %3711 = vmatpush.bf16.msra.mxu3 %v5569_v30 }
 0xa2f   : > { %3802 = vmatpush.bf16.msrb.mxu2 %v3520_v43  ;;  %3712 = vmatpush.bf16.msra.mxu3 %v5568_v25 }
 0xa33   : > { %3713 = vmatpush.bf16.msra.mxu3 %v5567_v2 }
 0xa37   : > { %3714 = vmatpush.bf16.msra.mxu3 %v5566_v9 }
 0xa3a   : > { %5182 = vmatmul.msk.bf16.vlgmr.msra.gmra.mxu2 %vm646_vm2, %v5181_v5 }
 0xa3b   : > { %3940 = vmatpush.bf16.msra.mxu2 %v3520_v43  ;;  %3849 = vmatpush.bf16.msrb.mxu3 %v5577_v7 }
 0xa3f   : > { %3850 = vmatpush.bf16.msrb.mxu3 %v5576_v15  ;;  %v5594_v15 = vld [vmem:[%s7454_s15] sm:$0xff] }
 0xa43   : > { %3851 = vmatpush.bf16.msrb.mxu3 %v5575_v12 }
 0xa47   : > { %3852 = vmatpush.bf16.msrb.mxu3 %v5574_v55 }
 0xa4a   : > { %5236 = vmatmul.msk.bf16.vlgmr.msrb.gmra.mxu2 %vm646_vm2, %v5235_v21  ;;  %v5587_v21 = vld [vmem:[%s7452_s13 + $0xe8] sm:$0xff] }
 0xa4b   : > { %4078 = vmatpush.bf16.msrb.mxu2 %v3520_v43 }
 0xa5a   : > { %5290 = vmatmul.msk.bf16.vlgmr.msra.gmra.mxu2 %vm646_vm2, %v5289_v57 }
 0xa6a   : > { %5344 = vmatmul.msk.bf16.vlgmr.msrb.gmra.mxu2 %vm646_vm2, %v5343_v34  ;;  %v5599_v34 = vld [vmem:[%s7454_s15 + $0x28] sm:$0xff] }
 0xaad   : > { %v3558_v63 = vpop.f32.mrf.mxu3  ;;  %v3531_v32 = vpop.f32.mrf.mxu2 }
 0xaae   : > { %v3562_v19 = vpack.c.bf16 %v3558_v63, %v3558_v63  ;;  %v3535_v35 = vpack.c.bf16 %v3531_v32, %v3531_v32  ;;  %v5601_v32 = vld [vmem:[%s7454_s15 + $0x38] sm:$0xff] }
 0xab0   : > { %5163 = vmatmul.msk.bf16.vlgmr.msrb.gmra.mxu1 %vm2959_vm6, %v3562_v19  ;;  %5180 = vmatmul.msk.bf16.vlgmr.msrb.gmra.mxu0 %vm2959_vm6, %v3535_v35  ;;  %v5600_v35 = vld [vmem:[%s7454_s15 + $0x30] sm:$0xff] }
 0xab1   : > { %3871 = vmatpush.bf16.msrb.mxu1 %v3520_v43  ;;  %3918 = vmatpush.bf16.msrb.mxu0 %v5581_v29 }
 0xab5   : > { %v3533_v23 = vpop.f32.mrf.mxu2  ;;  %v3560_v6 = vpop.f32.mrf.mxu3  ;;  %3919 = vmatpush.bf16.msrb.mxu0 %v5580_v24 }
 0xab6   : > { %v5598_v6 = vld [vmem:[%s7454_s15 + $0x20] sm:$0xff] }
 0xab9   : > { %3920 = vmatpush.bf16.msrb.mxu0 %v5579_v10 }
 0xabd   : > { %v3666_v53 = vpop.f32.mrf.mxu2  ;;  %3921 = vmatpush.bf16.msrb.mxu0 %v5578_v18 }
 0xabe   : > { %v3670_v3 = vpack.c.bf16 %v3666_v53, %v3666_v53 }
 0xac0   : > { %5209 = vmatmul.msk.bf16.vlgmr.msra.gmra.mxu1 %vm646_vm2, %v5208_v20  ;;  %5207 = vmatmul.msk.bf16.vlgmr.msra.gmra.mxu3 %vm2959_vm6, %v3670_v3  ;;  %v5597_v20 = vld [vmem:[%s7454_s15 + $0x18] sm:$0xff] }
 0xac1   : > { %4009 = vmatpush.bf16.msra.mxu1 %v3520_v43  ;;  %3987 = vmatpush.bf16.msra.mxu3 %v5585_v62  ;;  %v5588_v43 = vld [vmem:[%s7452_s13 + $0xf0] sm:$0xff] }
 0xac5   : > { %v3668_v8 = vpop.f32.mrf.mxu2  ;;  %3988 = vmatpush.bf16.msra.mxu3 %v5584_v47  ;;  %v4135_v47 = vld [vmem:[%s7453_s14] sm:$0x1] }
 0xac6   : > { %v5596_v8 = vld [vmem:[%s7454_s15 + $0x10] sm:$0xff] }
 0xac9   : > { %3989 = vmatpush.bf16.msra.mxu3 %v5583_v60 }
 0xacd   : > { %v3804_v27 = vpop.f32.mrf.mxu2  ;;  %3990 = vmatpush.bf16.msra.mxu3 %v5582_v46 }
 0xace   : > { %v3808_v31 = vpack.c.bf16 %v3804_v27, %v3804_v27 }
 0xad0   : > { %5263 = vmatmul.msk.bf16.vlgmr.msrb.gmra.mxu1 %vm646_vm2, %v5262_v36  ;;  %5261 = vmatmul.msk.bf16.vlgmr.msrb.gmra.mxu3 %vm2959_vm6, %v3808_v31  ;;  %v5595_v36 = vld [vmem:[%s7454_s15 + $0x8] sm:$0xff] }
 0xad1   : > { %4125 = vmatpush.bf16.msrb.mxu3 %v5593_v39  ;;  %4204 = vmatpush.bf16.msrb.mxu1 %v5601_v32 }
 0xad5   : > { %v3806_v17 = vpop.f32.mrf.mxu2  ;;  %4126 = vmatpush.bf16.msrb.mxu3 %v5592_v44  ;;  %4205 = vmatpush.bf16.msrb.mxu1 %v5600_v35 }
 0xad9   : > { %4127 = vmatpush.bf16.msrb.mxu3 %v5591_v48  ;;  %4206 = vmatpush.bf16.msrb.mxu1 %v5599_v34 }
 0xadd   : > { %v3942_v38 = vpop.f32.mrf.mxu2  ;;  %4128 = vmatpush.bf16.msrb.mxu3 %v5590_v49  ;;  %4207 = vmatpush.bf16.msrb.mxu1 %v5598_v6 }
 0xade   : > { %v3946_v33 = vpack.c.bf16 %v3942_v38, %v3942_v38  ;;  %v4155_v38 = vld [vmem:[%s7455_s16] sm:$0x1] }
 0xae0   : > { %5317 = vmatmul.msk.bf16.vlgmr.msra.gmra.mxu1 %vm646_vm2, %v5316_v41  ;;  %5315 = vmatmul.msk.bf16.vlgmr.msra.gmra.mxu3 %vm2959_vm6, %v3946_v33 }
 0xae1   : > { %4208 = vmatpush.bf16.msrb.mxu1 %v5597_v20 }
 0xae5   : > { %v3944_v45 = vpop.f32.mrf.mxu2  ;;  %4209 = vmatpush.bf16.msrb.mxu1 %v5596_v8 }
 0xae9   : > { %4210 = vmatpush.bf16.msrb.mxu1 %v5595_v36 }
 0xaed   : > { %v4080_v50 = vpop.f32.mrf.mxu2  ;;  %4211 = vmatpush.bf16.msrb.mxu1 %v5594_v15 }
 0xaee   : > { %v4084_v51 = vpack.c.bf16 %v4080_v50, %v4080_v50 }
 0xaf0   : > { %5369 = vmatmul.msk.bf16.vlgmr.msrb.gmra.mxu3 %vm2959_vm6, %v4084_v51 }
 0xaf5   : > { %v4082_v1 = vpop.f32.mrf.mxu2 }
 0xb2d   : > { %v3608_v13 = vpop.f32.mrf.mxu1  ;;  %v3648_v28 = vpop.f32.mrf.mxu0 }
 0xb2e   : > { %v3649_v42 = vadd.f32 %v3648_v28, %v3608_v13 }
 0xb35   : > { %v3610_v0 = vpop.f32.mrf.mxu1  ;;  %v3650_v4 = vpop.f32.mrf.mxu0 }
 0xb3d   : > { %v3735_v56 = vpop.f32.mrf.mxu1 }
 0xb3e   : > { %v3739_v58 = vpack.c.bf16 %v3735_v56, %v3735_v56 }
 0xb40   : > { %5234 = vmatmul.msk.bf16.vlgmr.msra.gmra.mxu0 %vm2959_vm6, %v3739_v58 }
 0xb41   : > { %4056 = vmatpush.bf16.msra.mxu0 %v5589_v14 }
 0xb43   : > { %v3716_v61 = vpop.f32.mrf.mxu3 }
 0xb44   : > { %v3720_v16 = vadd.f32 %v3716_v61, %v3649_v42 }
 0xb45   : > { %v3737_v5 = vpop.f32.mrf.mxu1  ;;  %4057 = vmatpush.bf16.msra.mxu0 %v5588_v43 }
 0xb49   : > { %4058 = vmatpush.bf16.msra.mxu0 %v5587_v21 }
 0xb4b   : > { %v3718_v40 = vpop.f32.mrf.mxu3 }
 0xb4d   : > { %v3873_v22 = vpop.f32.mrf.mxu1  ;;  %4059 = vmatpush.bf16.msra.mxu0 %v5586_v11 }
 0xb4e   : > { %v3877_v52 = vpack.c.bf16 %v3873_v22, %v3873_v22 }
 0xb50   : > { %5288 = vmatmul.msk.bf16.vlgmr.msrb.gmra.mxu0 %vm2959_vm6, %v3877_v52 }
 0xb53   : > { %v3854_v57 = vpop.f32.mrf.mxu3 }
 0xb55   : > { %v3875_v30 = vpop.f32.mrf.mxu1 }
 0xb5b   : > { %v3856_v63 = vpop.f32.mrf.mxu3 }
 0xb5d   : > { %v4011_v25 = vpop.f32.mrf.mxu1 }
 0xb5e   : > { %v4015_v2 = vpack.c.bf16 %v4011_v25, %v4011_v25 }
 0xb60   : > { %5342 = vmatmul.msk.bf16.vlgmr.msra.gmra.mxu0 %vm2959_vm6, %v4015_v2 }
 0xb63   : > { %v3992_v19 = vpop.f32.mrf.mxu3 }
 0xb65   : > { %v4013_v9 = vpop.f32.mrf.mxu1 }
 0xb6b   : > { %v3994_v23 = vpop.f32.mrf.mxu3 }
 0xb73   : > { %v4130_v53 = vpop.f32.mrf.mxu3 }
 0xb7b   : > { %v4132_v41 = vpop.f32.mrf.mxu3 }
 0xbbd   : > { %v3785_v3 = vpop.f32.mrf.mxu0 }
 0xbbe   : > { %v3789_v12 = vadd.f32 %v3785_v3, %v3720_v16 }
 0xbc0   : > { %v3858_v27 = vadd.f32 %v3854_v57, %v3789_v12 }
 0xbc5   : > { %v3787_v7 = vpop.f32.mrf.mxu0 }
 0xbcd   : > { %v3923_v59 = vpop.f32.mrf.mxu0 }
 0xbce   : > { %v3927_v31 = vadd.f32 %v3923_v59, %v3858_v27 }
 0xbd0   : > { %v3996_v54 = vadd.f32 %v3992_v19, %v3927_v31 }
 0xbd5   : > { %v3925_v55 = vpop.f32.mrf.mxu0 }
 0xbdd   : > { %v4061_v62 = vpop.f32.mrf.mxu0 }
 0xbde   : > { %v4065_v37 = vadd.f32 %v4061_v62, %v3996_v54 }
 0xbe0   : > { %v4134_v17 = vadd.f32 %v4130_v53, %v4065_v37 }
 0xbe2   : > { %v4136_v26 = vadd.f32 %v4135_v47, %v4134_v17 }
 0xbe4   : > { %v4137_v60 = vmax.f32 %v4136_v26, 0.0 }
 0xbe5   : > { %v4063_v29 = vpop.f32.mrf.mxu0 }
 0xbe6   : > { %v4138_v46 = vpack.c.bf16 %v4137_v60, %v4137_v60 }
 0xbe8   : > { %4212 = vmatmul.bf16.vlgmr.msrb.gmra.mxu1 %v4138_v46 }
 0xc65   : > { %v4213_v33 = vpop.f32.mrf.mxu1 }
 0xc66   : > { %v4214_v24 = vadd.f32 %v4213_v33, %v4155_v38 }
 0xc68   : > { %v4217_v39 = vmax.f32 %v4214_v24, 0.0 }
 0xc6a   : > { %4219 = vst.msk [vmem:[%s540_s19] sm:$0x1] %vm4218_vm8, %v4217_v39 }
 0xc6b   : > { %5682 = shalt.err (!%p5679_p3)
}
 0xc6c   : > { %5611 = dma.vmem_to_hbm [thread:$0]  (%p5848_p5), %s4232_s2, 16, %s4234_s23, %s4221_s0  }
 0xc6d   : > { %v4215_v10 = vpop.f32.mrf.mxu1 }
 0xc6e PF: > { %p5617_p4 = scmp.ge.s32.totalorder %s5717_s27, 2  ;;  %s4245_s29 = sand.u32 1, %s5705_s24  }
 0xc6f   : > { %s4246_s19 = scalar_lea.sflag [#allocation3], %s4245_s29 }
 0xc70   : > { %p5614_p7 = pnand %p5617_p4, %p5852_p6 }
 0xc72   : > { %p5615_p8 = pneg %p5614_p7 }
 0xc74   : > { %5700 = dma.done.wait (%p5615_p8), %s4246_s19, 16  }
 0xc75   : > { %5702 = vsyncadd (%p5615_p8), %s4246_s19, 4294967280  ;;  %s7475_s27 = sld [smem:[#allocation6_spill]]  ;;  %s7478_s24 = smov %s5709_s25 }
 0xc76   : > { %s7476_s3 = sld [smem:[#allocation5_spill]] }
 0xc77   : > { %s7477_s26 = sld [smem:[#allocation7_spill]] }
 0xc7b   : > { %p27_p9 = scmp.ge.s32.totalorder %s7475_s27, 4  }
 0xc7c   : > { %s7479_s25 = smov %s7476_s3 }
 0xc7d   :  { %29 = sbr.rel (!%p27_p9) target bundleno = 8 (0x8), region = 171 }
 0xc82   :  { %4251 = vsyncpa [#allocation3], 1 }
 0xc83   :  { %4253 = vsyncpa [#allocation3 + $0x1], 1 }

</bundles_post_ra>
